<compile_context>
chip_gen: v7x
topology: tpu7x:2x2x1
jax: 0.10.0
libtpu: 0.0.40
codegen_flags: <defaults>
</compile_context>

<pallas_src>
import jax
import jax.numpy as jnp
from jax.experimental import pallas as pl
from jax.experimental.pallas import tpu as pltpu

D_MODEL = 32
N_HEADS = 4
D_HEAD = D_MODEL // N_HEADS
D_FF = 64
LN_EPS = 1e-5
NUM_LAYERS = 2
NUM_MODALITIES = 3


# ---------------------------------------------------------------------------
# Kernel
# ---------------------------------------------------------------------------
def _layernorm(x, gamma, beta):
    mu = jnp.mean(x, axis=-1, keepdims=True)
    var = jnp.mean(jnp.square(x - mu), axis=-1, keepdims=True)
    return (x - mu) * jax.lax.rsqrt(var + LN_EPS) * gamma + beta


def _make_fused_kernel(S, D, H, DFF, num_layers):
    """Fused [all layers x all modalities x MHA+FFN] kernel for one batch element."""
    NM = NUM_MODALITIES
    Dh = D // H

    def kernel(x_ref, mask_ref,
               wqkv_ref, bqkv_ref, wo_ref, bo_ref,
               g1_ref, bn1_ref, w1_ref, b1_ref,
               w2_ref, b2_ref, g2_ref, bn2_ref,
               o_ref):
        # x_ref:    (1, NM, S, D)  one batch element, all three modality streams
        # mask_ref: (1, 1, S)      additive key-padding mask (0 or -1e9)
        # weights:  (NM, r, c)     bf16 (cast once on the host)
        # biases/LN:(NM, 1, c)     f32
        x = x_ref[0]                                   # (NM, S, D) f32
        mask = mask_ref[...]                           # (1, 1, S)  f32

        # Hoist all parameter reads out of the layer loop.
        wqkv = wqkv_ref[...]                           # (NM, D, 3D) bf16
        wo = wo_ref[...]                               # (NM, D, D)  bf16
        w1 = w1_ref[...]                               # (NM, D, DFF) bf16
        w2 = w2_ref[...]                               # (NM, DFF, D) bf16
        bqkv = bqkv_ref[...]                           # (NM, 1, 3D) f32
        bo = bo_ref[...]                               # (NM, 1, D)
        b1 = b1_ref[...]                               # (NM, 1, DFF)
        b2 = b2_ref[...]                               # (NM, 1, D)
        g1 = g1_ref[...]; bn1 = bn1_ref[...]           # (NM, 1, D)
        g2 = g2_ref[...]; bn2 = bn2_ref[...]           # (NM, 1, D)

        # _get_clones deep-copies the layer => all layers share identical
        # (initial) weights; reuse the same parameter set every iteration.
        for _ in range(num_layers):
            # ---- fused QKV projection, batched over modalities ------------
            qkv = jnp.einsum('msd,mde->mse', x.astype(jnp.bfloat16), wqkv,
                             preferred_element_type=jnp.float32) + bqkv    # (NM, S, 3D)

            # ---- multi-head self-attention (modality-batched per head) ----
            # Softmax scale is folded into the Q columns of wqkv at init.
            heads = []
            for h in range(H):                         # static unroll, H=4
                q_h = qkv[:, :, h * Dh:(h + 1) * Dh].astype(jnp.bfloat16)
                k_h = qkv[:, :, D + h * Dh:D + (h + 1) * Dh].astype(jnp.bfloat16)
                v_h = qkv[:, :, 2 * D + h * Dh:2 * D + (h + 1) * Dh].astype(jnp.bfloat16)
                s = jnp.einsum('mqd,mkd->mqk', q_h, k_h,
                               preferred_element_type=jnp.float32) + mask   # (NM, S, S)
                s = s - jnp.max(s, axis=-1, keepdims=True)
                p = jnp.exp(s)
                p = p * pl.reciprocal(jnp.sum(p, axis=-1, keepdims=True),
                                      approx=True)
                heads.append(jnp.einsum('mqk,mkd->mqd', p.astype(jnp.bfloat16),
                                        v_h, preferred_element_type=jnp.float32))
            # merge heads -> single K=32 output projection (no accumulation)
            o = jnp.concatenate(heads, axis=-1)                              # (NM, S, D)
            attn = jnp.einsum('msd,mde->mse', o.astype(jnp.bfloat16), wo,
                              preferred_element_type=jnp.float32) + bo       # (NM, S, D)

            # ---- post-norm residual + ReLU FFN -----------------------------
            x1 = _layernorm(x + attn, g1, bn1)
            hdn = jnp.maximum(
                jnp.einsum('msd,mdf->msf', x1.astype(jnp.bfloat16), w1,
                           preferred_element_type=jnp.float32) + b1, 0.0)
            y = jnp.einsum('msf,mfd->msd', hdn.astype(jnp.bfloat16), w2,
                           preferred_element_type=jnp.float32) + b2
            x = _layernorm(x1 + y, g2, bn2)

        o_ref[0] = x.astype(o_ref.dtype)

    return kernel


# ---------------------------------------------------------------------------
# pallas_call wrapper
# ---------------------------------------------------------------------------
_PARAM_ORDER = ("wqkv", "bqkv", "wo", "bo",
                "g1", "bn1", "w1", "b1", "w2", "b2", "g2", "bn2")
_BF16_WEIGHTS = ("wqkv", "wo", "w1", "w2")


def acme_fused_call(x_bm, mask_add, params, num_layers):
    """x_bm: (B, 3, S, D) f32; mask_add: (B, 1, S) f32; params: dict of (3, r, c)."""
    B, NM, S, D = x_bm.shape
    DFF = params["w1"].shape[-1]
    kernel = _make_fused_kernel(S, D, N_HEADS, DFF, num_layers)

    def full_spec(shape):
        nd = len(shape)
        return pl.BlockSpec(tuple(shape), lambda b, _nd=nd: (0,) * _nd)

    in_specs = [pl.BlockSpec((1, NM, S, D), lambda b: (b, 0, 0, 0)),
                pl.BlockSpec((1, 1, S), lambda b: (b, 0, 0))]
    args = [x_bm, mask_add]
    for name in _PARAM_ORDER:
        p = params[name]
        if name in _BF16_WEIGHTS:
            p = p.astype(jnp.bfloat16)      # bf16 MXU operands; f32 accumulation in-kernel
        in_specs.append(full_spec(p.shape))
        args.append(p)

    # advisory cost estimate for the XLA scheduler
    flops_per_layer_bm = (2 * S * D * 3 * D            # fused QKV
                          + 4 * S * S * D               # scores + PV (all heads)
                          + 2 * S * D * D               # out proj
                          + 4 * S * D * DFF)            # FFN
    cost = pl.CostEstimate(
        flops=int(B * NM * num_layers * flops_per_layer_bm),
        transcendentals=int(B * num_layers *
                            (NM * N_HEADS * S * S + NM * N_HEADS * S + 2 * NM * S)),
        bytes_accessed=int(sum(int(a.size) * a.dtype.itemsize for a in args)
                           + B * NM * S * D * 4),
    )

    return pl.pallas_call(
        kernel,
        out_shape=jax.ShapeDtypeStruct((B, NM, S, D), x_bm.dtype),
        grid=(B,),                                     # batch axis: parallel for v7x's 2 TCs
        in_specs=in_specs,
        out_specs=pl.BlockSpec((1, NM, S, D), lambda b: (b, 0, 0, 0)),
        compiler_params=pltpu.CompilerParams(dimension_semantics=("parallel",)),
        cost_estimate=cost,
    )(*args)


# ---------------------------------------------------------------------------
# Parameters (deterministic init; _get_clones deep-copies => all layers share
# identical initial weights, so one parameter set is reused for every layer).
# Per-modality parameters are stacked along a leading axis of size 3.
# ---------------------------------------------------------------------------
def init_encoder_layer_params(key):
    scale = 1.0 / (D_HEAD ** 0.5)

    def linear(k, fan_in, fan_out):
        w = jax.random.normal(k, (fan_in, fan_out), jnp.float32) / jnp.sqrt(float(fan_in))
        b = jnp.zeros((1, fan_out), jnp.float32)
        return w, b

    def one_modality(k):
        ks = jax.random.split(k, 6)
        wq, bq = linear(ks[0], D_MODEL, D_MODEL)
        wk, bk = linear(ks[1], D_MODEL, D_MODEL)
        wv, bv = linear(ks[2], D_MODEL, D_MODEL)
        wo, bo = linear(ks[3], D_MODEL, D_MODEL)
        w1, b1 = linear(ks[4], D_MODEL, D_FF)
        w2, b2 = linear(ks[5], D_FF, D_MODEL)
        # fold the 1/sqrt(d_head) softmax scale into the Q projection (init-time, free)
        wq = wq * scale
        bq = bq * scale
        return dict(
            wqkv=jnp.concatenate([wq, wk, wv], axis=1),   # fused QKV (D, 3D)
            bqkv=jnp.concatenate([bq, bk, bv], axis=1),   # (1, 3D)
            wo=wo, bo=bo,
            g1=jnp.ones((1, D_MODEL), jnp.float32),
            bn1=jnp.zeros((1, D_MODEL), jnp.float32),
            w1=w1, b1=b1, w2=w2, b2=b2,
            g2=jnp.ones((1, D_MODEL), jnp.float32),
            bn2=jnp.zeros((1, D_MODEL), jnp.float32),
        )

    kt, kv, ka = jax.random.split(key, 3)
    per_mod = [one_modality(k) for k in (kt, kv, ka)]
    return {name: jnp.stack([pm[name] for pm in per_mod], axis=0)
            for name in _PARAM_ORDER}


# ---------------------------------------------------------------------------
# ACME forward
# ---------------------------------------------------------------------------
def acme_forward(features_t, features_v, features_a, key_padding_mask,
                 layer_params, num_layers=NUM_LAYERS):
    """features_*: (S, B, D) float32; key_padding_mask: (B, S) bool, True = padded."""
    S, B, D = features_t.shape
    # One stack + one transpose for all modalities and all layers
    # (seq-first -> batch-major (B, 3, S, D); modalities stay batched in-kernel).
    x = jnp.stack([features_t, features_v, features_a], axis=0)         # (3, S, B, D)
    x = jnp.transpose(x, (2, 0, 1, 3))                                  # (B, 3, S, D)
    mask_add = jnp.where(key_padding_mask, -1e9, 0.0).astype(jnp.float32)[:, None, :]  # (B,1,S)

    out = acme_fused_call(x, mask_add, layer_params, num_layers)        # (B, 3, S, D)

    out = jnp.transpose(out, (1, 2, 0, 3))                              # (3, S, B, D)
    return out[0], out[1], out[2]


# ---------------------------------------------------------------------------
if __name__ == "__main__":
    S, B = 8, 2
    key = jax.random.PRNGKey(0)
    k1, k2, k3, kp = jax.random.split(key, 4)

    features_t = jax.random.normal(k1, (S, B, D_MODEL), jnp.float32)
    features_v = jax.random.normal(k2, (S, B, D_MODEL), jnp.float32)
    features_a = jax.random.normal(k3, (S, B, D_MODEL), jnp.float32)
    # last two sequence positions are padding
    key_padding_mask = jnp.zeros((B, S), dtype=bool).at[:, S - 2:].set(True)

    params = init_encoder_layer_params(kp)

    out_t, out_v, out_a = jax.jit(acme_forward)(
        features_t, features_v, features_a, key_padding_mask, params)
    jax.block_until_ready((out_t, out_v, out_a))

    assert out_t.shape == (S, B, D_MODEL)
    assert out_v.shape == (S, B, D_MODEL)
    assert out_a.shape == (S, B, D_MODEL)
    assert bool(jnp.all(jnp.isfinite(out_t)))
    assert bool(jnp.all(jnp.isfinite(out_v)))
    assert bool(jnp.all(jnp.isfinite(out_a)))
    print("KERNEL_OK")
</pallas_src>

<mosaic_0001>
module attributes {stable_mosaic.version = 11 : i64} {
  func.func @kernel(%arg0: i32, %arg1: memref<1x3x8x32xf32, #tpu.memory_space<vmem>>, %arg2: memref<1x1x8xf32, #tpu.memory_space<vmem>>, %arg3: memref<3x32x96xbf16, #tpu.memory_space<vmem>>, %arg4: memref<3x1x96xf32, #tpu.memory_space<vmem>>, %arg5: memref<3x32x32xbf16, #tpu.memory_space<vmem>>, %arg6: memref<3x1x32xf32, #tpu.memory_space<vmem>>, %arg7: memref<3x1x32xf32, #tpu.memory_space<vmem>>, %arg8: memref<3x1x32xf32, #tpu.memory_space<vmem>>, %arg9: memref<3x32x64xbf16, #tpu.memory_space<vmem>>, %arg10: memref<3x1x64xf32, #tpu.memory_space<vmem>>, %arg11: memref<3x64x32xbf16, #tpu.memory_space<vmem>>, %arg12: memref<3x1x32xf32, #tpu.memory_space<vmem>>, %arg13: memref<3x1x32xf32, #tpu.memory_space<vmem>>, %arg14: memref<3x1x32xf32, #tpu.memory_space<vmem>>, %arg15: memref<1x3x8x32xf32, #tpu.memory_space<vmem>>) attributes {dimension_semantics = [#tpu.dimension_semantics<parallel>], iteration_bounds = array<i64: 2>, scalar_prefetch = 0 : i64, scratch_operands = 0 : i64, tpu.core_type = #tpu.core_type<tc>, window_params = [{transform_indices = @transform_0, window_bounds = array<i64: 1, 3, 8, 32>}, {transform_indices = @transform_1, window_bounds = array<i64: 1, 1, 8>}, {pipeline_mode = #tpu.pipeline_mode<synchronous>, transform_indices = @transform_2, window_bounds = array<i64: 3, 32, 96>}, {pipeline_mode = #tpu.pipeline_mode<synchronous>, transform_indices = @transform_3, window_bounds = array<i64: 3, 1, 96>}, {pipeline_mode = #tpu.pipeline_mode<synchronous>, transform_indices = @transform_4, window_bounds = array<i64: 3, 32, 32>}, {pipeline_mode = #tpu.pipeline_mode<synchronous>, transform_indices = @transform_5, window_bounds = array<i64: 3, 1, 32>}, {pipeline_mode = #tpu.pipeline_mode<synchronous>, transform_indices = @transform_6, window_bounds = array<i64: 3, 1, 32>}, {pipeline_mode = #tpu.pipeline_mode<synchronous>, transform_indices = @transform_7, window_bounds = array<i64: 3, 1, 32>}, {pipeline_mode = #tpu.pipeline_mode<synchronous>, transform_indices = @transform_8, window_bounds = array<i64: 3, 32, 64>}, {pipeline_mode = #tpu.pipeline_mode<synchronous>, transform_indices = @transform_9, window_bounds = array<i64: 3, 1, 64>}, {pipeline_mode = #tpu.pipeline_mode<synchronous>, transform_indices = @transform_10, window_bounds = array<i64: 3, 64, 32>}, {pipeline_mode = #tpu.pipeline_mode<synchronous>, transform_indices = @transform_11, window_bounds = array<i64: 3, 1, 32>}, {pipeline_mode = #tpu.pipeline_mode<synchronous>, transform_indices = @transform_12, window_bounds = array<i64: 3, 1, 32>}, {pipeline_mode = #tpu.pipeline_mode<synchronous>, transform_indices = @transform_13, window_bounds = array<i64: 3, 1, 32>}, {transform_indices = @transform_14, window_bounds = array<i64: 1, 3, 8, 32>}]} {
    %c0 = arith.constant 0 : index
    %c0_0 = arith.constant 0 : index
    %c0_1 = arith.constant 0 : index
    %c0_2 = arith.constant 0 : index
    %0 = vector.load %arg1[%c0, %c0_0, %c0_1, %c0_2] : memref<1x3x8x32xf32, #tpu.memory_space<vmem>>, vector<1x3x8x32xf32>
    %1 = vector.shape_cast %0 : vector<1x3x8x32xf32> to vector<3x8x32xf32>
    %c0_3 = arith.constant 0 : index
    %c0_4 = arith.constant 0 : index
    %c0_5 = arith.constant 0 : index
    %2 = vector.load %arg2[%c0_3, %c0_4, %c0_5] : memref<1x1x8xf32, #tpu.memory_space<vmem>>, vector<1x1x8xf32>
    %c0_6 = arith.constant 0 : index
    %c0_7 = arith.constant 0 : index
    %c0_8 = arith.constant 0 : index
    %3 = vector.load %arg3[%c0_6, %c0_7, %c0_8] : memref<3x32x96xbf16, #tpu.memory_space<vmem>>, vector<3x32x96xbf16>
    %c0_9 = arith.constant 0 : index
    %c0_10 = arith.constant 0 : index
    %c0_11 = arith.constant 0 : index
    %4 = vector.load %arg5[%c0_9, %c0_10, %c0_11] : memref<3x32x32xbf16, #tpu.memory_space<vmem>>, vector<3x32x32xbf16>
    %c0_12 = arith.constant 0 : index
    %c0_13 = arith.constant 0 : index
    %c0_14 = arith.constant 0 : index
    %5 = vector.load %arg9[%c0_12, %c0_13, %c0_14] : memref<3x32x64xbf16, #tpu.memory_space<vmem>>, vector<3x32x64xbf16>
    %c0_15 = arith.constant 0 : index
    %c0_16 = arith.constant 0 : index
    %c0_17 = arith.constant 0 : index
    %6 = vector.load %arg11[%c0_15, %c0_16, %c0_17] : memref<3x64x32xbf16, #tpu.memory_space<vmem>>, vector<3x64x32xbf16>
    %c0_18 = arith.constant 0 : index
    %c0_19 = arith.constant 0 : index
    %c0_20 = arith.constant 0 : index
    %7 = vector.load %arg4[%c0_18, %c0_19, %c0_20] : memref<3x1x96xf32, #tpu.memory_space<vmem>>, vector<3x1x96xf32>
    %c0_21 = arith.constant 0 : index
    %c0_22 = arith.constant 0 : index
    %c0_23 = arith.constant 0 : index
    %8 = vector.load %arg6[%c0_21, %c0_22, %c0_23] : memref<3x1x32xf32, #tpu.memory_space<vmem>>, vector<3x1x32xf32>
    %c0_24 = arith.constant 0 : index
    %c0_25 = arith.constant 0 : index
    %c0_26 = arith.constant 0 : index
    %9 = vector.load %arg10[%c0_24, %c0_25, %c0_26] : memref<3x1x64xf32, #tpu.memory_space<vmem>>, vector<3x1x64xf32>
    %c0_27 = arith.constant 0 : index
    %c0_28 = arith.constant 0 : index
    %c0_29 = arith.constant 0 : index
    %10 = vector.load %arg12[%c0_27, %c0_28, %c0_29] : memref<3x1x32xf32, #tpu.memory_space<vmem>>, vector<3x1x32xf32>
    %c0_30 = arith.constant 0 : index
    %c0_31 = arith.constant 0 : index
    %c0_32 = arith.constant 0 : index
    %11 = vector.load %arg7[%c0_30, %c0_31, %c0_32] : memref<3x1x32xf32, #tpu.memory_space<vmem>>, vector<3x1x32xf32>
    %c0_33 = arith.constant 0 : index
    %c0_34 = arith.constant 0 : index
    %c0_35 = arith.constant 0 : index
    %12 = vector.load %arg8[%c0_33, %c0_34, %c0_35] : memref<3x1x32xf32, #tpu.memory_space<vmem>>, vector<3x1x32xf32>
    %c0_36 = arith.constant 0 : index
    %c0_37 = arith.constant 0 : index
    %c0_38 = arith.constant 0 : index
    %13 = vector.load %arg13[%c0_36, %c0_37, %c0_38] : memref<3x1x32xf32, #tpu.memory_space<vmem>>, vector<3x1x32xf32>
    %c0_39 = arith.constant 0 : index
    %c0_40 = arith.constant 0 : index
    %c0_41 = arith.constant 0 : index
    %14 = vector.load %arg14[%c0_39, %c0_40, %c0_41] : memref<3x1x32xf32, #tpu.memory_space<vmem>>, vector<3x1x32xf32>
    %15 = arith.truncf %1 : vector<3x8x32xf32> to vector<3x8x32xbf16>
    "tpu.trace_start"() <{level = 10 : i32, message = "msd,mde->mse"}> : () -> ()
    %cst = arith.constant dense<0.000000e+00> : vector<3x8x96xf32>
    %16 = tpu.matmul %15, %3, %cst {dimension_numbers = #tpu.dot_dimension_numbers<[2], [1], [1], [2], [0, 0, 0, 1, 1, 2], [0], [0]>} : vector<3x8x32xbf16>, vector<3x32x96xbf16>, vector<3x8x96xf32> -> vector<3x8x96xf32>
    "tpu.trace_stop"() : () -> ()
    %17 = vector.broadcast %7 : vector<3x1x96xf32> to vector<3x8x96xf32>
    %18 = arith.addf %16, %17 : vector<3x8x96xf32>
    %19 = vector.extract_strided_slice %18 {offsets = [0, 0, 0], sizes = [3, 8, 8], strides = [1, 1, 1]} : vector<3x8x96xf32> to vector<3x8x8xf32>
    %20 = arith.truncf %19 : vector<3x8x8xf32> to vector<3x8x8xbf16>
    %21 = vector.extract_strided_slice %18 {offsets = [0, 0, 32], sizes = [3, 8, 8], strides = [1, 1, 1]} : vector<3x8x96xf32> to vector<3x8x8xf32>
    %22 = arith.truncf %21 : vector<3x8x8xf32> to vector<3x8x8xbf16>
    %23 = vector.extract_strided_slice %18 {offsets = [0, 0, 64], sizes = [3, 8, 8], strides = [1, 1, 1]} : vector<3x8x96xf32> to vector<3x8x8xf32>
    %24 = arith.truncf %23 : vector<3x8x8xf32> to vector<3x8x8xbf16>
    "tpu.trace_start"() <{level = 10 : i32, message = "mqd,mkd->mqk"}> : () -> ()
    %cst_42 = arith.constant dense<0.000000e+00> : vector<3x8x8xf32>
    %25 = tpu.matmul %20, %22, %cst_42 {dimension_numbers = #tpu.dot_dimension_numbers<[2], [2], [1], [1], [0, 0, 0, 1, 1, 1], [0], [0]>} : vector<3x8x8xbf16>, vector<3x8x8xbf16>, vector<3x8x8xf32> -> vector<3x8x8xf32>
    "tpu.trace_stop"() : () -> ()
    %26 = vector.broadcast %2 : vector<1x1x8xf32> to vector<3x8x8xf32>
    %27 = arith.addf %25, %26 : vector<3x8x8xf32>
    %cst_43 = arith.constant dense<0xFF800000> : vector<3x8xf32>
    %28 = vector.multi_reduction <maximumf>, %27, %cst_43 [2] : vector<3x8x8xf32> to vector<3x8xf32>
    %29 = vector.shape_cast %28 : vector<3x8xf32> to vector<3x8x1xf32>
    %30 = vector.broadcast %29 : vector<3x8x1xf32> to vector<3x8x8xf32>
    %31 = arith.subf %27, %30 : vector<3x8x8xf32>
    %32 = math.exp %31 : vector<3x8x8xf32>
    %cst_44 = arith.constant dense<0.000000e+00> : vector<3x8xf32>
    %33 = vector.multi_reduction <add>, %32, %cst_44 [2] : vector<3x8x8xf32> to vector<3x8xf32>
    %34 = vector.shape_cast %33 : vector<3x8xf32> to vector<3x8x1xf32>
    %35 = tpu.reciprocal %34 {approx = true} : vector<3x8x1xf32> -> vector<3x8x1xf32>
    %36 = vector.broadcast %35 : vector<3x8x1xf32> to vector<3x8x8xf32>
    %37 = arith.mulf %32, %36 : vector<3x8x8xf32>
    %38 = arith.truncf %37 : vector<3x8x8xf32> to vector<3x8x8xbf16>
    "tpu.trace_start"() <{level = 10 : i32, message = "mqk,mkd->mqd"}> : () -> ()
    %cst_45 = arith.constant dense<0.000000e+00> : vector<3x8x8xf32>
    %39 = tpu.matmul %38, %24, %cst_45 {dimension_numbers = #tpu.dot_dimension_numbers<[2], [1], [1], [2], [0, 0, 0, 1, 1, 2], [0], [0]>} : vector<3x8x8xbf16>, vector<3x8x8xbf16>, vector<3x8x8xf32> -> vector<3x8x8xf32>
    "tpu.trace_stop"() : () -> ()
    %40 = vector.extract_strided_slice %18 {offsets = [0, 0, 8], sizes = [3, 8, 8], strides = [1, 1, 1]} : vector<3x8x96xf32> to vector<3x8x8xf32>
    %41 = arith.truncf %40 : vector<3x8x8xf32> to vector<3x8x8xbf16>
    %42 = vector.extract_strided_slice %18 {offsets = [0, 0, 40], sizes = [3, 8, 8], strides = [1, 1, 1]} : vector<3x8x96xf32> to vector<3x8x8xf32>
    %43 = arith.truncf %42 : vector<3x8x8xf32> to vector<3x8x8xbf16>
    %44 = vector.extract_strided_slice %18 {offsets = [0, 0, 72], sizes = [3, 8, 8], strides = [1, 1, 1]} : vector<3x8x96xf32> to vector<3x8x8xf32>
    %45 = arith.truncf %44 : vector<3x8x8xf32> to vector<3x8x8xbf16>
    "tpu.trace_start"() <{level = 10 : i32, message = "mqd,mkd->mqk"}> : () -> ()
    %cst_46 = arith.constant dense<0.000000e+00> : vector<3x8x8xf32>
    %46 = tpu.matmul %41, %43, %cst_46 {dimension_numbers = #tpu.dot_dimension_numbers<[2], [2], [1], [1], [0, 0, 0, 1, 1, 1], [0], [0]>} : vector<3x8x8xbf16>, vector<3x8x8xbf16>, vector<3x8x8xf32> -> vector<3x8x8xf32>
    "tpu.trace_stop"() : () -> ()
    %47 = vector.broadcast %2 : vector<1x1x8xf32> to vector<3x8x8xf32>
    %48 = arith.addf %46, %47 : vector<3x8x8xf32>
    %cst_47 = arith.constant dense<0xFF800000> : vector<3x8xf32>
    %49 = vector.multi_reduction <maximumf>, %48, %cst_47 [2] : vector<3x8x8xf32> to vector<3x8xf32>
    %50 = vector.shape_cast %49 : vector<3x8xf32> to vector<3x8x1xf32>
    %51 = vector.broadcast %50 : vector<3x8x1xf32> to vector<3x8x8xf32>
    %52 = arith.subf %48, %51 : vector<3x8x8xf32>
    %53 = math.exp %52 : vector<3x8x8xf32>
    %cst_48 = arith.constant dense<0.000000e+00> : vector<3x8xf32>
    %54 = vector.multi_reduction <add>, %53, %cst_48 [2] : vector<3x8x8xf32> to vector<3x8xf32>
    %55 = vector.shape_cast %54 : vector<3x8xf32> to vector<3x8x1xf32>
    %56 = tpu.reciprocal %55 {approx = true} : vector<3x8x1xf32> -> vector<3x8x1xf32>
    %57 = vector.broadcast %56 : vector<3x8x1xf32> to vector<3x8x8xf32>
    %58 = arith.mulf %53, %57 : vector<3x8x8xf32>
    %59 = arith.truncf %58 : vector<3x8x8xf32> to vector<3x8x8xbf16>
    "tpu.trace_start"() <{level = 10 : i32, message = "mqk,mkd->mqd"}> : () -> ()
    %cst_49 = arith.constant dense<0.000000e+00> : vector<3x8x8xf32>
    %60 = tpu.matmul %59, %45, %cst_49 {dimension_numbers = #tpu.dot_dimension_numbers<[2], [1], [1], [2], [0, 0, 0, 1, 1, 2], [0], [0]>} : vector<3x8x8xbf16>, vector<3x8x8xbf16>, vector<3x8x8xf32> -> vector<3x8x8xf32>
    "tpu.trace_stop"() : () -> ()
    %61 = vector.extract_strided_slice %18 {offsets = [0, 0, 16], sizes = [3, 8, 8], strides = [1, 1, 1]} : vector<3x8x96xf32> to vector<3x8x8xf32>
    %62 = arith.truncf %61 : vector<3x8x8xf32> to vector<3x8x8xbf16>
    %63 = vector.extract_strided_slice %18 {offsets = [0, 0, 48], sizes = [3, 8, 8], strides = [1, 1, 1]} : vector<3x8x96xf32> to vector<3x8x8xf32>
    %64 = arith.truncf %63 : vector<3x8x8xf32> to vector<3x8x8xbf16>
    %65 = vector.extract_strided_slice %18 {offsets = [0, 0, 80], sizes = [3, 8, 8], strides = [1, 1, 1]} : vector<3x8x96xf32> to vector<3x8x8xf32>
    %66 = arith.truncf %65 : vector<3x8x8xf32> to vector<3x8x8xbf16>
    "tpu.trace_start"() <{level = 10 : i32, message = "mqd,mkd->mqk"}> : () -> ()
    %cst_50 = arith.constant dense<0.000000e+00> : vector<3x8x8xf32>
    %67 = tpu.matmul %62, %64, %cst_50 {dimension_numbers = #tpu.dot_dimension_numbers<[2], [2], [1], [1], [0, 0, 0, 1, 1, 1], [0], [0]>} : vector<3x8x8xbf16>, vector<3x8x8xbf16>, vector<3x8x8xf32> -> vector<3x8x8xf32>
    "tpu.trace_stop"() : () -> ()
    %68 = vector.broadcast %2 : vector<1x1x8xf32> to vector<3x8x8xf32>
    %69 = arith.addf %67, %68 : vector<3x8x8xf32>
    %cst_51 = arith.constant dense<0xFF800000> : vector<3x8xf32>
    %70 = vector.multi_reduction <maximumf>, %69, %cst_51 [2] : vector<3x8x8xf32> to vector<3x8xf32>
    %71 = vector.shape_cast %70 : vector<3x8xf32> to vector<3x8x1xf32>
    %72 = vector.broadcast %71 : vector<3x8x1xf32> to vector<3x8x8xf32>
    %73 = arith.subf %69, %72 : vector<3x8x8xf32>
    %74 = math.exp %73 : vector<3x8x8xf32>
    %cst_52 = arith.constant dense<0.000000e+00> : vector<3x8xf32>
    %75 = vector.multi_reduction <add>, %74, %cst_52 [2] : vector<3x8x8xf32> to vector<3x8xf32>
    %76 = vector.shape_cast %75 : vector<3x8xf32> to vector<3x8x1xf32>
    %77 = tpu.reciprocal %76 {approx = true} : vector<3x8x1xf32> -> vector<3x8x1xf32>
    %78 = vector.broadcast %77 : vector<3x8x1xf32> to vector<3x8x8xf32>
    %79 = arith.mulf %74, %78 : vector<3x8x8xf32>
    %80 = arith.truncf %79 : vector<3x8x8xf32> to vector<3x8x8xbf16>
    "tpu.trace_start"() <{level = 10 : i32, message = "mqk,mkd->mqd"}> : () -> ()
    %cst_53 = arith.constant dense<0.000000e+00> : vector<3x8x8xf32>
    %81 = tpu.matmul %80, %66, %cst_53 {dimension_numbers = #tpu.dot_dimension_numbers<[2], [1], [1], [2], [0, 0, 0, 1, 1, 2], [0], [0]>} : vector<3x8x8xbf16>, vector<3x8x8xbf16>, vector<3x8x8xf32> -> vector<3x8x8xf32>
    "tpu.trace_stop"() : () -> ()
    %82 = vector.extract_strided_slice %18 {offsets = [0, 0, 24], sizes = [3, 8, 8], strides = [1, 1, 1]} : vector<3x8x96xf32> to vector<3x8x8xf32>
    %83 = arith.truncf %82 : vector<3x8x8xf32> to vector<3x8x8xbf16>
    %84 = vector.extract_strided_slice %18 {offsets = [0, 0, 56], sizes = [3, 8, 8], strides = [1, 1, 1]} : vector<3x8x96xf32> to vector<3x8x8xf32>
    %85 = arith.truncf %84 : vector<3x8x8xf32> to vector<3x8x8xbf16>
    %86 = vector.extract_strided_slice %18 {offsets = [0, 0, 88], sizes = [3, 8, 8], strides = [1, 1, 1]} : vector<3x8x96xf32> to vector<3x8x8xf32>
    %87 = arith.truncf %86 : vector<3x8x8xf32> to vector<3x8x8xbf16>
    "tpu.trace_start"() <{level = 10 : i32, message = "mqd,mkd->mqk"}> : () -> ()
    %cst_54 = arith.constant dense<0.000000e+00> : vector<3x8x8xf32>
    %88 = tpu.matmul %83, %85, %cst_54 {dimension_numbers = #tpu.dot_dimension_numbers<[2], [2], [1], [1], [0, 0, 0, 1, 1, 1], [0], [0]>} : vector<3x8x8xbf16>, vector<3x8x8xbf16>, vector<3x8x8xf32> -> vector<3x8x8xf32>
    "tpu.trace_stop"() : () -> ()
    %89 = vector.broadcast %2 : vector<1x1x8xf32> to vector<3x8x8xf32>
    %90 = arith.addf %88, %89 : vector<3x8x8xf32>
    %cst_55 = arith.constant dense<0xFF800000> : vector<3x8xf32>
    %91 = vector.multi_reduction <maximumf>, %90, %cst_55 [2] : vector<3x8x8xf32> to vector<3x8xf32>
    %92 = vector.shape_cast %91 : vector<3x8xf32> to vector<3x8x1xf32>
    %93 = vector.broadcast %92 : vector<3x8x1xf32> to vector<3x8x8xf32>
    %94 = arith.subf %90, %93 : vector<3x8x8xf32>
    %95 = math.exp %94 : vector<3x8x8xf32>
    %cst_56 = arith.constant dense<0.000000e+00> : vector<3x8xf32>
    %96 = vector.multi_reduction <add>, %95, %cst_56 [2] : vector<3x8x8xf32> to vector<3x8xf32>
    %97 = vector.shape_cast %96 : vector<3x8xf32> to vector<3x8x1xf32>
    %98 = tpu.reciprocal %97 {approx = true} : vector<3x8x1xf32> -> vector<3x8x1xf32>
    %99 = vector.broadcast %98 : vector<3x8x1xf32> to vector<3x8x8xf32>
    %100 = arith.mulf %95, %99 : vector<3x8x8xf32>
    %101 = arith.truncf %100 : vector<3x8x8xf32> to vector<3x8x8xbf16>
    "tpu.trace_start"() <{level = 10 : i32, message = "mqk,mkd->mqd"}> : () -> ()
    %cst_57 = arith.constant dense<0.000000e+00> : vector<3x8x8xf32>
    %102 = tpu.matmul %101, %87, %cst_57 {dimension_numbers = #tpu.dot_dimension_numbers<[2], [1], [1], [2], [0, 0, 0, 1, 1, 2], [0], [0]>} : vector<3x8x8xbf16>, vector<3x8x8xbf16>, vector<3x8x8xf32> -> vector<3x8x8xf32>
    "tpu.trace_stop"() : () -> ()
    %103 = tpu.concatenate %39, %60, %81, %102 in 2 : vector<3x8x8xf32>, vector<3x8x8xf32>, vector<3x8x8xf32>, vector<3x8x8xf32> -> vector<3x8x32xf32>
    %104 = arith.truncf %103 : vector<3x8x32xf32> to vector<3x8x32xbf16>
    "tpu.trace_start"() <{level = 10 : i32, message = "msd,mde->mse"}> : () -> ()
    %cst_58 = arith.constant dense<0.000000e+00> : vector<3x8x32xf32>
    %105 = tpu.matmul %104, %4, %cst_58 {dimension_numbers = #tpu.dot_dimension_numbers<[2], [1], [1], [2], [0, 0, 0, 1, 1, 2], [0], [0]>} : vector<3x8x32xbf16>, vector<3x32x32xbf16>, vector<3x8x32xf32> -> vector<3x8x32xf32>
    "tpu.trace_stop"() : () -> ()
    %106 = vector.broadcast %8 : vector<3x1x32xf32> to vector<3x8x32xf32>
    %107 = arith.addf %105, %106 : vector<3x8x32xf32>
    %108 = arith.addf %1, %107 : vector<3x8x32xf32>
    %cst_59 = arith.constant dense<0.000000e+00> : vector<3x8xf32>
    %109 = vector.multi_reduction <add>, %108, %cst_59 [2] : vector<3x8x32xf32> to vector<3x8xf32>
    %110 = vector.shape_cast %109 : vector<3x8xf32> to vector<3x8x1xf32>
    %cst_60 = arith.constant 3.200000e+01 : f32
    %111 = vector.broadcast %cst_60 : f32 to vector<3x8x1xf32>
    %112 = arith.divf %110, %111 : vector<3x8x1xf32>
    %113 = vector.broadcast %112 : vector<3x8x1xf32> to vector<3x8x32xf32>
    %114 = arith.subf %108, %113 : vector<3x8x32xf32>
    %115 = arith.mulf %114, %114 : vector<3x8x32xf32>
    %cst_61 = arith.constant dense<0.000000e+00> : vector<3x8xf32>
    %116 = vector.multi_reduction <add>, %115, %cst_61 [2] : vector<3x8x32xf32> to vector<3x8xf32>
    %117 = vector.shape_cast %116 : vector<3x8xf32> to vector<3x8x1xf32>
    %cst_62 = arith.constant 3.200000e+01 : f32
    %118 = vector.broadcast %cst_62 : f32 to vector<3x8x1xf32>
    %119 = arith.divf %117, %118 : vector<3x8x1xf32>
    %120 = vector.broadcast %112 : vector<3x8x1xf32> to vector<3x8x32xf32>
    %121 = arith.subf %108, %120 : vector<3x8x32xf32>
    %cst_63 = arith.constant 9.99999974E-6 : f32
    %122 = vector.broadcast %cst_63 : f32 to vector<3x8x1xf32>
    %123 = arith.addf %119, %122 : vector<3x8x1xf32>
    %124 = math.rsqrt %123 : vector<3x8x1xf32>
    %125 = vector.broadcast %124 : vector<3x8x1xf32> to vector<3x8x32xf32>
    %126 = arith.mulf %121, %125 : vector<3x8x32xf32>
    %127 = vector.broadcast %11 : vector<3x1x32xf32> to vector<3x8x32xf32>
    %128 = arith.mulf %126, %127 : vector<3x8x32xf32>
    %129 = vector.broadcast %12 : vector<3x1x32xf32> to vector<3x8x32xf32>
    %130 = arith.addf %128, %129 : vector<3x8x32xf32>
    %131 = arith.truncf %130 : vector<3x8x32xf32> to vector<3x8x32xbf16>
    "tpu.trace_start"() <{level = 10 : i32, message = "msd,mdf->msf"}> : () -> ()
    %cst_64 = arith.constant dense<0.000000e+00> : vector<3x8x64xf32>
    %132 = tpu.matmul %131, %5, %cst_64 {dimension_numbers = #tpu.dot_dimension_numbers<[2], [1], [1], [2], [0, 0, 0, 1, 1, 2], [0], [0]>} : vector<3x8x32xbf16>, vector<3x32x64xbf16>, vector<3x8x64xf32> -> vector<3x8x64xf32>
    "tpu.trace_stop"() : () -> ()
    %133 = vector.broadcast %9 : vector<3x1x64xf32> to vector<3x8x64xf32>
    %134 = arith.addf %132, %133 : vector<3x8x64xf32>
    %cst_65 = arith.constant 0.000000e+00 : f32
    %135 = vector.broadcast %cst_65 : f32 to vector<3x8x64xf32>
    %136 = arith.maximumf %134, %135 : vector<3x8x64xf32>
    %137 = arith.truncf %136 : vector<3x8x64xf32> to vector<3x8x64xbf16>
    "tpu.trace_start"() <{level = 10 : i32, message = "msf,mfd->msd"}> : () -> ()
    %cst_66 = arith.constant dense<0.000000e+00> : vector<3x8x32xf32>
    %138 = tpu.matmul %137, %6, %cst_66 {dimension_numbers = #tpu.dot_dimension_numbers<[2], [1], [1], [2], [0, 0, 0, 1, 1, 2], [0], [0]>} : vector<3x8x64xbf16>, vector<3x64x32xbf16>, vector<3x8x32xf32> -> vector<3x8x32xf32>
    "tpu.trace_stop"() : () -> ()
    %139 = vector.broadcast %10 : vector<3x1x32xf32> to vector<3x8x32xf32>
    %140 = arith.addf %138, %139 : vector<3x8x32xf32>
    %141 = arith.addf %130, %140 : vector<3x8x32xf32>
    %cst_67 = arith.constant dense<0.000000e+00> : vector<3x8xf32>
    %142 = vector.multi_reduction <add>, %141, %cst_67 [2] : vector<3x8x32xf32> to vector<3x8xf32>
    %143 = vector.shape_cast %142 : vector<3x8xf32> to vector<3x8x1xf32>
    %cst_68 = arith.constant 3.200000e+01 : f32
    %144 = vector.broadcast %cst_68 : f32 to vector<3x8x1xf32>
    %145 = arith.divf %143, %144 : vector<3x8x1xf32>
    %146 = vector.broadcast %145 : vector<3x8x1xf32> to vector<3x8x32xf32>
    %147 = arith.subf %141, %146 : vector<3x8x32xf32>
    %148 = arith.mulf %147, %147 : vector<3x8x32xf32>
    %cst_69 = arith.constant dense<0.000000e+00> : vector<3x8xf32>
    %149 = vector.multi_reduction <add>, %148, %cst_69 [2] : vector<3x8x32xf32> to vector<3x8xf32>
    %150 = vector.shape_cast %149 : vector<3x8xf32> to vector<3x8x1xf32>
    %cst_70 = arith.constant 3.200000e+01 : f32
    %151 = vector.broadcast %cst_70 : f32 to vector<3x8x1xf32>
    %152 = arith.divf %150, %151 : vector<3x8x1xf32>
    %153 = vector.broadcast %145 : vector<3x8x1xf32> to vector<3x8x32xf32>
    %154 = arith.subf %141, %153 : vector<3x8x32xf32>
    %cst_71 = arith.constant 9.99999974E-6 : f32
    %155 = vector.broadcast %cst_71 : f32 to vector<3x8x1xf32>
    %156 = arith.addf %152, %155 : vector<3x8x1xf32>
    %157 = math.rsqrt %156 : vector<3x8x1xf32>
    %158 = vector.broadcast %157 : vector<3x8x1xf32> to vector<3x8x32xf32>
    %159 = arith.mulf %154, %158 : vector<3x8x32xf32>
    %160 = vector.broadcast %13 : vector<3x1x32xf32> to vector<3x8x32xf32>
    %161 = arith.mulf %159, %160 : vector<3x8x32xf32>
    %162 = vector.broadcast %14 : vector<3x1x32xf32> to vector<3x8x32xf32>
    %163 = arith.addf %161, %162 : vector<3x8x32xf32>
    %164 = arith.truncf %163 : vector<3x8x32xf32> to vector<3x8x32xbf16>
    "tpu.trace_start"() <{level = 10 : i32, message = "msd,mde->mse"}> : () -> ()
    %cst_72 = arith.constant dense<0.000000e+00> : vector<3x8x96xf32>
    %165 = tpu.matmul %164, %3, %cst_72 {dimension_numbers = #tpu.dot_dimension_numbers<[2], [1], [1], [2], [0, 0, 0, 1, 1, 2], [0], [0]>} : vector<3x8x32xbf16>, vector<3x32x96xbf16>, vector<3x8x96xf32> -> vector<3x8x96xf32>
    "tpu.trace_stop"() : () -> ()
    %166 = vector.broadcast %7 : vector<3x1x96xf32> to vector<3x8x96xf32>
    %167 = arith.addf %165, %166 : vector<3x8x96xf32>
    %168 = vector.extract_strided_slice %167 {offsets = [0, 0, 0], sizes = [3, 8, 8], strides = [1, 1, 1]} : vector<3x8x96xf32> to vector<3x8x8xf32>
    %169 = arith.truncf %168 : vector<3x8x8xf32> to vector<3x8x8xbf16>
    %170 = vector.extract_strided_slice %167 {offsets = [0, 0, 32], sizes = [3, 8, 8], strides = [1, 1, 1]} : vector<3x8x96xf32> to vector<3x8x8xf32>
    %171 = arith.truncf %170 : vector<3x8x8xf32> to vector<3x8x8xbf16>
    %172 = vector.extract_strided_slice %167 {offsets = [0, 0, 64], sizes = [3, 8, 8], strides = [1, 1, 1]} : vector<3x8x96xf32> to vector<3x8x8xf32>
    %173 = arith.truncf %172 : vector<3x8x8xf32> to vector<3x8x8xbf16>
    "tpu.trace_start"() <{level = 10 : i32, message = "mqd,mkd->mqk"}> : () -> ()
    %cst_73 = arith.constant dense<0.000000e+00> : vector<3x8x8xf32>
    %174 = tpu.matmul %169, %171, %cst_73 {dimension_numbers = #tpu.dot_dimension_numbers<[2], [2], [1], [1], [0, 0, 0, 1, 1, 1], [0], [0]>} : vector<3x8x8xbf16>, vector<3x8x8xbf16>, vector<3x8x8xf32> -> vector<3x8x8xf32>
    "tpu.trace_stop"() : () -> ()
    %175 = vector.broadcast %2 : vector<1x1x8xf32> to vector<3x8x8xf32>
    %176 = arith.addf %174, %175 : vector<3x8x8xf32>
    %cst_74 = arith.constant dense<0xFF800000> : vector<3x8xf32>
    %177 = vector.multi_reduction <maximumf>, %176, %cst_74 [2] : vector<3x8x8xf32> to vector<3x8xf32>
    %178 = vector.shape_cast %177 : vector<3x8xf32> to vector<3x8x1xf32>
    %179 = vector.broadcast %178 : vector<3x8x1xf32> to vector<3x8x8xf32>
    %180 = arith.subf %176, %179 : vector<3x8x8xf32>
    %181 = math.exp %180 : vector<3x8x8xf32>
    %cst_75 = arith.constant dense<0.000000e+00> : vector<3x8xf32>
    %182 = vector.multi_reduction <add>, %181, %cst_75 [2] : vector<3x8x8xf32> to vector<3x8xf32>
    %183 = vector.shape_cast %182 : vector<3x8xf32> to vector<3x8x1xf32>
    %184 = tpu.reciprocal %183 {approx = true} : vector<3x8x1xf32> -> vector<3x8x1xf32>
    %185 = vector.broadcast %184 : vector<3x8x1xf32> to vector<3x8x8xf32>
    %186 = arith.mulf %181, %185 : vector<3x8x8xf32>
    %187 = arith.truncf %186 : vector<3x8x8xf32> to vector<3x8x8xbf16>
    "tpu.trace_start"() <{level = 10 : i32, message = "mqk,mkd->mqd"}> : () -> ()
    %cst_76 = arith.constant dense<0.000000e+00> : vector<3x8x8xf32>
    %188 = tpu.matmul %187, %173, %cst_76 {dimension_numbers = #tpu.dot_dimension_numbers<[2], [1], [1], [2], [0, 0, 0, 1, 1, 2], [0], [0]>} : vector<3x8x8xbf16>, vector<3x8x8xbf16>, vector<3x8x8xf32> -> vector<3x8x8xf32>
    "tpu.trace_stop"() : () -> ()
    %189 = vector.extract_strided_slice %167 {offsets = [0, 0, 8], sizes = [3, 8, 8], strides = [1, 1, 1]} : vector<3x8x96xf32> to vector<3x8x8xf32>
    %190 = arith.truncf %189 : vector<3x8x8xf32> to vector<3x8x8xbf16>
    %191 = vector.extract_strided_slice %167 {offsets = [0, 0, 40], sizes = [3, 8, 8], strides = [1, 1, 1]} : vector<3x8x96xf32> to vector<3x8x8xf32>
    %192 = arith.truncf %191 : vector<3x8x8xf32> to vector<3x8x8xbf16>
    %193 = vector.extract_strided_slice %167 {offsets = [0, 0, 72], sizes = [3, 8, 8], strides = [1, 1, 1]} : vector<3x8x96xf32> to vector<3x8x8xf32>
    %194 = arith.truncf %193 : vector<3x8x8xf32> to vector<3x8x8xbf16>
    "tpu.trace_start"() <{level = 10 : i32, message = "mqd,mkd->mqk"}> : () -> ()
    %cst_77 = arith.constant dense<0.000000e+00> : vector<3x8x8xf32>
    %195 = tpu.matmul %190, %192, %cst_77 {dimension_numbers = #tpu.dot_dimension_numbers<[2], [2], [1], [1], [0, 0, 0, 1, 1, 1], [0], [0]>} : vector<3x8x8xbf16>, vector<3x8x8xbf16>, vector<3x8x8xf32> -> vector<3x8x8xf32>
    "tpu.trace_stop"() : () -> ()
    %196 = vector.broadcast %2 : vector<1x1x8xf32> to vector<3x8x8xf32>
    %197 = arith.addf %195, %196 : vector<3x8x8xf32>
    %cst_78 = arith.constant dense<0xFF800000> : vector<3x8xf32>
    %198 = vector.multi_reduction <maximumf>, %197, %cst_78 [2] : vector<3x8x8xf32> to vector<3x8xf32>
    %199 = vector.shape_cast %198 : vector<3x8xf32> to vector<3x8x1xf32>
    %200 = vector.broadcast %199 : vector<3x8x1xf32> to vector<3x8x8xf32>
    %201 = arith.subf %197, %200 : vector<3x8x8xf32>
    %202 = math.exp %201 : vector<3x8x8xf32>
    %cst_79 = arith.constant dense<0.000000e+00> : vector<3x8xf32>
    %203 = vector.multi_reduction <add>, %202, %cst_79 [2] : vector<3x8x8xf32> to vector<3x8xf32>
    %204 = vector.shape_cast %203 : vector<3x8xf32> to vector<3x8x1xf32>
    %205 = tpu.reciprocal %204 {approx = true} : vector<3x8x1xf32> -> vector<3x8x1xf32>
    %206 = vector.broadcast %205 : vector<3x8x1xf32> to vector<3x8x8xf32>
    %207 = arith.mulf %202, %206 : vector<3x8x8xf32>
    %208 = arith.truncf %207 : vector<3x8x8xf32> to vector<3x8x8xbf16>
    "tpu.trace_start"() <{level = 10 : i32, message = "mqk,mkd->mqd"}> : () -> ()
    %cst_80 = arith.constant dense<0.000000e+00> : vector<3x8x8xf32>
    %209 = tpu.matmul %208, %194, %cst_80 {dimension_numbers = #tpu.dot_dimension_numbers<[2], [1], [1], [2], [0, 0, 0, 1, 1, 2], [0], [0]>} : vector<3x8x8xbf16>, vector<3x8x8xbf16>, vector<3x8x8xf32> -> vector<3x8x8xf32>
    "tpu.trace_stop"() : () -> ()
    %210 = vector.extract_strided_slice %167 {offsets = [0, 0, 16], sizes = [3, 8, 8], strides = [1, 1, 1]} : vector<3x8x96xf32> to vector<3x8x8xf32>
    %211 = arith.truncf %210 : vector<3x8x8xf32> to vector<3x8x8xbf16>
    %212 = vector.extract_strided_slice %167 {offsets = [0, 0, 48], sizes = [3, 8, 8], strides = [1, 1, 1]} : vector<3x8x96xf32> to vector<3x8x8xf32>
    %213 = arith.truncf %212 : vector<3x8x8xf32> to vector<3x8x8xbf16>
    %214 = vector.extract_strided_slice %167 {offsets = [0, 0, 80], sizes = [3, 8, 8], strides = [1, 1, 1]} : vector<3x8x96xf32> to vector<3x8x8xf32>
    %215 = arith.truncf %214 : vector<3x8x8xf32> to vector<3x8x8xbf16>
    "tpu.trace_start"() <{level = 10 : i32, message = "mqd,mkd->mqk"}> : () -> ()
    %cst_81 = arith.constant dense<0.000000e+00> : vector<3x8x8xf32>
    %216 = tpu.matmul %211, %213, %cst_81 {dimension_numbers = #tpu.dot_dimension_numbers<[2], [2], [1], [1], [0, 0, 0, 1, 1, 1], [0], [0]>} : vector<3x8x8xbf16>, vector<3x8x8xbf16>, vector<3x8x8xf32> -> vector<3x8x8xf32>
    "tpu.trace_stop"() : () -> ()
    %217 = vector.broadcast %2 : vector<1x1x8xf32> to vector<3x8x8xf32>
    %218 = arith.addf %216, %217 : vector<3x8x8xf32>
    %cst_82 = arith.constant dense<0xFF800000> : vector<3x8xf32>
    %219 = vector.multi_reduction <maximumf>, %218, %cst_82 [2] : vector<3x8x8xf32> to vector<3x8xf32>
    %220 = vector.shape_cast %219 : vector<3x8xf32> to vector<3x8x1xf32>
    %221 = vector.broadcast %220 : vector<3x8x1xf32> to vector<3x8x8xf32>
    %222 = arith.subf %218, %221 : vector<3x8x8xf32>
    %223 = math.exp %222 : vector<3x8x8xf32>
    %cst_83 = arith.constant dense<0.000000e+00> : vector<3x8xf32>
    %224 = vector.multi_reduction <add>, %223, %cst_83 [2] : vector<3x8x8xf32> to vector<3x8xf32>
    %225 = vector.shape_cast %224 : vector<3x8xf32> to vector<3x8x1xf32>
    %226 = tpu.reciprocal %225 {approx = true} : vector<3x8x1xf32> -> vector<3x8x1xf32>
    %227 = vector.broadcast %226 : vector<3x8x1xf32> to vector<3x8x8xf32>
    %228 = arith.mulf %223, %227 : vector<3x8x8xf32>
    %229 = arith.truncf %228 : vector<3x8x8xf32> to vector<3x8x8xbf16>
    "tpu.trace_start"() <{level = 10 : i32, message = "mqk,mkd->mqd"}> : () -> ()
    %cst_84 = arith.constant dense<0.000000e+00> : vector<3x8x8xf32>
    %230 = tpu.matmul %229, %215, %cst_84 {dimension_numbers = #tpu.dot_dimension_numbers<[2], [1], [1], [2], [0, 0, 0, 1, 1, 2], [0], [0]>} : vector<3x8x8xbf16>, vector<3x8x8xbf16>, vector<3x8x8xf32> -> vector<3x8x8xf32>
    "tpu.trace_stop"() : () -> ()
    %231 = vector.extract_strided_slice %167 {offsets = [0, 0, 24], sizes = [3, 8, 8], strides = [1, 1, 1]} : vector<3x8x96xf32> to vector<3x8x8xf32>
    %232 = arith.truncf %231 : vector<3x8x8xf32> to vector<3x8x8xbf16>
    %233 = vector.extract_strided_slice %167 {offsets = [0, 0, 56], sizes = [3, 8, 8], strides = [1, 1, 1]} : vector<3x8x96xf32> to vector<3x8x8xf32>
    %234 = arith.truncf %233 : vector<3x8x8xf32> to vector<3x8x8xbf16>
    %235 = vector.extract_strided_slice %167 {offsets = [0, 0, 88], sizes = [3, 8, 8], strides = [1, 1, 1]} : vector<3x8x96xf32> to vector<3x8x8xf32>
    %236 = arith.truncf %235 : vector<3x8x8xf32> to vector<3x8x8xbf16>
    "tpu.trace_start"() <{level = 10 : i32, message = "mqd,mkd->mqk"}> : () -> ()
    %cst_85 = arith.constant dense<0.000000e+00> : vector<3x8x8xf32>
    %237 = tpu.matmul %232, %234, %cst_85 {dimension_numbers = #tpu.dot_dimension_numbers<[2], [2], [1], [1], [0, 0, 0, 1, 1, 1], [0], [0]>} : vector<3x8x8xbf16>, vector<3x8x8xbf16>, vector<3x8x8xf32> -> vector<3x8x8xf32>
    "tpu.trace_stop"() : () -> ()
    %238 = vector.broadcast %2 : vector<1x1x8xf32> to vector<3x8x8xf32>
    %239 = arith.addf %237, %238 : vector<3x8x8xf32>
    %cst_86 = arith.constant dense<0xFF800000> : vector<3x8xf32>
    %240 = vector.multi_reduction <maximumf>, %239, %cst_86 [2] : vector<3x8x8xf32> to vector<3x8xf32>
    %241 = vector.shape_cast %240 : vector<3x8xf32> to vector<3x8x1xf32>
    %242 = vector.broadcast %241 : vector<3x8x1xf32> to vector<3x8x8xf32>
    %243 = arith.subf %239, %242 : vector<3x8x8xf32>
    %244 = math.exp %243 : vector<3x8x8xf32>
    %cst_87 = arith.constant dense<0.000000e+00> : vector<3x8xf32>
    %245 = vector.multi_reduction <add>, %244, %cst_87 [2] : vector<3x8x8xf32> to vector<3x8xf32>
    %246 = vector.shape_cast %245 : vector<3x8xf32> to vector<3x8x1xf32>
    %247 = tpu.reciprocal %246 {approx = true} : vector<3x8x1xf32> -> vector<3x8x1xf32>
    %248 = vector.broadcast %247 : vector<3x8x1xf32> to vector<3x8x8xf32>
    %249 = arith.mulf %244, %248 : vector<3x8x8xf32>
    %250 = arith.truncf %249 : vector<3x8x8xf32> to vector<3x8x8xbf16>
    "tpu.trace_start"() <{level = 10 : i32, message = "mqk,mkd->mqd"}> : () -> ()
    %cst_88 = arith.constant dense<0.000000e+00> : vector<3x8x8xf32>
    %251 = tpu.matmul %250, %236, %cst_88 {dimension_numbers = #tpu.dot_dimension_numbers<[2], [1], [1], [2], [0, 0, 0, 1, 1, 2], [0], [0]>} : vector<3x8x8xbf16>, vector<3x8x8xbf16>, vector<3x8x8xf32> -> vector<3x8x8xf32>
    "tpu.trace_stop"() : () -> ()
    %252 = tpu.concatenate %188, %209, %230, %251 in 2 : vector<3x8x8xf32>, vector<3x8x8xf32>, vector<3x8x8xf32>, vector<3x8x8xf32> -> vector<3x8x32xf32>
    %253 = arith.truncf %252 : vector<3x8x32xf32> to vector<3x8x32xbf16>
    "tpu.trace_start"() <{level = 10 : i32, message = "msd,mde->mse"}> : () -> ()
    %cst_89 = arith.constant dense<0.000000e+00> : vector<3x8x32xf32>
    %254 = tpu.matmul %253, %4, %cst_89 {dimension_numbers = #tpu.dot_dimension_numbers<[2], [1], [1], [2], [0, 0, 0, 1, 1, 2], [0], [0]>} : vector<3x8x32xbf16>, vector<3x32x32xbf16>, vector<3x8x32xf32> -> vector<3x8x32xf32>
    "tpu.trace_stop"() : () -> ()
    %255 = vector.broadcast %8 : vector<3x1x32xf32> to vector<3x8x32xf32>
    %256 = arith.addf %254, %255 : vector<3x8x32xf32>
    %257 = arith.addf %163, %256 : vector<3x8x32xf32>
    %cst_90 = arith.constant dense<0.000000e+00> : vector<3x8xf32>
    %258 = vector.multi_reduction <add>, %257, %cst_90 [2] : vector<3x8x32xf32> to vector<3x8xf32>
    %259 = vector.shape_cast %258 : vector<3x8xf32> to vector<3x8x1xf32>
    %cst_91 = arith.constant 3.200000e+01 : f32
    %260 = vector.broadcast %cst_91 : f32 to vector<3x8x1xf32>
    %261 = arith.divf %259, %260 : vector<3x8x1xf32>
    %262 = vector.broadcast %261 : vector<3x8x1xf32> to vector<3x8x32xf32>
    %263 = arith.subf %257, %262 : vector<3x8x32xf32>
    %264 = arith.mulf %263, %263 : vector<3x8x32xf32>
    %cst_92 = arith.constant dense<0.000000e+00> : vector<3x8xf32>
    %265 = vector.multi_reduction <add>, %264, %cst_92 [2] : vector<3x8x32xf32> to vector<3x8xf32>
    %266 = vector.shape_cast %265 : vector<3x8xf32> to vector<3x8x1xf32>
    %cst_93 = arith.constant 3.200000e+01 : f32
    %267 = vector.broadcast %cst_93 : f32 to vector<3x8x1xf32>
    %268 = arith.divf %266, %267 : vector<3x8x1xf32>
    %269 = vector.broadcast %261 : vector<3x8x1xf32> to vector<3x8x32xf32>
    %270 = arith.subf %257, %269 : vector<3x8x32xf32>
    %cst_94 = arith.constant 9.99999974E-6 : f32
    %271 = vector.broadcast %cst_94 : f32 to vector<3x8x1xf32>
    %272 = arith.addf %268, %271 : vector<3x8x1xf32>
    %273 = math.rsqrt %272 : vector<3x8x1xf32>
    %274 = vector.broadcast %273 : vector<3x8x1xf32> to vector<3x8x32xf32>
    %275 = arith.mulf %270, %274 : vector<3x8x32xf32>
    %276 = vector.broadcast %11 : vector<3x1x32xf32> to vector<3x8x32xf32>
    %277 = arith.mulf %275, %276 : vector<3x8x32xf32>
    %278 = vector.broadcast %12 : vector<3x1x32xf32> to vector<3x8x32xf32>
    %279 = arith.addf %277, %278 : vector<3x8x32xf32>
    %280 = arith.truncf %279 : vector<3x8x32xf32> to vector<3x8x32xbf16>
    "tpu.trace_start"() <{level = 10 : i32, message = "msd,mdf->msf"}> : () -> ()
    %cst_95 = arith.constant dense<0.000000e+00> : vector<3x8x64xf32>
    %281 = tpu.matmul %280, %5, %cst_95 {dimension_numbers = #tpu.dot_dimension_numbers<[2], [1], [1], [2], [0, 0, 0, 1, 1, 2], [0], [0]>} : vector<3x8x32xbf16>, vector<3x32x64xbf16>, vector<3x8x64xf32> -> vector<3x8x64xf32>
    "tpu.trace_stop"() : () -> ()
    %282 = vector.broadcast %9 : vector<3x1x64xf32> to vector<3x8x64xf32>
    %283 = arith.addf %281, %282 : vector<3x8x64xf32>
    %cst_96 = arith.constant 0.000000e+00 : f32
    %284 = vector.broadcast %cst_96 : f32 to vector<3x8x64xf32>
    %285 = arith.maximumf %283, %284 : vector<3x8x64xf32>
    %286 = arith.truncf %285 : vector<3x8x64xf32> to vector<3x8x64xbf16>
    "tpu.trace_start"() <{level = 10 : i32, message = "msf,mfd->msd"}> : () -> ()
    %cst_97 = arith.constant dense<0.000000e+00> : vector<3x8x32xf32>
    %287 = tpu.matmul %286, %6, %cst_97 {dimension_numbers = #tpu.dot_dimension_numbers<[2], [1], [1], [2], [0, 0, 0, 1, 1, 2], [0], [0]>} : vector<3x8x64xbf16>, vector<3x64x32xbf16>, vector<3x8x32xf32> -> vector<3x8x32xf32>
    "tpu.trace_stop"() : () -> ()
    %288 = vector.broadcast %10 : vector<3x1x32xf32> to vector<3x8x32xf32>
    %289 = arith.addf %287, %288 : vector<3x8x32xf32>
    %290 = arith.addf %279, %289 : vector<3x8x32xf32>
    %cst_98 = arith.constant dense<0.000000e+00> : vector<3x8xf32>
    %291 = vector.multi_reduction <add>, %290, %cst_98 [2] : vector<3x8x32xf32> to vector<3x8xf32>
    %292 = vector.shape_cast %291 : vector<3x8xf32> to vector<3x8x1xf32>
    %cst_99 = arith.constant 3.200000e+01 : f32
    %293 = vector.broadcast %cst_99 : f32 to vector<3x8x1xf32>
    %294 = arith.divf %292, %293 : vector<3x8x1xf32>
    %295 = vector.broadcast %294 : vector<3x8x1xf32> to vector<3x8x32xf32>
    %296 = arith.subf %290, %295 : vector<3x8x32xf32>
    %297 = arith.mulf %296, %296 : vector<3x8x32xf32>
    %cst_100 = arith.constant dense<0.000000e+00> : vector<3x8xf32>
    %298 = vector.multi_reduction <add>, %297, %cst_100 [2] : vector<3x8x32xf32> to vector<3x8xf32>
    %299 = vector.shape_cast %298 : vector<3x8xf32> to vector<3x8x1xf32>
    %cst_101 = arith.constant 3.200000e+01 : f32
    %300 = vector.broadcast %cst_101 : f32 to vector<3x8x1xf32>
    %301 = arith.divf %299, %300 : vector<3x8x1xf32>
    %302 = vector.broadcast %294 : vector<3x8x1xf32> to vector<3x8x32xf32>
    %303 = arith.subf %290, %302 : vector<3x8x32xf32>
    %cst_102 = arith.constant 9.99999974E-6 : f32
    %304 = vector.broadcast %cst_102 : f32 to vector<3x8x1xf32>
    %305 = arith.addf %301, %304 : vector<3x8x1xf32>
    %306 = math.rsqrt %305 : vector<3x8x1xf32>
    %307 = vector.broadcast %306 : vector<3x8x1xf32> to vector<3x8x32xf32>
    %308 = arith.mulf %303, %307 : vector<3x8x32xf32>
    %309 = vector.broadcast %13 : vector<3x1x32xf32> to vector<3x8x32xf32>
    %310 = arith.mulf %308, %309 : vector<3x8x32xf32>
    %311 = vector.broadcast %14 : vector<3x1x32xf32> to vector<3x8x32xf32>
    %312 = arith.addf %310, %311 : vector<3x8x32xf32>
    %c0_103 = arith.constant 0 : index
    %c0_104 = arith.constant 0 : index
    %c0_105 = arith.constant 0 : index
    %c0_106 = arith.constant 0 : index
    %313 = vector.load %arg15[%c0_103, %c0_104, %c0_105, %c0_106] : memref<1x3x8x32xf32, #tpu.memory_space<vmem>>, vector<1x3x8x32xf32>
    %314 = vector.shape_cast %313 : vector<1x3x8x32xf32> to vector<3x8x32xf32>
    %315 = vector.shape_cast %312 : vector<3x8x32xf32> to vector<1x3x8x32xf32>
    tpu.vector_store %arg15[%c0_103, %c0_104, %c0_105, %c0_106], %315 {strides = array<i32>} : memref<1x3x8x32xf32, #tpu.memory_space<vmem>>, vector<1x3x8x32xf32>,
    return
  }
  func.func @transform_0(%arg0: i32) -> (i32, i32, i32, i32) {
    %c0_i32 = arith.constant 0 : i32
    %c0_i32_0 = arith.constant 0 : i32
    %c0_i32_1 = arith.constant 0 : i32
    %c0_i32_2 = arith.constant 0 : i32
    return %arg0, %c0_i32, %c0_i32_0, %c0_i32_1 : i32, i32, i32, i32
  }
  func.func @transform_1(%arg0: i32) -> (i32, i32, i32) {
    %c0_i32 = arith.constant 0 : i32
    %c0_i32_0 = arith.constant 0 : i32
    %c0_i32_1 = arith.constant 0 : i32
    return %arg0, %c0_i32, %c0_i32_0 : i32, i32, i32
  }
  func.func @transform_2(%arg0: i32) -> (i32, i32, i32) {
    %c0_i32 = arith.constant 0 : i32
    %c0_i32_0 = arith.constant 0 : i32
    %c0_i32_1 = arith.constant 0 : i32
    %c0_i32_2 = arith.constant 0 : i32
    return %c0_i32, %c0_i32_0, %c0_i32_1 : i32, i32, i32
  }
  func.func @transform_3(%arg0: i32) -> (i32, i32, i32) {
    %c0_i32 = arith.constant 0 : i32
    %c0_i32_0 = arith.constant 0 : i32
    %c0_i32_1 = arith.constant 0 : i32
    %c0_i32_2 = arith.constant 0 : i32
    return %c0_i32, %c0_i32_0, %c0_i32_1 : i32, i32, i32
  }
  func.func @transform_4(%arg0: i32) -> (i32, i32, i32) {
    %c0_i32 = arith.constant 0 : i32
    %c0_i32_0 = arith.constant 0 : i32
    %c0_i32_1 = arith.constant 0 : i32
    %c0_i32_2 = arith.constant 0 : i32
    return %c0_i32, %c0_i32_0, %c0_i32_1 : i32, i32, i32
  }
  func.func @transform_5(%arg0: i32) -> (i32, i32, i32) {
    %c0_i32 = arith.constant 0 : i32
    %c0_i32_0 = arith.constant 0 : i32
    %c0_i32_1 = arith.constant 0 : i32
    %c0_i32_2 = arith.constant 0 : i32
    return %c0_i32, %c0_i32_0, %c0_i32_1 : i32, i32, i32
  }
  func.func @transform_6(%arg0: i32) -> (i32, i32, i32) {
    %c0_i32 = arith.constant 0 : i32
    %c0_i32_0 = arith.constant 0 : i32
    %c0_i32_1 = arith.constant 0 : i32
    %c0_i32_2 = arith.constant 0 : i32
    return %c0_i32, %c0_i32_0, %c0_i32_1 : i32, i32, i32
  }
  func.func @transform_7(%arg0: i32) -> (i32, i32, i32) {
    %c0_i32 = arith.constant 0 : i32
    %c0_i32_0 = arith.constant 0 : i32
    %c0_i32_1 = arith.constant 0 : i32
    %c0_i32_2 = arith.constant 0 : i32
    return %c0_i32, %c0_i32_0, %c0_i32_1 : i32, i32, i32
  }
  func.func @transform_8(%arg0: i32) -> (i32, i32, i32) {
    %c0_i32 = arith.constant 0 : i32
    %c0_i32_0 = arith.constant 0 : i32
    %c0_i32_1 = arith.constant 0 : i32
    %c0_i32_2 = arith.constant 0 : i32
    return %c0_i32, %c0_i32_0, %c0_i32_1 : i32, i32, i32
  }
  func.func @transform_9(%arg0: i32) -> (i32, i32, i32) {
    %c0_i32 = arith.constant 0 : i32
    %c0_i32_0 = arith.constant 0 : i32
    %c0_i32_1 = arith.constant 0 : i32
    %c0_i32_2 = arith.constant 0 : i32
    return %c0_i32, %c0_i32_0, %c0_i32_1 : i32, i32, i32
  }
  func.func @transform_10(%arg0: i32) -> (i32, i32, i32) {
    %c0_i32 = arith.constant 0 : i32
    %c0_i32_0 = arith.constant 0 : i32
    %c0_i32_1 = arith.constant 0 : i32
    %c0_i32_2 = arith.constant 0 : i32
    return %c0_i32, %c0_i32_0, %c0_i32_1 : i32, i32, i32
  }
  func.func @transform_11(%arg0: i32) -> (i32, i32, i32) {
    %c0_i32 = arith.constant 0 : i32
    %c0_i32_0 = arith.constant 0 : i32
    %c0_i32_1 = arith.constant 0 : i32
    %c0_i32_2 = arith.constant 0 : i32
    return %c0_i32, %c0_i32_0, %c0_i32_1 : i32, i32, i32
  }
  func.func @transform_12(%arg0: i32) -> (i32, i32, i32) {
    %c0_i32 = arith.constant 0 : i32
    %c0_i32_0 = arith.constant 0 : i32
    %c0_i32_1 = arith.constant 0 : i32
    %c0_i32_2 = arith.constant 0 : i32
    return %c0_i32, %c0_i32_0, %c0_i32_1 : i32, i32, i32
  }
  func.func @transform_13(%arg0: i32) -> (i32, i32, i32) {
    %c0_i32 = arith.constant 0 : i32
    %c0_i32_0 = arith.constant 0 : i32
    %c0_i32_1 = arith.constant 0 : i32
    %c0_i32_2 = arith.constant 0 : i32
    return %c0_i32, %c0_i32_0, %c0_i32_1 : i32, i32, i32
  }
  func.func @transform_14(%arg0: i32) -> (i32, i32, i32, i32) {
    %c0_i32 = arith.constant 0 : i32
    %c0_i32_0 = arith.constant 0 : i32
    %c0_i32_1 = arith.constant 0 : i32
    %c0_i32_2 = arith.constant 0 : i32
    return %arg0, %c0_i32, %c0_i32_0, %c0_i32_1 : i32, i32, i32, i32
  }
}

</mosaic_0001>

<bundles_post_ra>
// kernel: acme_forward.1
= control target key start
LH: loop header
LB: loop body
LE: loop exit
PB: predicated region body
PF: predicated region fallthrough
CT: control target
= control target key end

     0   :  { %s6126_s29 = smov 0   ;;  %s7247_s0 = inlined_call_operand.vmem [shape: f32[2,3,8,32], index: 0, kind: input, shape index: {}]   ;;  %s7248_s1 = inlined_call_operand.vmem [shape: f32[2,1,8], index: 1, kind: input, shape index: {}]   ;;  %s7249_s2 = inlined_call_operand.vmem [shape: bf16[3,32,96], index: 2, kind: input, shape index: {}]   ;;  %s7250_s3 = inlined_call_operand.vmem [shape: f32[3,1,96], index: 3, kind: input, shape index: {}]   ;;  %s7251_s4 = inlined_call_operand.vmem [shape: bf16[3,32,32], index: 4, kind: input, shape index: {}]   ;;  %s7252_s5 = inlined_call_operand.vmem [shape: f32[3,1,32], index: 5, kind: input, shape index: {}]   ;;  %s7253_s6 = inlined_call_operand.vmem [shape: f32[3,1,32], index: 6, kind: input, shape index: {}]   ;;  %s7254_s7 = inlined_call_operand.vmem [shape: f32[3,1,32], index: 7, kind: input, shape index: {}]   ;;  %s7255_s8 = inlined_call_operand.vmem [shape: bf16[3,32,64], index: 8, kind: input, shape index: {}]   ;;  %s7256_s9 = inlined_call_operand.vmem [shape: f32[3,1,64], index: 9, kind: input, shape index: {}]   ;;  %s7257_s10 = inlined_call_operand.vmem [shape: bf16[3,64,32], index: 10, kind: input, shape index: {}]   ;;  %s7258_s11 = inlined_call_operand.vmem [shape: f32[3,1,32], index: 11, kind: input, shape index: {}]   ;;  %s7259_s12 = inlined_call_operand.vmem [shape: f32[3,1,32], index: 12, kind: input, shape index: {}]   ;;  %s7260_s13 = inlined_call_operand.vmem [shape: f32[3,1,32], index: 13, kind: input, shape index: {}]   ;;  %s7261_s14 = inlined_call_operand.vmem [shape: f32[2,3,8,32], index: 14, kind: output, shape index: {}]  }
   0x1 LB: > { %s4959_s30 = sadd.s32 4294967295, %s6033_s29   ;;  %p4963_p0 = scmp.ge.s32.totalorder %s6033_s29, 1  ;;  %s6033_s29 = sphi %s6126_s29, %s24_s29  }
   0x2   : > { %p420_p1 = scmp.lt.s32.totalorder %s6033_s29, 3 }
   0x4   : > { %p421_p2 = pnand %p4963_p0, %p420_p1 }
   0x5   : > { %v5819_v0 = vld [vmem:[%s7249_s2] sm:$0xff] (!%p421_p2)   ;;  %v6035_v1 = vmov (!%p421_p2), 0.0   ;;  %v5820_v2 = vld [vmem:[%s7249_s2 + $0x8] sm:$0xff] (!%p421_p2)   ;;  %vm6036_vm0 = vmmov (!%p421_p2), 0   ;;  %p469_p3 = scmp.lt.s32.totalorder (!%p421_p2), %s4959_s30, 1  ;;  %vm604_vm1 = vcmask (!%p421_p2), 261120  }
   0x6   : > { %424 = sbr.rel (%p421_p2) target bundleno = 8344 (0x2098), region = 76  ;;  %5275 = vmatprep.subr.bf16.mxu1 (!%p421_p2), %v6035_v1  ;;  %5291 = vmatprep.subr.bf16.mxu0 (!%p421_p2), %v6035_v1  ;;  %v5822_v3 = vld [vmem:[%s7249_s2 + $0x20] sm:$0xff] (!%p421_p2)   ;;  %v5824_v4 = vld [vmem:[%s7249_s2 + $0x28] sm:$0xff] (!%p421_p2)   ;;  %v5821_v6 = vld [vmem:[%s7249_s2 + $0x10] sm:$0xff] (!%p421_p2)   ;;  %s6037_s22 = smov (!%p421_p2), 96   ;;  %vm770_vm2 = vcmask (!%p421_p2), 64512  }
   0x7   : > { %5276 = vmatpush3.bf16.msra.mxu1 (!%p421_p2), %v5819_v0  ;;  %5279 = vmatprep.mubr.msk.bf16.mxu1 (!%p421_p2), %vm6036_vm0, %v6035_v1  ;;  %v5823_v10 = vld [vmem:[%s7249_s2 + $0x18] sm:$0xff] (!%p421_p2)   ;;  %v4966_v13 = vld [vmem:[%s7250_s3] ss:$0 sm:$0xff] (!%p421_p2)  ;;  %v4968_v15 = vld [vmem:[%s7250_s3 + $0x2] ss:$0 sm:$0xff] (!%p421_p2)  ;;  %s6038_s15 = smov (!%p421_p2), 64  }
   0x8   : > { %5277 = vmatprep.subr.bf16.mxu1 (!%p421_p2), %v6035_v1  ;;  %5295 = vmatprep.mubr.msk.bf16.mxu0 (!%p421_p2), %vm6036_vm0, %v6035_v1  ;;  %v4967_v27 = vld [vmem:[%s7250_s3 + $0x1] ss:$0 sm:$0xff] (!%p421_p2)  ;;  %vm956_vm3 = vcmask (!%p421_p2), 1043456   ;;  %s7277_s16 = smov (!%p421_p2), 120   ;;  %s6040_s17 = smov (!%p421_p2), 88   ;;  %vm2125_vm4 = vcmask (!%p421_p2), 130048  }
   0x9   : > { %5292 = vmatpush3.bf16.msra.mxu0 (!%p421_p2), %v5822_v3  ;;  %s7275_s18 = smov (!%p421_p2), 56   ;;  %s7273_s19 = smov (!%p421_p2), 80   ;;  %vm2129_vm5 = vcmask (!%p421_p2), 195584   ;;  %vm2638_vm6 = vcmask (!%p421_p2), 523264  }
   0xa   : > { %5293 = vmatprep.subr.bf16.mxu0 (!%p421_p2), %v6035_v1  ;;  %s7271_s20 = smov (!%p421_p2), 112   ;;  %s7267_s23 = smov (!%p421_p2), 48  }
   0xb   : > { %5278 = vmatpush3.bf16.msra.mxu1 (!%p421_p2), %v5820_v2  ;;  %s7263_s24 = smov (!%p421_p2), 104   ;;  %s7269_s25 = smov (!%p421_p2), 72  }
   0xc   : > { %5283 = vmatprep.subr.bf16.mxu1 (!%p421_p2), %v6035_v1  ;;  %s7265_s27 = smov (!%p421_p2), 40  }
   0xd   : > { %s7292_s30 = smov (!%p469_p3, %s4959_s30), 1  ;;  %5294 = vmatpush3.bf16.msra.mxu0 %v5824_v4 }
   0xe   : > { %s7262_s21 = smul.u32 24, %s7292_s30  ;;  %5305 = vmatprep.subr.bf16.mxu0 %v6035_v1  ;;  %s6229_s28 = scalar_lea.vmem %s7248_s1, %s7292_s30 }
   0xf   : > { %v6232_v40 = vld [vmem:[%s6229_s28] ss:$0 sm:$0xff] }
  0x10   : > { %s6163_s26 = scalar_lea.vmem %s7247_s0, %s7262_s21  ;;  %s6048_s21 = smov 8  }
  0x11   : > { %v483_v5 = vld [vmem:[%s6163_s26] sm:$0xff]  ;;  %v485_v7 = vld [vmem:[%s6163_s26 + $0x10] sm:$0xff]  ;;  %v484_v11 = vld [vmem:[%s6163_s26 + $0x8] sm:$0xff] }
  0x12   : > { %v571_v8 = vpack.c.bf16 %v483_v5, %v483_v5  ;;  %v573_v9 = vpack.c.bf16 %v485_v7, %v485_v7  ;;  %v572_v12 = vpack.c.bf16 %v484_v11, %v484_v11 }
  0x14   : > { %5280 = vmatmul.mubr.msk.bf16.vlgmr.msra.gmra.mrb[0].mxu1 %vm604_vm1, %v571_v8  ;;  %5296 = vmatmul.mubr.msk.bf16.vlgmr.msra.gmra.mrb[0].mxu0 %vm604_vm1, %v573_v9 }
  0x15   : > { %5284 = vmatpush3.bf16.msra.mxu1 %v5821_v6  ;;  %5287 = vmatprep.mubr.msk.bf16.mxu1 %vm6036_vm0, %v6035_v1 }
  0x16   : > { %5285 = vmatprep.subr.bf16.mxu1 %v6035_v1  ;;  %5307 = vmatprep.mubr.msk.bf16.mxu0 %vm6036_vm0, %v6035_v1 }
  0x19   : > { %5286 = vmatpush3.bf16.msra.mxu1 %v5823_v10 }
  0x1a   : > { %5299 = vmatprep.subr.bf16.mxu1 %v6035_v1 }
  0x1c   : > { %5288 = vmatmul.mubr.msk.bf16.vlgmr.msra.gmra.mrb[4].mxu1 %vm604_vm1, %v572_v12 }
  0x1d   : > { %5301 = vmatprep.mubr.msk.bf16.mxu1 %vm6036_vm0, %v6035_v1 }
  0xe7   : > { %v642_v14 = vpop.f32.mrb[0].mxu1  ;;  %v752_v19 = vpop.f32.mrb[0].mxu0 }
  0xe8   : > { %v643_v16 = vadd.f32 %v4966_v13, %v642_v14  ;;  %v5281_v17 = vpop.f32.mrb[1].mxu1  ;;  %v753_v22 = vadd.f32 %v4968_v15, %v752_v19  ;;  %v5297_v23 = vpop.f32.mrb[1].mxu0 }
  0xe9   : > { %v645_v18 = vpop.f32.mrb[2].mxu1  ;;  %v755_v24 = vpop.f32.mrb[2].mxu0 }
  0xea   : > { %v6192_v20 = vpack.c.bf16 %v643_v16, %v643_v16  ;;  %v5282_v21 = vpop.f32.mrb[3].mxu1  ;;  %v6196_v25 = vpack.c.bf16 %v753_v22, %v753_v22  ;;  %v5298_v26 = vpop.f32.mrb[3].mxu0 }
  0xec   : > { %768 = vrot.lane.b32.xlu0 %v6192_v20, %s6037_s22  ;;  %867 = vrot.lane.b32.xlu1 %v6196_v25, %s6037_s22 }
  0xef   : > { %v697_v28 = vpop.f32.mrb[4].mxu1 }
  0xf0   : > { %v698_v29 = vadd.f32 %v4967_v27, %v697_v28  ;;  %v5289_v30 = vpop.f32.mrb[5].mxu1 }
  0xf1   : > { %v700_v31 = vpop.f32.mrb[6].mxu1 }
  0xf2   : > { %v6203_v32 = vpack.c.bf16 %v698_v29, %v698_v29  ;;  %v5290_v33 = vpop.f32.mrb[7].mxu1 }
  0xf4   : > { %818 = vrot.lane.b32.xlu0 %v6203_v32, %s6037_s22 }
 0x15e   : > { %v769_v34 = vpop.permute.xlu0 %768  ;;  %v868_v36 = vpop.permute.xlu1 %867 }
 0x15f   : > { %v775_v35 = vsel %vm770_vm2, %v769_v34, 0  ;;  %v873_v37 = vsel %vm770_vm2, %v868_v36, 0 }
 0x160   : > { %5300 = vmatpush3.bf16.xpose.msra.mxu1 %v775_v35 }
 0x161   : > { %5311 = vmatprep.subr.bf16.mxu1 %v6035_v1 }
 0x166   : > { %v819_v38 = vpop.permute.xlu0 %818 }
 0x167   : > { %v824_v39 = vsel %vm770_vm2, %v819_v38, 0  ;;  %5302 = vmatmul.mubr.msk.bf16.vlgmr.msra.gmra.mrb[8].mxu1 %vm770_vm2, %v6192_v20 }
 0x168   : > { %5306 = vmatpush3.bf16.xpose.msra.mxu0 %v824_v39  ;;  %5312 = vmatpush3.bf16.xpose.msra.mxu1 %v873_v37 }
 0x169   : > { %5313 = vmatprep.mubr.msk.bf16.mxu1 %vm6036_vm0, %v6035_v1  ;;  %5317 = vmatprep.subr.bf16.mxu0 %v6035_v1 }
 0x16a   : > { %5323 = vmatprep.subr.bf16.mxu1 %v6035_v1 }
 0x16f   : > { %5308 = vmatmul.mubr.msk.bf16.vlgmr.msra.gmra.mrb[4].mxu0 %vm770_vm2, %v6203_v32  ;;  %5314 = vmatmul.mubr.msk.bf16.vlgmr.msra.gmra.mrb[12].mxu1 %vm770_vm2, %v6196_v25 }
 0x170   : > { %5319 = vmatprep.mubr.msk.bf16.mxu0 %vm6036_vm0, %v6035_v1  ;;  %5325 = vmatprep.mubr.msk.bf16.mxu1 %vm6036_vm0, %v6035_v1 }
 0x23a   : > { %v811_v41 = vpop.f32.mrb[8].mxu1 }
 0x23b   : > { %v812_v42 = vadd.f32 %v6232_v40, %v811_v41  ;;  %v5303_v43 = vpop.f32.mrb[9].mxu1 }
 0x23c   : > { %v814_v44 = vpop.f32.mrb[10].mxu1 }
 0x23d   : > { %v5304_v45 = vpop.f32.mrb[11].mxu1  ;;  %v915_v46 = vsel %vm770_vm2, %v812_v42, -inf }
 0x23e   : > { %916 = vmax.xlane.f32.xlu1 %v915_v46 }
 0x242   : > { %v860_v47 = vpop.f32.mrb[4].mxu0  ;;  %v909_v48 = vpop.f32.mrb[12].mxu1 }
 0x243   : > { %v861_v49 = vadd.f32 %v6232_v40, %v860_v47  ;;  %v5309_v50 = vpop.f32.mrb[5].mxu0  ;;  %v5315_v51 = vpop.f32.mrb[13].mxu1  ;;  %v910_v54 = vadd.f32 %v6232_v40, %v909_v48 }
 0x244   : > { %v863_v52 = vpop.f32.mrb[6].mxu0  ;;  %v912_v53 = vpop.f32.mrb[14].mxu1 }
 0x245   : > { %v5310_v55 = vpop.f32.mrb[7].mxu0  ;;  %v5316_v56 = vpop.f32.mrb[15].mxu1  ;;  %v918_v57 = vsel %vm770_vm2, %v861_v49, -inf  ;;  %v921_v58 = vsel %vm770_vm2, %v910_v54, -inf }
 0x246   : > { %919 = vmax.xlane.f32.xlu0 %v918_v57 }
 0x24a   : > { %922 = vmax.xlane.f32.xlu0 %v921_v58 }
 0x24f   : > { %951 = vrot.lane.b32.xlu1 %v6192_v20, %s6038_s15 }
 0x253   : > { %1048 = vrot.lane.b32.xlu1 %v6196_v25, %s6038_s15 }
 0x260   : > { %1000 = vrot.lane.b32.xlu0 %v6203_v32, %s6038_s15 }
 0x2cb   : > { %v917_v59 = vpop.xlane.xlu1 %916 }
 0x2cc   : > { %v924_v60 = vsub.f32 %v812_v42, %v917_v59 }
 0x2ce   : > { %v927_v61 = vmul.f32 1.442695, %v924_v60 }
 0x2cf   : > { %v952_v62 = vpop.permute.xlu1 %951 }
 0x2d0   : > { %5849 = vpow2.f32 %v927_v61  ;;  %v958_v63 = vsel %vm956_vm3, %v952_v62, 0 }
 0x2d1   : > { %5318 = vmatpush3.bf16.msra.mxu0 %v958_v63 }
 0x2d2   : > { %5329 = vmatprep.subr.bf16.mxu0 %v6035_v1 }
 0x2d3   : > { %v920_v0 = vpop.xlane.xlu0 %919  ;;  %v1049_v15 = vpop.permute.xlu1 %1048 }
 0x2d4   : > { %v925_v2 = vsub.f32 %v861_v49, %v920_v0  ;;  %v1054_v22 = vsel %vm956_vm3, %v1049_v15, 0 }
 0x2d6   : > { %v929_v3 = vmul.f32 1.442695, %v925_v2 }
 0x2d7   : > { %v923_v4 = vpop.xlane.xlu0 %922 }
 0x2d8   : > { %5851 = vpow2.f32 %v929_v3  ;;  %v926_v11 = vsub.f32 %v910_v54, %v923_v4 }
 0x2da   : > { %v5850_v5 = vpop.eup %5849  ;;  %v931_v12 = vmul.f32 1.442695, %v926_v11 }
 0x2db   : > { %v1001_v6 = vpop.permute.xlu0 %1000  ;;  %v933_v7 = vsel %vm770_vm2, %v5850_v5, 0.0 }
 0x2dc   : > { %v1006_v8 = vsel %vm956_vm3, %v1001_v6, 0  ;;  %934 = vadd.xlane.f32.xlu1 %v933_v7  ;;  %5853 = vpow2.f32 %v931_v12 }
 0x2dd   : > { %5324 = vmatpush3.bf16.msra.mxu1 %v1006_v8 }
 0x2de   : > { %5335 = vmatprep.subr.bf16.mxu1 %v6035_v1 }
 0x2e2   : > { %v5852_v9 = vpop.eup %5851 }
 0x2e3   : > { %v936_v10 = vsel %vm770_vm2, %v5852_v9, 0.0 }
 0x2e4   : > { %937 = vadd.xlane.f32.xlu0 %v936_v10 }
 0x2e6   : > { %v5854_v13 = vpop.eup %5853 }
 0x2e7   : > { %v939_v14 = vsel %vm770_vm2, %v5854_v13, 0.0 }
 0x2ed   : > { %1096 = vrot.lane.b32.xlu1 %v6192_v20, %s7277_s16 }
 0x2fa   : > { %1098 = vrot.lane.b32.xlu0 %v6192_v20, %s6040_s17 }
 0x2fe   : > { %1148 = vrot.lane.b32.xlu0 %v6203_v32, %s6040_s17 }
 0x302   : > { %1146 = vrot.lane.b32.xlu0 %v6203_v32, %s7277_s16 }
 0x311   : > { %940 = vadd.xlane.f32.xlu1 %v939_v14 }
 0x322   : > { %1198 = vrot.lane.b32.xlu1 %v6196_v25, %s6040_s17 }
 0x326   : > { %1196 = vrot.lane.b32.xlu1 %v6196_v25, %s7277_s16  ;;  %s7285_s16 = smov 72  }
 0x369   : > { %v935_v16 = vpop.xlane.xlu1 %934 }
 0x36a   : > { %5855 = vrcp.f32 %v935_v16 }
 0x36d   : > { %v1097_v29 = vpop.permute.xlu1 %1096 }
 0x371   : > { %v938_v17 = vpop.xlane.xlu0 %937 }
 0x372   : > { %5857 = vrcp.f32 %v938_v17 }
 0x374   : > { %v5856_v18 = vpop.eup %5855 }
 0x375   : > { %v945_v19 = vmul.f32 %v5856_v18, %v5850_v5  ;;  %v1099_v26 = vpop.permute.xlu0 %1098 }
 0x376   : > { %v1104_v28 = vsel %vm770_vm2, %v1099_v26, 0 }
 0x377   : > { %v948_v21 = vpack.c.bf16 %v945_v19, %v945_v19 }
 0x379   : > { %5320 = vmatmul.mubr.msk.bf16.vlgmr.msra.gmra.mrb[8].mxu0 %vm770_vm2, %v948_v21  ;;  %v1149_v37 = vpop.permute.xlu0 %1148 }
 0x37a   : > { %5330 = vmatpush3.bf16.msra.mxu0 %v1054_v22  ;;  %5331 = vmatprep.mubr.msk.bf16.mxu0 %vm6036_vm0, %v6035_v1  ;;  %v1154_v39 = vsel %vm770_vm2, %v1149_v37, 0 }
 0x37b   : > { %5341 = vmatprep.subr.bf16.mxu0 %v6035_v1 }
 0x37c   : > { %v5858_v23 = vpop.eup %5857 }
 0x37d   : > { %v946_v24 = vmul.f32 %v5858_v23, %v5852_v9  ;;  %v1147_v41 = vpop.permute.xlu0 %1146 }
 0x37f   : > { %v949_v27 = vpack.c.bf16 %v946_v24, %v946_v24 }
 0x381   : > { %5326 = vmatmul.mubr.msk.bf16.vlgmr.msra.gmra.mrb[16].mxu1 %vm770_vm2, %v949_v27 }
 0x382   : > { %5336 = vmatpush3.bf16.xpose.msra.mxu1 %v1104_v28  ;;  %5337 = vmatprep.mubr.msk.bf16.mxu1 %vm6036_vm0, %v6035_v1 }
 0x383   : > { %5347 = vmatprep.subr.bf16.mxu1 %v6035_v1 }
 0x389   : > { %5338 = vmatmul.mubr.msk.bf16.vlgmr.msra.gmra.mrb[20].mxu1 %vm770_vm2, %v1097_v29 }
 0x38a   : > { %5349 = vmatprep.mubr.msk.bf16.mxu1 %vm6036_vm0, %v6035_v1 }
 0x39e   : > { %v941_v30 = vpop.xlane.xlu1 %940 }
 0x39f   : > { %5859 = vrcp.f32 %v941_v30 }
 0x3a2   : > { %v1199_v31 = vpop.permute.xlu1 %1198 }
 0x3a3   : > { %v1204_v33 = vsel %vm770_vm2, %v1199_v31, 0 }
 0x3a4   : > { %5348 = vmatpush3.bf16.xpose.msra.mxu1 %v1204_v33 }
 0x3a5   : > { %5359 = vmatprep.subr.bf16.mxu1 %v6035_v1 }
 0x3a6   : > { %v1197_v35 = vpop.permute.xlu1 %1196 }
 0x3a9   : > { %v5860_v34 = vpop.eup %5859 }
 0x3aa   : > { %v947_v36 = vmul.f32 %v5860_v34, %v5854_v13 }
 0x3ab   : > { %5350 = vmatmul.mubr.msk.bf16.vlgmr.msra.gmra.mrb[24].mxu1 %vm770_vm2, %v1197_v35 }
 0x3ac   : > { %v950_v38 = vpack.c.bf16 %v947_v36, %v947_v36  ;;  %5361 = vmatprep.mubr.msk.bf16.mxu1 %vm6036_vm0, %v6035_v1 }
 0x3ae   : > { %5332 = vmatmul.mubr.msk.bf16.vlgmr.msra.gmra.mrb[12].mxu0 %vm770_vm2, %v950_v38 }
 0x3af   : > { %5342 = vmatpush3.bf16.xpose.msra.mxu0 %v1154_v39  ;;  %5343 = vmatprep.mubr.msk.bf16.mxu0 %vm6036_vm0, %v6035_v1 }
 0x3b0   : > { %5353 = vmatprep.subr.bf16.mxu0 %v6035_v1 }
 0x3b6   : > { %5344 = vmatmul.mubr.msk.bf16.vlgmr.msra.gmra.mrb[16].mxu0 %vm770_vm2, %v1147_v41 }
 0x3b7   : > { %5355 = vmatprep.mubr.msk.bf16.mxu0 %vm6036_vm0, %v6035_v1 }
 0x44c   : > { %v6291_v42 = vpop.f32.mrb[8].mxu0 }
 0x44d   : > { %v5321_v43 = vpop.f32.mrb[9].mxu0 }
 0x44e   : > { %v997_v44 = vpop.f32.mrb[10].mxu0 }
 0x44f   : > { %v5322_v45 = vpop.f32.mrb[11].mxu0 }
 0x454   : > { %v6293_v46 = vpop.f32.mrb[16].mxu1 }
 0x455   : > { %v5327_v47 = vpop.f32.mrb[17].mxu1 }
 0x456   : > { %v1045_v48 = vpop.f32.mrb[18].mxu1 }
 0x457   : > { %v5328_v49 = vpop.f32.mrb[19].mxu1 }
 0x45c   : > { %v1140_v50 = vpop.f32.mrb[20].mxu1 }
 0x45d   : > { %v1141_v51 = vadd.f32 %v6232_v40, %v1140_v50  ;;  %v5339_v52 = vpop.f32.mrb[21].mxu1 }
 0x45e   : > { %v1143_v53 = vpop.f32.mrb[22].mxu1 }
 0x45f   : > { %v5340_v54 = vpop.f32.mrb[23].mxu1  ;;  %v1246_v55 = vsel %vm770_vm2, %v1141_v51, -inf }
 0x460   : > { %1247 = vmax.xlane.f32.xlu0 %v1246_v55 }
 0x47e   : > { %v1240_v56 = vpop.f32.mrb[24].mxu1 }
 0x47f   : > { %v1241_v57 = vadd.f32 %v6232_v40, %v1240_v56  ;;  %v5351_v58 = vpop.f32.mrb[25].mxu1 }
 0x480   : > { %v1243_v59 = vpop.f32.mrb[26].mxu1 }
 0x481   : > { %v6298_v60 = vpop.f32.mrb[12].mxu0  ;;  %v5352_v61 = vpop.f32.mrb[27].mxu1  ;;  %v1252_v62 = vsel %vm770_vm2, %v1241_v57, -inf }
 0x482   : > { %v5333_v63 = vpop.f32.mrb[13].mxu0  ;;  %1253 = vmax.xlane.f32.xlu0 %v1252_v62 }
 0x483   : > { %v1093_v0 = vpop.f32.mrb[14].mxu0 }
 0x484   : > { %v5334_v2 = vpop.f32.mrb[15].mxu0 }
 0x489   : > { %v1190_v3 = vpop.f32.mrb[16].mxu0 }
 0x48a   : > { %v1191_v4 = vadd.f32 %v6232_v40, %v1190_v3  ;;  %v5345_v5 = vpop.f32.mrb[17].mxu0 }
 0x48b   : > { %v1193_v6 = vpop.f32.mrb[18].mxu0 }
 0x48c   : > { %v5346_v7 = vpop.f32.mrb[19].mxu0  ;;  %v1249_v8 = vsel %vm770_vm2, %v1191_v4, -inf }
 0x48d   : > { %1250 = vmax.xlane.f32.xlu1 %v1249_v8 }
 0x49e   : > { %1282 = vrot.lane.b32.xlu1 %v6192_v20, %s7275_s18 }
 0x4a2   : > { %1378 = vrot.lane.b32.xlu1 %v6196_v25, %s7275_s18 }
 0x4a6   : > { %1428 = vrot.lane.b32.xlu1 %v6192_v20, %s7273_s19 }
 0x4ed   : > { %v1248_v9 = vpop.xlane.xlu0 %1247 }
 0x4ee   : > { %v1255_v10 = vsub.f32 %v1141_v51, %v1248_v9 }
 0x4f0   : > { %v1258_v11 = vmul.f32 1.442695, %v1255_v10 }
 0x4f2   : > { %5861 = vpow2.f32 %v1258_v11 }
 0x4fc   : > { %v5862_v12 = vpop.eup %5861 }
 0x4fd   : > { %v1264_v13 = vsel %vm770_vm2, %v5862_v12, 0.0 }
 0x4fe   : > { %1265 = vadd.xlane.f32.xlu0 %v1264_v13 }
 0x50f   : > { %v1254_v14 = vpop.xlane.xlu0 %1253 }
 0x510   : > { %v1257_v17 = vsub.f32 %v1241_v57, %v1254_v14 }
 0x512   : > { %v1262_v22 = vmul.f32 1.442695, %v1257_v17 }
 0x514   : > { %1330 = vrot.lane.b32.xlu0 %v6203_v32, %s7275_s18  ;;  %s7286_s18 = smov 48  }
 0x51a   : > { %v1251_v15 = vpop.xlane.xlu1 %1250 }
 0x51b   : > { %v1256_v16 = vsub.f32 %v1191_v4, %v1251_v15 }
 0x51d   : > { %v1260_v18 = vmul.f32 1.442695, %v1256_v16 }
 0x51e   : > { %v1283_v19 = vpop.permute.xlu1 %1282 }
 0x51f   : > { %5863 = vpow2.f32 %v1260_v18  ;;  %v1288_v21 = vsel %vm956_vm3, %v1283_v19, 0 }
 0x520   : > { %5354 = vmatpush3.bf16.msra.mxu0 %v1288_v21  ;;  %5865 = vpow2.f32 %v1262_v22 }
 0x521   : > { %5365 = vmatprep.subr.bf16.mxu0 %v6035_v1 }
 0x522   : > { %v1379_v34 = vpop.permute.xlu1 %1378 }
 0x523   : > { %v1384_v36 = vsel %vm956_vm3, %v1379_v34, 0 }
 0x526   : > { %v1429_v37 = vpop.permute.xlu1 %1428 }
 0x527   : > { %v1434_v47 = vsel %vm770_vm2, %v1429_v37, 0 }
 0x529   : > { %v5864_v23 = vpop.eup %5863 }
 0x52a   : > { %v1267_v24 = vsel %vm770_vm2, %v5864_v23, 0.0  ;;  %v5866_v26 = vpop.eup %5865 }
 0x52b   : > { %1268 = vadd.xlane.f32.xlu1 %v1267_v24  ;;  %v1270_v27 = vsel %vm770_vm2, %v5866_v26, 0.0 }
 0x533   : > { %1271 = vadd.xlane.f32.xlu0 %v1270_v27 }
 0x53c   : > { %1426 = vrot.lane.b32.xlu1 %v6192_v20, %s7271_s20 }
 0x540   : > { %1528 = vrot.lane.b32.xlu1 %v6196_v25, %s7273_s19 }
 0x549   : > { %1478 = vrot.lane.b32.xlu0 %v6203_v32, %s7273_s19  ;;  %s7288_s19 = smov 40  }
 0x54d   : > { %1476 = vrot.lane.b32.xlu0 %v6203_v32, %s7271_s20 }
 0x551   : > { %1526 = vrot.lane.b32.xlu0 %v6196_v25, %s7271_s20  ;;  %s7279_s20 = smov 24  }
 0x58b   : > { %v1266_v28 = vpop.xlane.xlu0 %1265 }
 0x58c   : > { %5867 = vrcp.f32 %v1266_v28 }
 0x58f   : > { %v1331_v29 = vpop.permute.xlu0 %1330 }
 0x590   : > { %v1336_v30 = vsel %vm956_vm3, %v1331_v29, 0 }
 0x591   : > { %5360 = vmatpush3.bf16.msra.mxu1 %v1336_v30 }
 0x592   : > { %5371 = vmatprep.subr.bf16.mxu1 %v6035_v1 }
 0x596   : > { %v5868_v31 = vpop.eup %5867 }
 0x597   : > { %v1276_v33 = vmul.f32 %v5868_v31, %v5862_v12 }
 0x599   : > { %v1279_v35 = vpack.c.bf16 %v1276_v33, %v1276_v33 }
 0x59b   : > { %5356 = vmatmul.mubr.msk.bf16.vlgmr.msra.gmra.mrb[20].mxu0 %vm770_vm2, %v1279_v35 }
 0x59c   : > { %5366 = vmatpush3.bf16.msra.mxu0 %v1384_v36  ;;  %5367 = vmatprep.mubr.msk.bf16.mxu0 %vm6036_vm0, %v6035_v1 }
 0x59d   : > { %5377 = vmatprep.subr.bf16.mxu0 %v6035_v1 }
 0x5b8   : > { %v1269_v38 = vpop.xlane.xlu1 %1268 }
 0x5b9   : > { %5869 = vrcp.f32 %v1269_v38 }
 0x5bc   : > { %v1427_v45 = vpop.permute.xlu1 %1426 }
 0x5c0   : > { %v1272_v39 = vpop.xlane.xlu0 %1271  ;;  %v1529_v51 = vpop.permute.xlu1 %1528 }
 0x5c1   : > { %5871 = vrcp.f32 %v1272_v39  ;;  %v1534_v53 = vsel %vm770_vm2, %v1529_v51, 0 }
 0x5c3   : > { %v5870_v41 = vpop.eup %5869 }
 0x5c4   : > { %v1277_v43 = vmul.f32 %v5870_v41, %v5864_v23  ;;  %v1479_v49 = vpop.permute.xlu0 %1478 }
 0x5c5   : > { %v1484_v54 = vsel %vm770_vm2, %v1479_v49, 0 }
 0x5c6   : > { %v1280_v44 = vpack.c.bf16 %v1277_v43, %v1277_v43 }
 0x5c8   : > { %5362 = vmatmul.mubr.msk.bf16.vlgmr.msra.gmra.mrb[28].mxu1 %vm770_vm2, %v1280_v44  ;;  %v1477_v55 = vpop.permute.xlu0 %1476 }
 0x5c9   : > { %5372 = vmatpush3.bf16.xpose.msra.mxu1 %v1434_v47  ;;  %5373 = vmatprep.mubr.msk.bf16.mxu1 %vm6036_vm0, %v6035_v1 }
 0x5ca   : > { %5383 = vmatprep.subr.bf16.mxu1 %v6035_v1 }
 0x5cb   : > { %v5872_v48 = vpop.eup %5871 }
 0x5cc   : > { %v1278_v50 = vmul.f32 %v5872_v48, %v5866_v26  ;;  %v1527_v56 = vpop.permute.xlu0 %1526 }
 0x5ce   : > { %v1281_v52 = vpack.c.bf16 %v1278_v50, %v1278_v50 }
 0x5d0   : > { %5368 = vmatmul.mubr.msk.bf16.vlgmr.msra.gmra.mrb[24].mxu0 %vm770_vm2, %v1281_v52  ;;  %5374 = vmatmul.mubr.msk.bf16.vlgmr.msra.gmra.mrb[32].mxu1 %vm770_vm2, %v1427_v45 }
 0x5d1   : > { %5378 = vmatpush3.bf16.xpose.msra.mxu0 %v1484_v54  ;;  %5384 = vmatpush3.bf16.xpose.msra.mxu1 %v1534_v53 }
 0x5d2   : > { %5379 = vmatprep.mubr.msk.bf16.mxu0 %vm6036_vm0, %v6035_v1  ;;  %5385 = vmatprep.mubr.msk.bf16.mxu1 %vm6036_vm0, %v6035_v1 }
 0x5d3   : > { %5389 = vmatprep.subr.bf16.mxu0 %v6035_v1  ;;  %5395 = vmatprep.subr.bf16.mxu1 %v6035_v1 }
 0x5d8   : > { %5380 = vmatmul.mubr.msk.bf16.vlgmr.msra.gmra.mrb[28].mxu0 %vm770_vm2, %v1477_v55  ;;  %5386 = vmatmul.mubr.msk.bf16.vlgmr.msra.gmra.mrb[36].mxu1 %vm770_vm2, %v1527_v56 }
 0x5d9   : > { %5391 = vmatprep.mubr.msk.bf16.mxu0 %vm6036_vm0, %v6035_v1  ;;  %5397 = vmatprep.mubr.msk.bf16.mxu1 %vm6036_vm0, %v6035_v1 }
 0x66e   : > { %v6354_v57 = vpop.f32.mrb[20].mxu0 }
 0x66f   : > { %v5357_v58 = vpop.f32.mrb[21].mxu0 }
 0x670   : > { %v1327_v59 = vpop.f32.mrb[22].mxu0 }
 0x671   : > { %v5358_v61 = vpop.f32.mrb[23].mxu0 }
 0x69b   : > { %v6356_v62 = vpop.f32.mrb[28].mxu1 }
 0x69c   : > { %v5363_v63 = vpop.f32.mrb[29].mxu1 }
 0x69d   : > { %v1375_v0 = vpop.f32.mrb[30].mxu1 }
 0x69e   : > { %v5364_v2 = vpop.f32.mrb[31].mxu1 }
 0x6a3   : > { %v6358_v3 = vpop.f32.mrb[24].mxu0  ;;  %v1470_v4 = vpop.f32.mrb[32].mxu1 }
 0x6a4   : > { %v1471_v5 = vadd.f32 %v6232_v40, %v1470_v4  ;;  %v5369_v6 = vpop.f32.mrb[25].mxu0  ;;  %v5375_v7 = vpop.f32.mrb[33].mxu1 }
 0x6a5   : > { %v1423_v8 = vpop.f32.mrb[26].mxu0  ;;  %v1473_v9 = vpop.f32.mrb[34].mxu1 }
 0x6a6   : > { %v5370_v10 = vpop.f32.mrb[27].mxu0  ;;  %v5376_v11 = vpop.f32.mrb[35].mxu1  ;;  %v1576_v12 = vsel %vm770_vm2, %v1471_v5, -inf }
 0x6a7   : > { %1577 = vmax.xlane.f32.xlu1 %v1576_v12 }
 0x6ab   : > { %v1520_v13 = vpop.f32.mrb[28].mxu0  ;;  %v1570_v14 = vpop.f32.mrb[36].mxu1 }
 0x6ac   : > { %v1521_v15 = vadd.f32 %v6232_v40, %v1520_v13  ;;  %v5381_v16 = vpop.f32.mrb[29].mxu0  ;;  %v5387_v17 = vpop.f32.mrb[37].mxu1  ;;  %v1571_v21 = vadd.f32 %v6232_v40, %v1570_v14 }
 0x6ad   : > { %v1523_v18 = vpop.f32.mrb[30].mxu0  ;;  %v1573_v19 = vpop.f32.mrb[38].mxu1 }
 0x6ae   : > { %v5382_v22 = vpop.f32.mrb[31].mxu0  ;;  %v5388_v23 = vpop.f32.mrb[39].mxu1  ;;  %v1579_v24 = vsel %vm770_vm2, %v1521_v15, -inf  ;;  %v1582_v26 = vsel %vm770_vm2, %v1571_v21, -inf }
 0x6af   : > { %1580 = vmax.xlane.f32.xlu0 %v1579_v24 }
 0x6b3   : > { %1583 = vmax.xlane.f32.xlu0 %v1582_v26 }
 0x6b8   : > { %1612 = vrot.lane.b32.xlu1 %v6192_v20, %s7267_s23 }
 0x6bc   : > { %1708 = vrot.lane.b32.xlu1 %v6196_v25, %s7267_s23 }
 0x6c9   : > { %1660 = vrot.lane.b32.xlu0 %v6203_v32, %s7267_s23 }
 0x734   : > { %v1578_v27 = vpop.xlane.xlu1 %1577 }
 0x735   : > { %v1585_v28 = vsub.f32 %v1471_v5, %v1578_v27 }
 0x737   : > { %v1588_v29 = vmul.f32 1.442695, %v1585_v28 }
 0x738   : > { %v1613_v30 = vpop.permute.xlu1 %1612 }
 0x739   : > { %5873 = vpow2.f32 %v1588_v29  ;;  %v1618_v31 = vsel %vm956_vm3, %v1613_v30, 0 }
 0x73a   : > { %5390 = vmatpush3.bf16.msra.mxu0 %v1618_v31 }
 0x73b   : > { %5401 = vmatprep.subr.bf16.mxu0 %v6035_v1 }
 0x73c   : > { %v1581_v33 = vpop.xlane.xlu0 %1580  ;;  %v1709_v50 = vpop.permute.xlu1 %1708 }
 0x73d   : > { %v1586_v34 = vsub.f32 %v1521_v15, %v1581_v33  ;;  %v1714_v58 = vsel %vm956_vm3, %v1709_v50, 0 }
 0x73f   : > { %v1590_v35 = vmul.f32 1.442695, %v1586_v34 }
 0x740   : > { %v1584_v36 = vpop.xlane.xlu0 %1583 }
 0x741   : > { %5875 = vpow2.f32 %v1590_v35  ;;  %v1587_v37 = vsub.f32 %v1571_v21, %v1584_v36 }
 0x743   : > { %v5874_v38 = vpop.eup %5873  ;;  %v1592_v39 = vmul.f32 1.442695, %v1587_v37 }
 0x744   : > { %v1661_v41 = vpop.permute.xlu0 %1660  ;;  %v1594_v43 = vsel %vm770_vm2, %v5874_v38, 0.0 }
 0x745   : > { %5877 = vpow2.f32 %v1592_v39  ;;  %v1666_v44 = vsel %vm956_vm3, %v1661_v41, 0  ;;  %1595 = vadd.xlane.f32.xlu1 %v1594_v43 }
 0x746   : > { %5396 = vmatpush3.bf16.msra.mxu1 %v1666_v44 }
 0x747   : > { %5407 = vmatprep.subr.bf16.mxu1 %v6035_v1 }
 0x74b   : > { %v5876_v45 = vpop.eup %5875 }
 0x74c   : > { %v1597_v47 = vsel %vm770_vm2, %v5876_v45, 0.0 }
 0x74d   : > { %1598 = vadd.xlane.f32.xlu0 %v1597_v47 }
 0x74f   : > { %v5878_v48 = vpop.eup %5877 }
 0x750   : > { %v1600_v49 = vsel %vm770_vm2, %v5878_v48, 0.0 }
 0x751   : > { %1601 = vadd.xlane.f32.xlu1 %v1600_v49 }
 0x762   : > { %1756 = vrot.lane.b32.xlu1 %v6192_v20, %s7263_s24 }
 0x763   : > { %1758 = vrot.lane.b32.xlu0 %v6192_v20, %s7269_s25 }
 0x766   : > { %1806 = vrot.lane.b32.xlu1 %v6203_v32, %s7263_s24 }
 0x767   : > { %1808 = vrot.lane.b32.xlu0 %v6203_v32, %s7269_s25 }
 0x76a   : > { %1856 = vrot.lane.b32.xlu1 %v6196_v25, %s7263_s24  ;;  %s6049_s24 = smov 16  }
 0x76b   : > { %1858 = vrot.lane.b32.xlu0 %v6196_v25, %s7269_s25 }
 0x7d2   : > { %v1596_v51 = vpop.xlane.xlu1 %1595 }
 0x7d3   : > { %5879 = vrcp.f32 %v1596_v51 }
 0x7da   : > { %v1599_v52 = vpop.xlane.xlu0 %1598 }
 0x7db   : > { %5881 = vrcp.f32 %v1599_v52 }
 0x7dd   : > { %v5880_v53 = vpop.eup %5879 }
 0x7de   : > { %v1602_v54 = vpop.xlane.xlu1 %1601  ;;  %v1606_v55 = vmul.f32 %v5880_v53, %v5874_v38  ;;  %v1759_v59 = vpop.permute.xlu0 %1758 }
 0x7df   : > { %5883 = vrcp.f32 %v1602_v54  ;;  %v1764_v5 = vsel %vm770_vm2, %v1759_v59, 0 }
 0x7e0   : > { %v1609_v56 = vpack.c.bf16 %v1606_v55, %v1606_v55 }
 0x7e2   : > { %5392 = vmatmul.mubr.msk.bf16.vlgmr.msra.gmra.mrb[32].mxu0 %vm770_vm2, %v1609_v56  ;;  %v1809_v4 = vpop.permute.xlu0 %1808  ;;  %v1757_v8 = vpop.permute.xlu1 %1756 }
 0x7e3   : > { %5402 = vmatpush3.bf16.msra.mxu0 %v1714_v58  ;;  %5403 = vmatprep.mubr.msk.bf16.mxu0 %vm6036_vm0, %v6035_v1  ;;  %v1814_v9 = vsel %vm770_vm2, %v1809_v4, 0 }
 0x7e4   : > { %5413 = vmatprep.subr.bf16.mxu0 %v6035_v1 }
 0x7e5   : > { %v5882_v61 = vpop.eup %5881 }
 0x7e6   : > { %v1607_v63 = vmul.f32 %v5882_v61, %v5876_v45  ;;  %v1859_v10 = vpop.permute.xlu0 %1858  ;;  %v1807_v12 = vpop.permute.xlu1 %1806 }
 0x7e7   : > { %v1864_v11 = vsel %vm770_vm2, %v1859_v10, 0 }
 0x7e8   : > { %v1610_v0 = vpack.c.bf16 %v1607_v63, %v1607_v63 }
 0x7e9   : > { %v5884_v2 = vpop.eup %5883 }
 0x7ea   : > { %5398 = vmatmul.mubr.msk.bf16.vlgmr.msra.gmra.mrb[40].mxu1 %vm770_vm2, %v1610_v0  ;;  %v1608_v6 = vmul.f32 %v5884_v2, %v5878_v48  ;;  %v1857_v13 = vpop.permute.xlu1 %1856 }
 0x7eb   : > { %5408 = vmatpush3.bf16.xpose.msra.mxu1 %v1764_v5  ;;  %5409 = vmatprep.mubr.msk.bf16.mxu1 %vm6036_vm0, %v6035_v1 }
 0x7ec   : > { %v1611_v7 = vpack.c.bf16 %v1608_v6, %v1608_v6  ;;  %5419 = vmatprep.subr.bf16.mxu1 %v6035_v1 }
 0x7ee   : > { %5404 = vmatmul.mubr.msk.bf16.vlgmr.msra.gmra.mrb[36].mxu0 %vm770_vm2, %v1611_v7 }
 0x7ef   : > { %5414 = vmatpush3.bf16.xpose.msra.mxu0 %v1814_v9  ;;  %5415 = vmatprep.mubr.msk.bf16.mxu0 %vm6036_vm0, %v6035_v1 }
 0x7f0   : > { %5425 = vmatprep.subr.bf16.mxu0 %v6035_v1 }
 0x7f2   : > { %5410 = vmatmul.mubr.msk.bf16.vlgmr.msra.gmra.mrb[44].mxu1 %vm770_vm2, %v1757_v8 }
 0x7f3   : > { %5420 = vmatpush3.bf16.xpose.msra.mxu1 %v1864_v11  ;;  %5421 = vmatprep.mubr.msk.bf16.mxu1 %vm6036_vm0, %v6035_v1 }
 0x7f4   : > { %5431 = vmatprep.subr.bf16.mxu1 %v6035_v1 }
 0x7f6   : > { %5416 = vmatmul.mubr.msk.bf16.vlgmr.msra.gmra.mrb[40].mxu0 %vm770_vm2, %v1807_v12 }
 0x7f7   : > { %5427 = vmatprep.mubr.msk.bf16.mxu0 %vm6036_vm0, %v6035_v1 }
 0x7fa   : > { %5422 = vmatmul.mubr.msk.bf16.vlgmr.msra.gmra.mrb[48].mxu1 %vm770_vm2, %v1857_v13 }
 0x7fb   : > { %5433 = vmatprep.mubr.msk.bf16.mxu1 %vm6036_vm0, %v6035_v1 }
 0x8b5   : > { %v1654_v14 = vpop.f32.mrb[32].mxu0 }
 0x8b6   : > { %v5393_v15 = vpop.f32.mrb[33].mxu0 }
 0x8b7   : > { %v1657_v16 = vpop.f32.mrb[34].mxu0 }
 0x8b8   : > { %v5394_v17 = vpop.f32.mrb[35].mxu0 }
 0x8bd   : > { %v6417_v18 = vpop.f32.mrb[40].mxu1 }
 0x8be   : > { %v5399_v19 = vpop.f32.mrb[41].mxu1 }
 0x8bf   : > { %v1705_v21 = vpop.f32.mrb[42].mxu1  ;;  %v5825_v19 = vld [vmem:[%s7251_s4] sm:$0xff]  }
 0x8c0   : > { %v5400_v22 = vpop.f32.mrb[43].mxu1  ;;  %v5826_v21 = vld [vmem:[%s7251_s4 + $0x8] sm:$0xff]  }
 0x8c1   : > { %v6419_v23 = vpop.f32.mrb[36].mxu0  ;;  %v5827_v22 = vld [vmem:[%s7251_s4 + $0x10] sm:$0xff]  }
 0x8c2   : > { %v5405_v24 = vpop.f32.mrb[37].mxu0 }
 0x8c3   : > { %v1753_v26 = vpop.f32.mrb[38].mxu0  ;;  %v5828_v24 = vld [vmem:[%s7251_s4 + $0x18] sm:$0xff]  }
 0x8c4   : > { %v5406_v27 = vpop.f32.mrb[39].mxu0 }
 0x8c5   : > { %v1800_v28 = vpop.f32.mrb[44].mxu1 }
 0x8c6   : > { %v1801_v29 = vadd.f32 %v6232_v40, %v1800_v28  ;;  %v5411_v30 = vpop.f32.mrb[45].mxu1 }
 0x8c7   : > { %v1803_v31 = vpop.f32.mrb[46].mxu1 }
 0x8c8   : > { %v5412_v33 = vpop.f32.mrb[47].mxu1  ;;  %v1906_v34 = vsel %vm770_vm2, %v1801_v29, -inf }
 0x8c9   : > { %v1850_v35 = vpop.f32.mrb[40].mxu0  ;;  %1907 = vmax.xlane.f32.xlu0 %v1906_v34 }
 0x8ca   : > { %v1851_v36 = vadd.f32 %v6232_v40, %v1850_v35  ;;  %v5417_v37 = vpop.f32.mrb[41].mxu0 }
 0x8cb   : > { %v1853_v38 = vpop.f32.mrb[42].mxu0 }
 0x8cc   : > { %v5418_v39 = vpop.f32.mrb[43].mxu0  ;;  %v1909_v41 = vsel %vm770_vm2, %v1851_v36, -inf }
 0x8cd   : > { %1910 = vmax.xlane.f32.xlu1 %v1909_v41  ;;  %v1900_v43 = vpop.f32.mrb[48].mxu1 }
 0x8ce   : > { %v1901_v44 = vadd.f32 %v6232_v40, %v1900_v43  ;;  %v5423_v45 = vpop.f32.mrb[49].mxu1 }
 0x8cf   : > { %v1903_v47 = vpop.f32.mrb[50].mxu1 }
 0x8d0   : > { %v5424_v48 = vpop.f32.mrb[51].mxu1  ;;  %v1912_v49 = vsel %vm770_vm2, %v1901_v44, -inf }
 0x8d1   : > { %1913 = vmax.xlane.f32.xlu0 %v1912_v49 }
 0x956   : > { %v1908_v50 = vpop.xlane.xlu0 %1907 }
 0x957   : > { %v1915_v51 = vsub.f32 %v1801_v29, %v1908_v50 }
 0x959   : > { %v1918_v52 = vmul.f32 1.442695, %v1915_v51  ;;  %v5830_v51 = vld [vmem:[%s7251_s4 + $0x28] sm:$0xff]  }
 0x95a   : > { %v1911_v53 = vpop.xlane.xlu1 %1910 }
 0x95b   : > { %5885 = vpow2.f32 %v1918_v52  ;;  %v1916_v54 = vsub.f32 %v1851_v36, %v1911_v53 }
 0x95d   : > { %v1920_v55 = vmul.f32 1.442695, %v1916_v54 }
 0x95e   : > { %v1914_v56 = vpop.xlane.xlu0 %1913 }
 0x95f   : > { %5887 = vpow2.f32 %v1920_v55  ;;  %v1917_v58 = vsub.f32 %v1901_v44, %v1914_v56 }
 0x961   : > { %v1922_v59 = vmul.f32 1.442695, %v1917_v58 }
 0x963   : > { %5889 = vpow2.f32 %v1922_v59 }
 0x965   : > { %v5886_v61 = vpop.eup %5885 }
 0x966   : > { %v1924_v40 = vsel %vm770_vm2, %v5886_v61, 0.0 }
 0x967   : > { %1925 = vadd.xlane.f32.xlu0 %v1924_v40 }
 0x969   : > { %v5888_v63 = vpop.eup %5887 }
 0x96a   : > { %v1927_v0 = vsel %vm770_vm2, %v5888_v63, 0.0 }
 0x96b   : > { %1928 = vadd.xlane.f32.xlu1 %v1927_v0 }
 0x96d   : > { %v5890_v2 = vpop.eup %5889 }
 0x96e   : > { %v1930_v4 = vsel %vm770_vm2, %v5890_v2, 0.0 }
 0x96f   : > { %1931 = vadd.xlane.f32.xlu0 %v1930_v4 }
 0x97c   : > { %1942 = vrot.lane.b32.xlu1 %v6192_v20, %s7265_s27 }
 0x980   : > { %2038 = vrot.lane.b32.xlu1 %v6196_v25, %s7265_s27 }
 0x984   : > { %2089 = vrot.lane.b32.xlu1 %v6354_v57, %s6048_s21 }
 0x985   : > { %1990 = vrot.lane.b32.xlu0 %v6203_v32, %s7265_s27 }
 0x989   : > { %2101 = vrot.lane.b32.xlu0 %v1654_v14, %s6049_s24 }
 0x98d   : > { %2091 = vrot.lane.b32.xlu0 %v6356_v62, %s6048_s21 }
 0x9f4   : > { %v1926_v5 = vpop.xlane.xlu0 %1925 }
 0x9f5   : > { %5891 = vrcp.f32 %v1926_v5  ;;  %v5004_v5 = vld [vmem:[%s7252_s5 + $0x1] ss:$0 sm:$0xff] }
 0x9f8   : > { %v1929_v6 = vpop.xlane.xlu1 %1928 }
 0x9f9   : > { %5893 = vrcp.f32 %v1929_v6  ;;  %v5969_v6 = vld [vmem:[%s6163_s26] sm:$0xff] }
 0x9fc   : > { %v1943_v20 = vpop.permute.xlu1 %1942  ;;  %v1932_v7 = vpop.xlane.xlu0 %1931 }
 0x9fd   : > { %v1948_v25 = vsel %vm956_vm3, %v1943_v20, 0  ;;  %5895 = vrcp.f32 %v1932_v7 }
 0x9fe   : > { %5426 = vmatpush3.bf16.msra.mxu0 %v1948_v25 }
 0x9ff   : > { %v5892_v57 = vpop.eup %5891  ;;  %5437 = vmatprep.subr.bf16.mxu0 %v6035_v1 }
 0xa00   : > { %v1991_v32 = vpop.permute.xlu0 %1990  ;;  %v1936_v8 = vmul.f32 %v5892_v57, %v5886_v61  ;;  %v2039_v9 = vpop.permute.xlu1 %2038 }
 0xa01   : > { %v1996_v10 = vsel %vm956_vm3, %v1991_v32, 0  ;;  %v2044_v12 = vsel %vm956_vm3, %v2039_v9, 0 }
 0xa02   : > { %5432 = vmatpush3.bf16.msra.mxu1 %v1996_v10  ;;  %v1939_v62 = vpack.c.bf16 %v1936_v8, %v1936_v8  ;;  %v5970_v10 = vld [vmem:[%s6163_s26 + $0x8] sm:$0xff] }
 0xa03   : > { %v5894_v11 = vpop.eup %5893  ;;  %5443 = vmatprep.subr.bf16.mxu1 %v6035_v1 }
 0xa04   : > { %5428 = vmatmul.mubr.msk.bf16.vlgmr.msra.gmra.mrb[44].mxu0 %vm770_vm2, %v1939_v62  ;;  %v1937_v13 = vmul.f32 %v5894_v11, %v5888_v63  ;;  %v2090_v39 = vpop.permute.xlu1 %2089  ;;  %v2102_v41 = vpop.permute.xlu0 %2101 }
 0xa05   : > { %5438 = vmatpush3.bf16.msra.mxu0 %v2044_v12  ;;  %5439 = vmatprep.mubr.msk.bf16.mxu0 %vm6036_vm0, %v6035_v1  ;;  %v5005_v12 = vld [vmem:[%s7252_s5 + $0x2] ss:$0 sm:$0xff] }
 0xa06   : > { %v1940_v14 = vpack.c.bf16 %v1937_v13, %v1937_v13  ;;  %5451 = vmatprep.subr.bf16.mxu0 %v6035_v1 }
 0xa07   : > { %v5896_v15 = vpop.eup %5895 }
 0xa08   : > { %5434 = vmatmul.mubr.msk.bf16.vlgmr.msra.gmra.mrb[52].mxu1 %vm770_vm2, %v1940_v14  ;;  %v1938_v16 = vmul.f32 %v5896_v15, %v5890_v2  ;;  %v2092_v44 = vpop.permute.xlu0 %2091 }
 0xa09   : > { %5447 = vmatprep.mubr.msk.bf16.mxu1 %vm6036_vm0, %v6035_v1  ;;  %5444 = vmatpush3.bf16.msra.mxu1 %v5825_v19  ;;  %v2123_v48 = vsel %vm770_vm2, %v6293_v46, %v2092_v44  ;;  %v5971_v19 = vld [vmem:[%s6163_s26 + $0x10] sm:$0xff] }
 0xa0a   : > { %v1941_v17 = vpack.c.bf16 %v1938_v16, %v1938_v16  ;;  %5445 = vmatprep.subr.bf16.mxu1 %v6035_v1  ;;  %v5833_v44 = vld [vmem:[%s7255_s8 + $0x10] sm:$0xff]  }
 0xa0c   : > { %5440 = vmatmul.mubr.msk.bf16.vlgmr.msra.gmra.mrb[48].mxu0 %vm770_vm2, %v1941_v17 }
 0xa0d   : > { %5455 = vmatprep.mubr.msk.bf16.mxu0 %vm6036_vm0, %v6035_v1  ;;  %5446 = vmatpush3.bf16.msra.mxu1 %v5826_v21 }
 0xa0e   : > { %5452 = vmatpush3.bf16.msra.mxu0 %v5827_v22  ;;  %5459 = vmatprep.subr.bf16.mxu1 %v6035_v1 }
 0xa0f   : > { %5453 = vmatprep.subr.bf16.mxu0 %v6035_v1 }
 0xa12   : > { %5454 = vmatpush3.bf16.msra.mxu0 %v5828_v24 }
 0xa13   : > { %5467 = vmatprep.subr.bf16.mxu0 %v6035_v1 }
 0xad7   : > { %v1984_v26 = vpop.f32.mrb[44].mxu0 }
 0xad8   : > { %2113 = vrot.lane.b32.xlu1 %v1984_v26, %s7279_s20  ;;  %v5429_v27 = vpop.f32.mrb[45].mxu0 }
 0xad9   : > { %v1987_v28 = vpop.f32.mrb[46].mxu0 }
 0xada   : > { %v5430_v29 = vpop.f32.mrb[47].mxu0 }
 0xadb   : > { %v2032_v30 = vpop.f32.mrb[52].mxu1 }
 0xadc   : > { %2103 = vrot.lane.b32.xlu1 %v6417_v18, %s6049_s24  ;;  %2115 = vrot.lane.b32.xlu0 %v2032_v30, %s7279_s20  ;;  %v5435_v31 = vpop.f32.mrb[53].mxu1  ;;  %v2122_v18 = vsel %vm770_vm2, %v6291_v42, %v2090_v39 }
 0xadd   : > { %v2035_v33 = vpop.f32.mrb[54].mxu1  ;;  %v2126_v43 = vsel %vm2125_vm4, %v2122_v18, %v2102_v41  ;;  %v5831_v18 = vld [vmem:[%s7255_s8] sm:$0xff]  }
 0xade   : > { %v5436_v34 = vpop.f32.mrb[55].mxu1 }
 0xadf   : > { %v2080_v35 = vpop.f32.mrb[48].mxu0 }
 0xae0   : > { %2093 = vrot.lane.b32.xlu1 %v6358_v3, %s6048_s21  ;;  %v5441_v36 = vpop.f32.mrb[49].mxu0  ;;  %2105 = vrot.lane.b32.xlu0 %v6419_v23, %s6049_s24  ;;  %v5829_v23 = vld [vmem:[%s7251_s4 + $0x20] sm:$0xff]  }
 0xae1   : > { %v2083_v37 = vpop.f32.mrb[50].mxu0 }
 0xae2   : > { %v5442_v38 = vpop.f32.mrb[51].mxu0 }
 0xae4   : > { %2117 = vrot.lane.b32.xlu1 %v2080_v35, %s7279_s20  ;;  %s7287_s20 = smov 104  }
 0xb4a   : > { %v2114_v45 = vpop.permute.xlu1 %2113 }
 0xb4b   : > { %v2130_v3 = vsel %vm2129_vm5, %v2126_v43, %v2114_v45  ;;  %v5832_v43 = vld [vmem:[%s7255_s8 + $0x8] sm:$0xff]   ;;  %v5834_v45 = vld [vmem:[%s7255_s8 + $0x18] sm:$0xff]  }
 0xb4c   : > { %v2133_v47 = vpack.c.bf16 %v2130_v3, %v2130_v3 }
 0xb4e   : > { %v2104_v49 = vpop.permute.xlu1 %2103  ;;  %5448 = vmatmul.mubr.msk.bf16.vlgmr.msra.gmra.mrb[56].mxu1 %vm604_vm1, %v2133_v47  ;;  %v2116_v42 = vpop.permute.xlu0 %2115 }
 0xb4f   : > { %v2127_v50 = vsel %vm2125_vm4, %v2123_v48, %v2104_v49  ;;  %5460 = vmatpush3.bf16.msra.mxu1 %v5829_v23  ;;  %5463 = vmatprep.mubr.msk.bf16.mxu1 %vm6036_vm0, %v6035_v1 }
 0xb50   : > { %v2131_v52 = vsel %vm2129_vm5, %v2127_v50, %v2116_v42  ;;  %5461 = vmatprep.subr.bf16.mxu1 %v6035_v1 }
 0xb51   : > { %v2134_v53 = vpack.c.bf16 %v2131_v52, %v2131_v52 }
 0xb52   : > { %v2094_v46 = vpop.permute.xlu1 %2093  ;;  %v2106_v55 = vpop.permute.xlu0 %2105 }
 0xb53   : > { %v2124_v54 = vsel %vm770_vm2, %v6298_v60, %v2094_v46  ;;  %5456 = vmatmul.mubr.msk.bf16.vlgmr.msra.gmra.mrb[52].mxu0 %vm604_vm1, %v2134_v53  ;;  %5462 = vmatpush3.bf16.msra.mxu1 %v5830_v51  ;;  %v5003_v60 = vld [vmem:[%s7252_s5] ss:$0 sm:$0xff] }
 0xb54   : > { %5475 = vmatprep.subr.bf16.mxu1 %v6035_v1  ;;  %5471 = vmatprep.mubr.msk.bf16.mxu0 %vm6036_vm0, %v6035_v1  ;;  %v2128_v56 = vsel %vm2125_vm4, %v2124_v54, %v2106_v55  ;;  %v5015_v53 = vld [vmem:[%s7253_s6] ss:$0 sm:$0xff] }
 0xb55   : > { %5468 = vmatpush3.bf16.msra.mxu0 %v5831_v18  ;;  %v5018_v55 = vld [vmem:[%s7254_s7] ss:$0 sm:$0xff] }
 0xb56   : > { %v2118_v58 = vpop.permute.xlu1 %2117  ;;  %5469 = vmatprep.subr.bf16.mxu0 %v6035_v1 }
 0xb57   : > { %v2132_v59 = vsel %vm2129_vm5, %v2128_v56, %v2118_v58 }
 0xb58   : > { %v2135_v61 = vpack.c.bf16 %v2132_v59, %v2132_v59  ;;  %v5016_v59 = vld [vmem:[%s7253_s6 + $0x1] ss:$0 sm:$0xff] }
 0xb59   : > { %5470 = vmatpush3.bf16.msra.mxu0 %v5832_v43  ;;  %v5847_v43 = vld [vmem:[%s7257_s10 + $0x50] sm:$0xff]  }
 0xb5a   : > { %5464 = vmatmul.mubr.msk.bf16.vlgmr.msra.gmra.mrb[60].mxu1 %vm604_vm1, %v2135_v61  ;;  %5483 = vmatprep.subr.bf16.mxu0 %v6035_v1 }
 0xb5b   : > { %5479 = vmatprep.mubr.msk.bf16.mxu1 %vm6036_vm0, %v6035_v1  ;;  %5476 = vmatpush3.bf16.msra.mxu1 %v5833_v44 }
 0xb5c   : > { %5477 = vmatprep.subr.bf16.mxu1 %v6035_v1 }
 0xb5f   : > { %5478 = vmatpush3.bf16.msra.mxu1 %v5834_v45 }
 0xb60   : > { %5491 = vmatprep.subr.bf16.mxu1 %v6035_v1 }
 0xc21   : > { %v2203_v40 = vpop.f32.mrb[56].mxu1 }
 0xc22   : > { %v2204_v63 = vadd.f32 %v5003_v60, %v2203_v40  ;;  %v5449_v0 = vpop.f32.mrb[57].mxu1  ;;  %v5835_v40 = vld [vmem:[%s7255_s8 + $0x20] sm:$0xff]  }
 0xc23   : > { %v2206_v2 = vpop.f32.mrb[58].mxu1  ;;  %v5019_v0 = vld [vmem:[%s7254_s7 + $0x1] ss:$0 sm:$0xff] }
 0xc24   : > { %v5450_v4 = vpop.f32.mrb[59].mxu1  ;;  %v2319_v20 = vadd.f32 %v5969_v6, %v2204_v63  ;;  %v5837_v6 = vld [vmem:[%s7257_s10] sm:$0xff]  }
 0xc26   : > { %v2258_v7 = vpop.f32.mrb[52].mxu0  ;;  %v2322_v25 = vsel %vm604_vm1, %v2319_v20, 0.0 }
 0xc27   : > { %v2259_v57 = vadd.f32 %v5004_v5, %v2258_v7  ;;  %v5457_v32 = vpop.f32.mrb[53].mxu0  ;;  %2323 = vadd.xlane.f32.xlu0 %v2322_v25  ;;  %v5836_v5 = vld [vmem:[%s7255_s8 + $0x28] sm:$0xff]   ;;  %v5017_v7 = vld [vmem:[%s7253_s6 + $0x2] ss:$0 sm:$0xff] }
 0xc28   : > { %v2261_v8 = vpop.f32.mrb[54].mxu0  ;;  %v5020_v32 = vld [vmem:[%s7254_s7 + $0x2] ss:$0 sm:$0xff] }
 0xc29   : > { %v5458_v9 = vpop.f32.mrb[55].mxu0  ;;  %v2320_v62 = vadd.f32 %v5970_v10, %v2259_v57 }
 0xc2a   : > { %v5838_v9 = vld [vmem:[%s7257_s10 + $0x8] sm:$0xff]  }
 0xc2b   : > { %v2325_v11 = vsel %vm604_vm1, %v2320_v62, 0.0 }
 0xc2c   : > { %2326 = vadd.xlane.f32.xlu1 %v2325_v11 }
 0xc2d   : > { %v2313_v13 = vpop.f32.mrb[60].mxu1 }
 0xc2e   : > { %v2314_v14 = vadd.f32 %v5005_v12, %v2313_v13  ;;  %v5465_v15 = vpop.f32.mrb[61].mxu1  ;;  %v5840_v12 = vld [vmem:[%s7257_s10 + $0x10] sm:$0xff]   ;;  %v5841_v13 = vld [vmem:[%s7257_s10 + $0x28] sm:$0xff]  }
 0xc2f   : > { %v2316_v16 = vpop.f32.mrb[62].mxu1  ;;  %v5843_v15 = vld [vmem:[%s7257_s10 + $0x30] sm:$0xff]  }
 0xc30   : > { %v5466_v17 = vpop.f32.mrb[63].mxu1  ;;  %v2321_v21 = vadd.f32 %v5971_v19, %v2314_v14  ;;  %v5842_v14 = vld [vmem:[%s7257_s10 + $0x18] sm:$0xff]  }
 0xc31   : > { %v5845_v16 = vld [vmem:[%s7257_s10 + $0x38] sm:$0xff]   ;;  %v5021_v17 = vld [vmem:[%s7256_s9] ss:$0 sm:$0xff] }
 0xc32   : > { %v2328_v22 = vsel %vm604_vm1, %v2321_v21, 0.0 }
 0xc33   : > { %2329 = vadd.xlane.f32.xlu0 %v2328_v22 }
 0xcb4   : > { %v2324_v24 = vpop.xlane.xlu0 %2323 }
 0xcb5   : > { %v2332_v26 = vmul.f32 0.03125, %v2324_v24 }
 0xcb7   : > { %v2335_v27 = vsub.f32 %v2319_v20, %v2332_v26 }
 0xcb9   : > { %v2327_v28 = vpop.xlane.xlu1 %2326  ;;  %v2338_v29 = vmul.f32 %v2335_v27, %v2335_v27 }
 0xcba   : > { %v2333_v30 = vmul.f32 0.03125, %v2327_v28  ;;  %v5022_v28 = vld [vmem:[%s7256_s9 + $0x1] ss:$0 sm:$0xff] }
 0xcbb   : > { %v2341_v31 = vsel %vm604_vm1, %v2338_v29, 0.0  ;;  %v5844_v29 = vld [vmem:[%s7257_s10 + $0x40] sm:$0xff]  }
 0xcbc   : > { %v2336_v33 = vsub.f32 %v2320_v62, %v2333_v30  ;;  %2342 = vadd.xlane.f32.xlu0 %v2341_v31  ;;  %v5839_v62 = vld [vmem:[%s7257_s10 + $0x20] sm:$0xff]  }
 0xcbe   : > { %v2339_v34 = vmul.f32 %v2336_v33, %v2336_v33 }
 0xcc0   : > { %v2330_v35 = vpop.xlane.xlu0 %2329  ;;  %v2344_v36 = vsel %vm604_vm1, %v2339_v34, 0.0 }
 0xcc1   : > { %v2334_v37 = vmul.f32 0.03125, %v2330_v35  ;;  %2345 = vadd.xlane.f32.xlu1 %v2344_v36 }
 0xcc3   : > { %v2337_v38 = vsub.f32 %v2321_v21, %v2334_v37 }
 0xcc5   : > { %v2340_v39 = vmul.f32 %v2337_v38, %v2337_v38 }
 0xcc7   : > { %v2347_v41 = vsel %vm604_vm1, %v2340_v39, 0.0 }
 0xcc8   : > { %2348 = vadd.xlane.f32.xlu0 %v2347_v41  ;;  %v5023_v41 = vld [vmem:[%s7256_s9 + $0x2] ss:$0 sm:$0xff] }
 0xd49   : > { %v2343_v3 = vpop.xlane.xlu0 %2342 }
 0xd4a   : > { %v2350_v23 = vmul.f32 0.03125, %v2343_v3  ;;  %v5972_v3 = vld [vmem:[%s7249_s2] sm:$0xff]  }
 0xd4c   : > { %v2353_v47 = vadd.f32 1e-05, %v2350_v23 }
 0xd4e   : > { %5897 = vrsqrt.f32 %v2353_v47  ;;  %v2346_v48 = vpop.xlane.xlu1 %2345 }
 0xd4f   : > { %v2351_v49 = vmul.f32 0.03125, %v2346_v48  ;;  %v5848_v48 = vld [vmem:[%s7257_s10 + $0x58] sm:$0xff]  }
 0xd51   : > { %v2354_v42 = vadd.f32 1e-05, %v2351_v49 }
 0xd53   : > { %5899 = vrsqrt.f32 %v2354_v42  ;;  %v5973_v42 = vld [vmem:[%s7249_s2 + $0x8] sm:$0xff]  }
 0xd55   : > { %v2349_v50 = vpop.xlane.xlu0 %2348 }
 0xd56   : > { %v2352_v51 = vmul.f32 0.03125, %v2349_v50 }
 0xd58   : > { %v5898_v52 = vpop.eup %5897  ;;  %v2355_v46 = vadd.f32 1e-05, %v2352_v51  ;;  %v5974_v51 = vld [vmem:[%s7249_s2 + $0x20] sm:$0xff]  }
 0xd59   : > { %v2359_v54 = vmul.f32 %v5898_v52, %v2335_v27  ;;  %v5975_v52 = vld [vmem:[%s7249_s2 + $0x28] sm:$0xff]  }
 0xd5a   : > { %5901 = vrsqrt.f32 %v2355_v46 }
 0xd5b   : > { %v2380_v56 = vmul.f32 %v5015_v53, %v2359_v54  ;;  %v5033_v53 = vld [vmem:[%s7258_s11] ss:$0 sm:$0xff] }
 0xd5d   : > { %v5900_v58 = vpop.eup %5899  ;;  %v6553_v61 = vadd.f32 %v5018_v55, %v2380_v56 }
 0xd5e   : > { %v2360_v60 = vmul.f32 %v5900_v58, %v2336_v33 }
 0xd5f   : > { %v2404_v63 = vpack.c.bf16 %v6553_v61, %v6553_v61 }
 0xd60   : > { %v2381_v2 = vmul.f32 %v5016_v59, %v2360_v60  ;;  %v5034_v59 = vld [vmem:[%s7258_s11 + $0x1] ss:$0 sm:$0xff] }
 0xd61   : > { %5472 = vmatmul.mubr.msk.bf16.vlgmr.msra.gmra.mrb[56].mxu0 %vm604_vm1, %v2404_v63 }
 0xd62   : > { %v6564_v4 = vadd.f32 %v5019_v0, %v2381_v2  ;;  %5484 = vmatpush3.bf16.msra.mxu0 %v5835_v40  ;;  %5487 = vmatprep.mubr.msk.bf16.mxu0 %vm6036_vm0, %v6035_v1 }
 0xd63   : > { %5485 = vmatprep.subr.bf16.mxu0 %v6035_v1 }
 0xd64   : > { %v5902_v20 = vpop.eup %5901  ;;  %v2405_v25 = vpack.c.bf16 %v6564_v4, %v6564_v4 }
 0xd65   : > { %v2361_v57 = vmul.f32 %v5902_v20, %v2337_v38  ;;  %v5846_v38 = vld [vmem:[%s7257_s10 + $0x48] sm:$0xff]  }
 0xd66   : > { %5480 = vmatmul.mubr.msk.bf16.vlgmr.msra.gmra.mrb[64].mxu1 %vm604_vm1, %v2405_v25  ;;  %5486 = vmatpush3.bf16.msra.mxu0 %v5836_v5  ;;  %v5035_v25 = vld [vmem:[%s7258_s11 + $0x2] ss:$0 sm:$0xff] }
 0xd67   : > { %v2382_v8 = vmul.f32 %v5017_v7, %v2361_v57  ;;  %5492 = vmatpush3.bf16.msra.mxu1 %v5837_v6  ;;  %5503 = vmatprep.subr.bf16.mxu0 %v6035_v1 }
 0xd68   : > { %5493 = vmatprep.subr.bf16.mxu1 %v6035_v1  ;;  %5499 = vmatprep.mubr.msk.bf16.mxu1 %vm6036_vm0, %v6035_v1 }
 0xd69   : > { %v6591_v10 = vadd.f32 %v5020_v32, %v2382_v8 }
 0xd6b   : > { %v2406_v11 = vpack.c.bf16 %v6591_v10, %v6591_v10  ;;  %5494 = vmatpush3.bf16.msra.mxu1 %v5838_v9 }
 0xd6c   : > { %5495 = vmatprep.subr.bf16.mxu1 %v6035_v1 }
 0xd6d   : > { %5488 = vmatmul.mubr.msk.bf16.vlgmr.msra.gmra.mrb[60].mxu0 %vm604_vm1, %v2406_v11 }
 0xd6e   : > { %5504 = vmatpush3.bf16.msra.mxu0 %v5839_v62  ;;  %5511 = vmatprep.mubr.msk.bf16.mxu0 %vm6036_vm0, %v6035_v1 }
 0xd6f   : > { %5496 = vmatpush3.bf16.msra.mxu1 %v5840_v12  ;;  %5505 = vmatprep.subr.bf16.mxu0 %v6035_v1 }
 0xd70   : > { %5497 = vmatprep.subr.bf16.mxu1 %v6035_v1 }
 0xd72   : > { %5506 = vmatpush3.bf16.msra.mxu0 %v5841_v13 }
 0xd73   : > { %5507 = vmatprep.subr.bf16.mxu0 %v6035_v1  ;;  %5498 = vmatpush3.bf16.msra.mxu1 %v5842_v14 }
 0xd74   : > { %5515 = vmatprep.subr.bf16.mxu1 %v6035_v1 }
 0xd76   : > { %5508 = vmatpush3.bf16.msra.mxu0 %v5843_v15 }
 0xd77   : > { %5509 = vmatprep.subr.bf16.mxu0 %v6035_v1 }
 0xd7a   : > { %5510 = vmatpush3.bf16.msra.mxu0 %v5845_v16 }
 0xd7b   : > { %5527 = vmatprep.subr.bf16.mxu0 %v6035_v1 }
 0xe34   : > { %v2474_v19 = vpop.f32.mrb[56].mxu0 }
 0xe35   : > { %v2475_v21 = vadd.f32 %v5021_v17, %v2474_v19  ;;  %v5473_v22 = vpop.f32.mrb[57].mxu0 }
 0xe36   : > { %v2477_v24 = vpop.f32.mrb[58].mxu0 }
 0xe37   : > { %v2590_v26 = vmax.f32 %v2475_v21, 0.0  ;;  %v5474_v27 = vpop.f32.mrb[59].mxu0 }
 0xe39   : > { %v2593_v30 = vpack.c.bf16 %v2590_v26, %v2590_v26  ;;  %v2529_v31 = vpop.f32.mrb[64].mxu1 }
 0xe3a   : > { %v2530_v33 = vadd.f32 %v5022_v28, %v2529_v31  ;;  %v5481_v34 = vpop.f32.mrb[65].mxu1 }
 0xe3b   : > { %v2532_v35 = vpop.f32.mrb[66].mxu1  ;;  %5500 = vmatmul.mubr.msk.bf16.vlgmr.msra.gmra.mrb[68].mxu1 %vm2638_vm6, %v2593_v30 }
 0xe3c   : > { %v2591_v36 = vmax.f32 %v2530_v33, 0.0  ;;  %5516 = vmatpush3.bf16.msra.mxu1 %v5844_v29  ;;  %v5482_v37 = vpop.f32.mrb[67].mxu1  ;;  %5523 = vmatprep.mubr.msk.bf16.mxu1 %vm6036_vm0, %v6035_v1 }
 0xe3d   : > { %5517 = vmatprep.subr.bf16.mxu1 %v6035_v1  ;;  %v5051_v37 = vld [vmem:[%s7259_s12] ss:$0 sm:$0xff] }
 0xe3e   : > { %v2594_v39 = vpack.c.bf16 %v2591_v36, %v2591_v36 }
 0xe40   : > { %5518 = vmatpush3.bf16.msra.mxu1 %v5846_v38  ;;  %v2584_v18 = vpop.f32.mrb[60].mxu0  ;;  %5512 = vmatmul.mubr.msk.bf16.vlgmr.msra.gmra.mrb[64].mxu0 %vm2638_vm6, %v2594_v39 }
 0xe41   : > { %v2585_v44 = vadd.f32 %v5023_v41, %v2584_v18  ;;  %v5489_v45 = vpop.f32.mrb[61].mxu0  ;;  %5519 = vmatprep.subr.bf16.mxu1 %v6035_v1  ;;  %5528 = vmatpush3.bf16.msra.mxu0 %v5972_v3  ;;  %v5054_v18 = vld [vmem:[%s7260_s13] ss:$0 sm:$0xff]  ;;  %v5052_v3 = vld [vmem:[%s7259_s12 + $0x1] ss:$0 sm:$0xff] }
 0xe42   : > { %v2587_v23 = vpop.f32.mrb[62].mxu0  ;;  %5529 = vmatprep.subr.bf16.mxu0 %v6035_v1  ;;  %5531 = vmatprep.mubr.msk.bf16.mxu0 %vm6036_vm0, %v6035_v1 }
 0xe43   : > { %v5490_v47 = vpop.f32.mrb[63].mxu0  ;;  %v2592_v49 = vmax.f32 %v2585_v44, 0.0 }
 0xe44   : > { %5520 = vmatpush3.bf16.msra.mxu1 %v5847_v43 }
 0xe45   : > { %5521 = vmatprep.subr.bf16.mxu1 %v6035_v1  ;;  %5530 = vmatpush3.bf16.msra.mxu0 %v5973_v42  ;;  %v2595_v50 = vpack.c.bf16 %v2592_v49, %v2592_v49  ;;  %v5055_v42 = vld [vmem:[%s7260_s13 + $0x1] ss:$0 sm:$0xff] }
 0xe46   : > { %5535 = vmatprep.subr.bf16.mxu0 %v6035_v1 }
 0xe48   : > { %5522 = vmatpush3.bf16.msra.mxu1 %v5848_v48 }
 0xe49   : > { %5543 = vmatprep.subr.bf16.mxu1 %v6035_v1 }
 0xe4b   : > { %5524 = vmatmul.mubr.msk.bf16.vlgmr.msra.gmra.mrb[72].mxu1 %vm2638_vm6, %v2595_v50  ;;  %v5976_v50 = vld [vmem:[%s7249_s2 + $0x10] sm:$0xff]  }
 0xe4c   : > { %5544 = vmatpush3.bf16.msra.mxu1 %v5974_v51  ;;  %5547 = vmatprep.mubr.msk.bf16.mxu1 %vm6036_vm0, %v6035_v1 }
 0xe4d   : > { %5545 = vmatprep.subr.bf16.mxu1 %v6035_v1 }
 0xe50   : > { %5546 = vmatpush3.bf16.msra.mxu1 %v5975_v52  ;;  %v5977_v52 = vld [vmem:[%s7249_s2 + $0x18] sm:$0xff]  }
 0xe51   : > { %5557 = vmatprep.subr.bf16.mxu1 %v6035_v1 }
 0xf0e   : > { %v2676_v46 = vpop.f32.mrb[68].mxu1 }
 0xf0f   : > { %v2677_v54 = vadd.f32 %v5033_v53, %v2676_v46  ;;  %v5501_v55 = vpop.f32.mrb[69].mxu1 }
 0xf10   : > { %v2679_v56 = vpop.f32.mrb[70].mxu1 }
 0xf11   : > { %v5502_v58 = vpop.f32.mrb[71].mxu1  ;;  %v2816_v60 = vadd.f32 %v2677_v54, %v6553_v61  ;;  %v5053_v54 = vld [vmem:[%s7259_s12 + $0x2] ss:$0 sm:$0xff] }
 0xf12   : > { %v5056_v56 = vld [vmem:[%s7260_s13 + $0x2] ss:$0 sm:$0xff] }
 0xf13   : > { %v2743_v40 = vpop.f32.mrb[64].mxu0  ;;  %v2819_v63 = vsel %vm604_vm1, %v2816_v60, 0.0 }
 0xf14   : > { %v2744_v0 = vadd.f32 %v5034_v59, %v2743_v40  ;;  %v5513_v2 = vpop.f32.mrb[65].mxu0  ;;  %2820 = vadd.xlane.f32.xlu1 %v2819_v63  ;;  %v5978_v63 = vld [vmem:[%s7250_s3] ss:$0 sm:$0xff] }
 0xf15   : > { %v2746_v5 = vpop.f32.mrb[66].mxu0 }
 0xf16   : > { %v5514_v6 = vpop.f32.mrb[67].mxu0  ;;  %v2817_v20 = vadd.f32 %v2744_v0, %v6564_v4 }
 0xf18   : > { %v2822_v7 = vsel %vm604_vm1, %v2817_v20, 0.0 }
 0xf19   : > { %2823 = vadd.xlane.f32.xlu0 %v2822_v7 }
 0xf1e   : > { %v2810_v57 = vpop.f32.mrb[72].mxu1 }
 0xf1f   : > { %v2811_v32 = vadd.f32 %v5035_v25, %v2810_v57  ;;  %v5525_v61 = vpop.f32.mrb[73].mxu1  ;;  %v5979_v25 = vld [vmem:[%s7250_s3 + $0x1] ss:$0 sm:$0xff] }
 0xf20   : > { %v2813_v8 = vpop.f32.mrb[74].mxu1 }
 0xf21   : > { %v5526_v9 = vpop.f32.mrb[75].mxu1  ;;  %v2818_v62 = vadd.f32 %v2811_v32, %v6591_v10 }
 0xf23   : > { %v2825_v11 = vsel %vm604_vm1, %v2818_v62, 0.0 }
 0xf24   : > { %2826 = vadd.xlane.f32.xlu1 %v2825_v11  ;;  %v5980_v11 = vld [vmem:[%s7250_s3 + $0x2] ss:$0 sm:$0xff] }
 0xfa1   : > { %v2821_v12 = vpop.xlane.xlu1 %2820 }
 0xfa2   : > { %v2828_v13 = vmul.f32 0.03125, %v2821_v12 }
 0xfa4   : > { %v2831_v4 = vsub.f32 %v2816_v60, %v2828_v13 }
 0xfa6   : > { %v2824_v14 = vpop.xlane.xlu0 %2823  ;;  %v2834_v15 = vmul.f32 %v2831_v4, %v2831_v4 }
 0xfa7   : > { %v2829_v16 = vmul.f32 0.03125, %v2824_v14 }
 0xfa8   : > { %v2837_v17 = vsel %vm604_vm1, %v2834_v15, 0.0 }
 0xfa9   : > { %v2832_v19 = vsub.f32 %v2817_v20, %v2829_v16  ;;  %2838 = vadd.xlane.f32.xlu0 %v2837_v17 }
 0xfab   : > { %v2835_v21 = vmul.f32 %v2832_v19, %v2832_v19 }
 0xfad   : > { %v2840_v22 = vsel %vm604_vm1, %v2835_v21, 0.0 }
 0xfae   : > { %2841 = vadd.xlane.f32.xlu1 %v2840_v22 }
 0xfb1   : > { %v2827_v24 = vpop.xlane.xlu1 %2826 }
 0xfb2   : > { %v2830_v26 = vmul.f32 0.03125, %v2827_v24 }
 0xfb4   : > { %v2833_v10 = vsub.f32 %v2818_v62, %v2830_v26 }
 0xfb6   : > { %v2836_v27 = vmul.f32 %v2833_v10, %v2833_v10 }
 0xfb8   : > { %v2843_v28 = vsel %vm604_vm1, %v2836_v27, 0.0 }
 0xfb9   : > { %2844 = vadd.xlane.f32.xlu0 %v2843_v28 }
0x1036   : > { %v2839_v29 = vpop.xlane.xlu0 %2838 }
0x1037   : > { %v2846_v30 = vmul.f32 0.03125, %v2839_v29 }
0x1039   : > { %v2849_v31 = vadd.f32 1e-05, %v2846_v30 }
0x103b   : > { %5903 = vrsqrt.f32 %v2849_v31  ;;  %v2842_v33 = vpop.xlane.xlu1 %2841 }
0x103c   : > { %v2847_v34 = vmul.f32 0.03125, %v2842_v33 }
0x103e   : > { %v2850_v35 = vadd.f32 1e-05, %v2847_v34 }
0x1040   : > { %5905 = vrsqrt.f32 %v2850_v35 }
0x1045   : > { %v5904_v36 = vpop.eup %5903 }
0x1046   : > { %v2855_v38 = vmul.f32 %v5904_v36, %v2831_v4  ;;  %v2845_v39 = vpop.xlane.xlu0 %2844 }
0x1047   : > { %v2848_v41 = vmul.f32 0.03125, %v2845_v39 }
0x1048   : > { %v2876_v43 = vmul.f32 %v5051_v37, %v2855_v38 }
0x1049   : > { %v2851_v44 = vadd.f32 1e-05, %v2848_v41 }
0x104a   : > { %v5906_v45 = vpop.eup %5905  ;;  %v6700_v23 = vadd.f32 %v5054_v18, %v2876_v43 }
0x104b   : > { %v2856_v47 = vmul.f32 %v5906_v45, %v2832_v19  ;;  %5907 = vrsqrt.f32 %v2851_v44 }
0x104c   : > { %v2900_v48 = vpack.c.bf16 %v6700_v23, %v6700_v23 }
0x104d   : > { %v2877_v49 = vmul.f32 %v5052_v3, %v2856_v47 }
0x104e   : > { %5532 = vmatmul.mubr.msk.bf16.vlgmr.msra.gmra.mrb[68].mxu0 %vm604_vm1, %v2900_v48 }
0x104f   : > { %5536 = vmatpush3.bf16.msra.mxu0 %v5976_v50  ;;  %5539 = vmatprep.mubr.msk.bf16.mxu0 %vm6036_vm0, %v6035_v1  ;;  %v6714_v51 = vadd.f32 %v5055_v42, %v2877_v49 }
0x1050   : > { %5537 = vmatprep.subr.bf16.mxu0 %v6035_v1 }
0x1051   : > { %v2901_v53 = vpack.c.bf16 %v6714_v51, %v6714_v51 }
0x1053   : > { %5538 = vmatpush3.bf16.msra.mxu0 %v5977_v52 }
0x1054   : > { %5551 = vmatprep.subr.bf16.mxu0 %v6035_v1 }
0x1055   : > { %v5908_v46 = vpop.eup %5907 }
0x1056   : > { %v2857_v55 = vmul.f32 %v5908_v46, %v2833_v10  ;;  %5540 = vmatmul.mubr.msk.bf16.vlgmr.msra.gmra.mrb[72].mxu0 %vm604_vm1, %v2901_v53  ;;  %v6778_v10 = vld [vmem:[%s6229_s28] ss:$0 sm:$0xff]  ;;  %s7282_s28 = smov 56  }
0x1057   : > { %5553 = vmatprep.mubr.msk.bf16.mxu0 %vm6036_vm0, %v6035_v1 }
0x1058   : > { %v2878_v58 = vmul.f32 %v5053_v54, %v2857_v55 }
0x105a   : > { %v6731_v59 = vadd.f32 %v5056_v56, %v2878_v58 }
0x105c   : > { %v2902_v60 = vpack.c.bf16 %v6731_v59, %v6731_v59 }
0x105e   : > { %5548 = vmatmul.mubr.msk.bf16.vlgmr.msra.gmra.mrb[76].mxu1 %vm604_vm1, %v2902_v60 }
0x105f   : > { %5559 = vmatprep.mubr.msk.bf16.mxu1 %vm6036_vm0, %v6035_v1 }
0x1121   : > { %v2940_v40 = vpop.f32.mrb[68].mxu0 }
0x1122   : > { %v2941_v0 = vadd.f32 %v5978_v63, %v2940_v40  ;;  %v5533_v2 = vpop.f32.mrb[69].mxu0 }
0x1123   : > { %v2943_v5 = vpop.f32.mrb[70].mxu0 }
0x1124   : > { %v6741_v6 = vpack.c.bf16 %v2941_v0, %v2941_v0  ;;  %v5534_v20 = vpop.f32.mrb[71].mxu0 }
0x1126   : > { %3036 = vrot.lane.b32.xlu0 %v6741_v6, %s6037_s22 }
0x1129   : > { %v2983_v7 = vpop.f32.mrb[72].mxu0 }
0x112a   : > { %v2984_v57 = vadd.f32 %v5979_v25, %v2983_v7  ;;  %v5541_v32 = vpop.f32.mrb[73].mxu0 }
0x112b   : > { %v2986_v61 = vpop.f32.mrb[74].mxu0 }
0x112c   : > { %v6748_v8 = vpack.c.bf16 %v2984_v57, %v2984_v57  ;;  %v5542_v9 = vpop.f32.mrb[75].mxu0 }
0x112e   : > { %3085 = vrot.lane.b32.xlu1 %v6748_v8, %s6037_s22 }
0x1131   : > { %v3026_v62 = vpop.f32.mrb[76].mxu1 }
0x1132   : > { %v3027_v12 = vadd.f32 %v5980_v11, %v3026_v62  ;;  %v5549_v13 = vpop.f32.mrb[77].mxu1 }
0x1133   : > { %v3029_v4 = vpop.f32.mrb[78].mxu1 }
0x1134   : > { %v6755_v14 = vpack.c.bf16 %v3027_v12, %v3027_v12  ;;  %v5550_v15 = vpop.f32.mrb[79].mxu1 }
0x1136   : > { %3134 = vrot.lane.b32.xlu1 %v6755_v14, %s6037_s22  ;;  %s7281_s22 = smov 120  }
0x1198   : > { %v3037_v16 = vpop.permute.xlu0 %3036 }
0x1199   : > { %v3042_v17 = vsel %vm770_vm2, %v3037_v16, 0 }
0x119a   : > { %5552 = vmatpush3.bf16.xpose.msra.mxu0 %v3042_v17 }
0x119b   : > { %5563 = vmatprep.subr.bf16.mxu0 %v6035_v1 }
0x11a0   : > { %v3086_v19 = vpop.permute.xlu1 %3085 }
0x11a1   : > { %v3091_v21 = vsel %vm770_vm2, %v3086_v19, 0  ;;  %5554 = vmatmul.mubr.msk.bf16.vlgmr.msra.gmra.mrb[76].mxu0 %vm770_vm2, %v6741_v6 }
0x11a2   : > { %5558 = vmatpush3.bf16.xpose.msra.mxu1 %v3091_v21  ;;  %5565 = vmatprep.mubr.msk.bf16.mxu0 %vm6036_vm0, %v6035_v1 }
0x11a3   : > { %5569 = vmatprep.subr.bf16.mxu1 %v6035_v1 }
0x11a8   : > { %v3135_v22 = vpop.permute.xlu1 %3134 }
0x11a9   : > { %v3140_v24 = vsel %vm770_vm2, %v3135_v22, 0  ;;  %5560 = vmatmul.mubr.msk.bf16.vlgmr.msra.gmra.mrb[80].mxu1 %vm770_vm2, %v6748_v8 }
0x11aa   : > { %5564 = vmatpush3.bf16.xpose.msra.mxu0 %v3140_v24  ;;  %5571 = vmatprep.mubr.msk.bf16.mxu1 %vm6036_vm0, %v6035_v1 }
0x11ab   : > { %5575 = vmatprep.subr.bf16.mxu0 %v6035_v1 }
0x11b1   : > { %5566 = vmatmul.mubr.msk.bf16.vlgmr.msra.gmra.mrb[80].mxu0 %vm770_vm2, %v6755_v14 }
0x11b2   : > { %5577 = vmatprep.mubr.msk.bf16.mxu0 %vm6036_vm0, %v6035_v1 }
0x1274   : > { %v3078_v26 = vpop.f32.mrb[76].mxu0 }
0x1275   : > { %v3079_v27 = vadd.f32 %v6778_v10, %v3078_v26  ;;  %v5555_v28 = vpop.f32.mrb[77].mxu0 }
0x1276   : > { %v3081_v29 = vpop.f32.mrb[78].mxu0 }
0x1277   : > { %v5556_v30 = vpop.f32.mrb[79].mxu0  ;;  %v3182_v31 = vsel %vm770_vm2, %v3079_v27, -inf }
0x1278   : > { %3183 = vmax.xlane.f32.xlu0 %v3182_v31 }
0x127c   : > { %v3127_v33 = vpop.f32.mrb[80].mxu1 }
0x127d   : > { %v3128_v34 = vadd.f32 %v6778_v10, %v3127_v33  ;;  %v5561_v35 = vpop.f32.mrb[81].mxu1 }
0x127e   : > { %v3130_v36 = vpop.f32.mrb[82].mxu1 }
0x127f   : > { %v5562_v37 = vpop.f32.mrb[83].mxu1  ;;  %v3185_v38 = vsel %vm770_vm2, %v3128_v34, -inf }
0x1280   : > { %3186 = vmax.xlane.f32.xlu1 %v3185_v38 }
0x1284   : > { %v3176_v39 = vpop.f32.mrb[80].mxu0 }
0x1285   : > { %v3177_v41 = vadd.f32 %v6778_v10, %v3176_v39  ;;  %v5567_v18 = vpop.f32.mrb[81].mxu0 }
0x1286   : > { %v3179_v43 = vpop.f32.mrb[82].mxu0 }
0x1287   : > { %v5568_v44 = vpop.f32.mrb[83].mxu0  ;;  %v3188_v45 = vsel %vm770_vm2, %v3177_v41, -inf }
0x1288   : > { %3189 = vmax.xlane.f32.xlu0 %v3188_v45 }
0x1291   : > { %3364 = vrot.lane.b32.xlu1 %v6741_v6, %s6040_s17 }
0x1295   : > { %3218 = vrot.lane.b32.xlu1 %v6741_v6, %s6038_s15 }
0x129e   : > { %3266 = vrot.lane.b32.xlu0 %v6748_v8, %s6038_s15 }
0x12a2   : > { %3314 = vrot.lane.b32.xlu0 %v6755_v14, %s6038_s15  ;;  %s7283_s15 = smov 80  }
0x1305   : > { %v3184_v3 = vpop.xlane.xlu0 %3183 }
0x1306   : > { %v3191_v47 = vsub.f32 %v3079_v27, %v3184_v3 }
0x1308   : > { %v3194_v48 = vmul.f32 1.442695, %v3191_v47 }
0x130a   : > { %5909 = vpow2.f32 %v3194_v48 }
0x130d   : > { %v3187_v49 = vpop.xlane.xlu1 %3186 }
0x130e   : > { %v3192_v42 = vsub.f32 %v3128_v34, %v3187_v49 }
0x1310   : > { %v3196_v50 = vmul.f32 1.442695, %v3192_v42 }
0x1311   : > { %v3365_v52 = vpop.permute.xlu1 %3364 }
0x1312   : > { %5911 = vpow2.f32 %v3196_v50  ;;  %v3370_v4 = vsel %vm770_vm2, %v3365_v52, 0 }
0x1314   : > { %v5910_v53 = vpop.eup %5909 }
0x1315   : > { %v3190_v46 = vpop.xlane.xlu0 %3189  ;;  %v3219_v54 = vpop.permute.xlu1 %3218  ;;  %v3200_v55 = vsel %vm770_vm2, %v5910_v53, 0.0 }
0x1316   : > { %v3224_v56 = vsel %vm956_vm3, %v3219_v54, 0  ;;  %3201 = vadd.xlane.f32.xlu0 %v3200_v55  ;;  %v3193_v0 = vsub.f32 %v3177_v41, %v3190_v46 }
0x1317   : > { %5570 = vmatpush3.bf16.msra.mxu1 %v3224_v56 }
0x1318   : > { %5581 = vmatprep.subr.bf16.mxu1 %v6035_v1  ;;  %v3198_v2 = vmul.f32 1.442695, %v3193_v0 }
0x1319   : > { %v3267_v58 = vpop.permute.xlu0 %3266 }
0x131a   : > { %v3272_v60 = vsel %vm956_vm3, %v3267_v58, 0  ;;  %5913 = vpow2.f32 %v3198_v2 }
0x131b   : > { %5576 = vmatpush3.bf16.msra.mxu0 %v3272_v60 }
0x131c   : > { %v5912_v40 = vpop.eup %5911  ;;  %5587 = vmatprep.subr.bf16.mxu0 %v6035_v1 }
0x131d   : > { %v3203_v63 = vsel %vm770_vm2, %v5912_v40, 0.0  ;;  %v3315_v7 = vpop.permute.xlu0 %3314 }
0x131e   : > { %3204 = vadd.xlane.f32.xlu1 %v3203_v63  ;;  %v3320_v62 = vsel %vm956_vm3, %v3315_v7, 0 }
0x1324   : > { %v5914_v5 = vpop.eup %5913 }
0x1325   : > { %v3206_v20 = vsel %vm770_vm2, %v5914_v5, 0.0 }
0x132c   : > { %3464 = vrot.lane.b32.xlu0 %v6755_v14, %s6040_s17 }
0x132f   : > { %3362 = vrot.lane.b32.xlu1 %v6741_v6, %s7281_s22 }
0x1330   : > { %3462 = vrot.lane.b32.xlu0 %v6755_v14, %s7281_s22 }
0x1353   : > { %3207 = vadd.xlane.f32.xlu1 %v3206_v20 }
0x1364   : > { %3414 = vrot.lane.b32.xlu1 %v6748_v8, %s6040_s17  ;;  %s7284_s17 = smov 112  }
0x1368   : > { %3412 = vrot.lane.b32.xlu1 %v6748_v8, %s7281_s22 }
0x13a3   : > { %v3202_v25 = vpop.xlane.xlu0 %3201 }
0x13a4   : > { %5915 = vrcp.f32 %v3202_v25 }
0x13a7   : > { %v3465_v15 = vpop.permute.xlu0 %3464 }
0x13a8   : > { %v3470_v17 = vsel %vm770_vm2, %v3465_v15, 0 }
0x13ab   : > { %v3205_v57 = vpop.xlane.xlu1 %3204  ;;  %v3463_v19 = vpop.permute.xlu0 %3462 }
0x13ac   : > { %5917 = vrcp.f32 %v3205_v57 }
0x13ae   : > { %v5916_v32 = vpop.eup %5915 }
0x13af   : > { %v3212_v61 = vmul.f32 %v5916_v32, %v5910_v53  ;;  %v3363_v16 = vpop.permute.xlu1 %3362 }
0x13b1   : > { %v3215_v9 = vpack.c.bf16 %v3212_v61, %v3212_v61 }
0x13b3   : > { %5572 = vmatmul.mubr.msk.bf16.vlgmr.msra.gmra.mrb[84].mxu1 %vm770_vm2, %v3215_v9 }
0x13b4   : > { %5582 = vmatpush3.bf16.msra.mxu1 %v3320_v62  ;;  %5583 = vmatprep.mubr.msk.bf16.mxu1 %vm6036_vm0, %v6035_v1 }
0x13b5   : > { %5593 = vmatprep.subr.bf16.mxu1 %v6035_v1 }
0x13b6   : > { %v5918_v11 = vpop.eup %5917 }
0x13b7   : > { %v3213_v12 = vmul.f32 %v5918_v11, %v5912_v40 }
0x13b9   : > { %v3216_v13 = vpack.c.bf16 %v3213_v12, %v3213_v12 }
0x13bb   : > { %5578 = vmatmul.mubr.msk.bf16.vlgmr.msra.gmra.mrb[84].mxu0 %vm770_vm2, %v3216_v13 }
0x13bc   : > { %5588 = vmatpush3.bf16.xpose.msra.mxu0 %v3370_v4  ;;  %5589 = vmatprep.mubr.msk.bf16.mxu0 %vm6036_vm0, %v6035_v1 }
0x13bd   : > { %5599 = vmatprep.subr.bf16.mxu0 %v6035_v1 }
0x13c3   : > { %5590 = vmatmul.mubr.msk.bf16.vlgmr.msra.gmra.mrb[88].mxu0 %vm770_vm2, %v3363_v16 }
0x13c4   : > { %5600 = vmatpush3.bf16.xpose.msra.mxu0 %v3470_v17  ;;  %5601 = vmatprep.mubr.msk.bf16.mxu0 %vm6036_vm0, %v6035_v1 }
0x13c5   : > { %5611 = vmatprep.subr.bf16.mxu0 %v6035_v1 }
0x13cb   : > { %5602 = vmatmul.mubr.msk.bf16.vlgmr.msra.gmra.mrb[92].mxu0 %vm770_vm2, %v3463_v19 }
0x13cc   : > { %5613 = vmatprep.mubr.msk.bf16.mxu0 %vm6036_vm0, %v6035_v1 }
0x13e0   : > { %v3208_v21 = vpop.xlane.xlu1 %3207 }
0x13e1   : > { %5919 = vrcp.f32 %v3208_v21 }
0x13e4   : > { %v3415_v26 = vpop.permute.xlu1 %3414 }
0x13e5   : > { %v3420_v28 = vsel %vm770_vm2, %v3415_v26, 0 }
0x13e8   : > { %v3413_v29 = vpop.permute.xlu1 %3412 }
0x13eb   : > { %v5920_v22 = vpop.eup %5919 }
0x13ec   : > { %v3214_v24 = vmul.f32 %v5920_v22, %v5914_v5 }
0x13ee   : > { %v3217_v27 = vpack.c.bf16 %v3214_v24, %v3214_v24 }
0x13f0   : > { %5584 = vmatmul.mubr.msk.bf16.vlgmr.msra.gmra.mrb[88].mxu1 %vm770_vm2, %v3217_v27 }
0x13f1   : > { %5594 = vmatpush3.bf16.xpose.msra.mxu1 %v3420_v28  ;;  %5595 = vmatprep.mubr.msk.bf16.mxu1 %vm6036_vm0, %v6035_v1 }
0x13f2   : > { %5605 = vmatprep.subr.bf16.mxu1 %v6035_v1 }
0x13f8   : > { %5596 = vmatmul.mubr.msk.bf16.vlgmr.msra.gmra.mrb[92].mxu1 %vm770_vm2, %v3413_v29 }
0x13f9   : > { %5607 = vmatprep.mubr.msk.bf16.mxu1 %vm6036_vm0, %v6035_v1 }
0x1486   : > { %v6837_v30 = vpop.f32.mrb[84].mxu1 }
0x1487   : > { %v5573_v31 = vpop.f32.mrb[85].mxu1 }
0x1488   : > { %v3263_v33 = vpop.f32.mrb[86].mxu1 }
0x1489   : > { %v5574_v34 = vpop.f32.mrb[87].mxu1 }
0x148e   : > { %v6839_v35 = vpop.f32.mrb[84].mxu0 }
0x148f   : > { %v5579_v36 = vpop.f32.mrb[85].mxu0 }
0x1490   : > { %v3311_v37 = vpop.f32.mrb[86].mxu0 }
0x1491   : > { %v5580_v38 = vpop.f32.mrb[87].mxu0 }
0x1496   : > { %v3406_v39 = vpop.f32.mrb[88].mxu0 }
0x1497   : > { %v3407_v41 = vadd.f32 %v6778_v10, %v3406_v39  ;;  %v5591_v18 = vpop.f32.mrb[89].mxu0 }
0x1498   : > { %v3409_v43 = vpop.f32.mrb[90].mxu0 }
0x1499   : > { %v5592_v44 = vpop.f32.mrb[91].mxu0  ;;  %v3512_v45 = vsel %vm770_vm2, %v3407_v41, -inf }
0x149a   : > { %3513 = vmax.xlane.f32.xlu0 %v3512_v45 }
0x149e   : > { %v3506_v3 = vpop.f32.mrb[92].mxu0 }
0x149f   : > { %v3507_v47 = vadd.f32 %v6778_v10, %v3506_v3  ;;  %v5603_v48 = vpop.f32.mrb[93].mxu0 }
0x14a0   : > { %v3509_v49 = vpop.f32.mrb[94].mxu0 }
0x14a1   : > { %v5604_v42 = vpop.f32.mrb[95].mxu0  ;;  %v3518_v50 = vsel %vm770_vm2, %v3507_v47, -inf }
0x14a2   : > { %3519 = vmax.xlane.f32.xlu1 %v3518_v50 }
0x14b3   : > { %3548 = vrot.lane.b32.xlu1 %v6741_v6, %s7282_s28 }
0x14b7   : > { %3596 = vrot.lane.b32.xlu1 %v6748_v8, %s7282_s28 }
0x14c3   : > { %v6849_v52 = vpop.f32.mrb[88].mxu1 }
0x14c4   : > { %v5585_v53 = vpop.f32.mrb[89].mxu1 }
0x14c5   : > { %v3359_v46 = vpop.f32.mrb[90].mxu1 }
0x14c6   : > { %v5586_v54 = vpop.f32.mrb[91].mxu1 }
0x14cb   : > { %v3456_v55 = vpop.f32.mrb[92].mxu1 }
0x14cc   : > { %v3457_v56 = vadd.f32 %v6778_v10, %v3456_v55  ;;  %v5597_v58 = vpop.f32.mrb[93].mxu1 }
0x14cd   : > { %v3459_v60 = vpop.f32.mrb[94].mxu1 }
0x14ce   : > { %v5598_v40 = vpop.f32.mrb[95].mxu1  ;;  %v3515_v63 = vsel %vm770_vm2, %v3457_v56, -inf }
0x14cf   : > { %3516 = vmax.xlane.f32.xlu0 %v3515_v63 }
0x1527   : > { %v3514_v0 = vpop.xlane.xlu0 %3513 }
0x1528   : > { %v3521_v2 = vsub.f32 %v3407_v41, %v3514_v0 }
0x152a   : > { %v3524_v5 = vmul.f32 1.442695, %v3521_v2 }
0x152c   : > { %5921 = vpow2.f32 %v3524_v5 }
0x152f   : > { %v3520_v20 = vpop.xlane.xlu1 %3519 }
0x1530   : > { %v3523_v7 = vsub.f32 %v3507_v47, %v3520_v20 }
0x1532   : > { %v3528_v25 = vmul.f32 1.442695, %v3523_v7 }
0x1533   : > { %v3549_v57 = vpop.permute.xlu1 %3548 }
0x1534   : > { %5923 = vpow2.f32 %v3528_v25  ;;  %v3554_v32 = vsel %vm956_vm3, %v3549_v57, 0 }
0x1535   : > { %5606 = vmatpush3.bf16.msra.mxu1 %v3554_v32 }
0x1536   : > { %v5922_v61 = vpop.eup %5921  ;;  %5617 = vmatprep.subr.bf16.mxu1 %v6035_v1 }
0x1537   : > { %v3597_v9 = vpop.permute.xlu1 %3596  ;;  %v3530_v62 = vsel %vm770_vm2, %v5922_v61, 0.0 }
0x1538   : > { %v3602_v11 = vsel %vm956_vm3, %v3597_v9, 0  ;;  %3531 = vadd.xlane.f32.xlu0 %v3530_v62 }
0x1539   : > { %5612 = vmatpush3.bf16.msra.mxu0 %v3602_v11 }
0x153a   : > { %5623 = vmatprep.subr.bf16.mxu0 %v6035_v1 }
0x153e   : > { %v5924_v12 = vpop.eup %5923 }
0x153f   : > { %v3536_v13 = vsel %vm770_vm2, %v5924_v12, 0.0 }
0x1540   : > { %3537 = vadd.xlane.f32.xlu1 %v3536_v13 }
0x154e   : > { %3644 = vrot.lane.b32.xlu0 %v6755_v14, %s7282_s28 }
0x1551   : > { %3744 = vrot.lane.b32.xlu1 %v6748_v8, %s7283_s15 }
0x1555   : > { %3742 = vrot.lane.b32.xlu1 %v6748_v8, %s7284_s17 }
0x1559   : > { %3794 = vrot.lane.b32.xlu1 %v6755_v14, %s7283_s15 }
0x155c   : > { %v3517_v4 = vpop.xlane.xlu0 %3516 }
0x155d   : > { %v3522_v15 = vsub.f32 %v3457_v56, %v3517_v4 }
0x155f   : > { %v3526_v16 = vmul.f32 1.442695, %v3522_v15 }
0x1561   : > { %5925 = vpow2.f32 %v3526_v16 }
0x156b   : > { %v5926_v17 = vpop.eup %5925 }
0x156c   : > { %v3533_v19 = vsel %vm770_vm2, %v5926_v17, 0.0 }
0x156d   : > { %3534 = vadd.xlane.f32.xlu0 %v3533_v19 }
0x1583   : > { %3694 = vrot.lane.b32.xlu0 %v6741_v6, %s7283_s15 }
0x1587   : > { %3692 = vrot.lane.b32.xlu0 %v6741_v6, %s7284_s17 }
0x158b   : > { %3792 = vrot.lane.b32.xlu0 %v6755_v14, %s7284_s17  ;;  %s7289_s17 = smov 24  }
0x15c5   : > { %v3532_v21 = vpop.xlane.xlu0 %3531 }
0x15c6   : > { %5927 = vrcp.f32 %v3532_v21 }
0x15c9   : > { %v3645_v27 = vpop.permute.xlu0 %3644 }
0x15ca   : > { %v3650_v29 = vsel %vm956_vm3, %v3645_v27, 0 }
0x15cd   : > { %v3538_v22 = vpop.xlane.xlu1 %3537 }
0x15ce   : > { %5929 = vrcp.f32 %v3538_v22 }
0x15d0   : > { %v5928_v24 = vpop.eup %5927 }
0x15d1   : > { %v3542_v26 = vmul.f32 %v5928_v24, %v5922_v61  ;;  %v3745_v34 = vpop.permute.xlu1 %3744 }
0x15d2   : > { %v3750_v37 = vsel %vm770_vm2, %v3745_v34, 0 }
0x15d3   : > { %v3545_v28 = vpack.c.bf16 %v3542_v26, %v3542_v26 }
0x15d5   : > { %5608 = vmatmul.mubr.msk.bf16.vlgmr.msra.gmra.mrb[96].mxu1 %vm770_vm2, %v3545_v28  ;;  %v3743_v38 = vpop.permute.xlu1 %3742 }
0x15d6   : > { %5618 = vmatpush3.bf16.msra.mxu1 %v3650_v29  ;;  %5619 = vmatprep.mubr.msk.bf16.mxu1 %vm6036_vm0, %v6035_v1 }
0x15d7   : > { %5629 = vmatprep.subr.bf16.mxu1 %v6035_v1 }
0x15d8   : > { %v5930_v31 = vpop.eup %5929 }
0x15d9   : > { %v3544_v33 = vmul.f32 %v5930_v31, %v5924_v12  ;;  %v3795_v3 = vpop.permute.xlu1 %3794 }
0x15da   : > { %v3800_v48 = vsel %vm770_vm2, %v3795_v3, 0 }
0x15db   : > { %v3547_v36 = vpack.c.bf16 %v3544_v33, %v3544_v33 }
0x15dd   : > { %5620 = vmatmul.mubr.msk.bf16.vlgmr.msra.gmra.mrb[100].mxu1 %vm770_vm2, %v3547_v36 }
0x15de   : > { %5631 = vmatprep.mubr.msk.bf16.mxu1 %vm6036_vm0, %v6035_v1 }
0x15df   : > { %5630 = vmatpush3.bf16.xpose.msra.mxu1 %v3750_v37 }
0x15e0   : > { %5641 = vmatprep.subr.bf16.mxu1 %v6035_v1 }
0x15e6   : > { %5632 = vmatmul.mubr.msk.bf16.vlgmr.msra.gmra.mrb[104].mxu1 %vm770_vm2, %v3743_v38 }
0x15e7   : > { %5643 = vmatprep.mubr.msk.bf16.mxu1 %vm6036_vm0, %v6035_v1 }
0x15fa   : > { %v3535_v39 = vpop.xlane.xlu0 %3534 }
0x15fb   : > { %5931 = vrcp.f32 %v3535_v39 }
0x15fe   : > { %v3695_v43 = vpop.permute.xlu0 %3694 }
0x15ff   : > { %v3700_v45 = vsel %vm770_vm2, %v3695_v43, 0 }
0x1602   : > { %v3693_v47 = vpop.permute.xlu0 %3692 }
0x1605   : > { %v5932_v41 = vpop.eup %5931 }
0x1606   : > { %v3543_v18 = vmul.f32 %v5932_v41, %v5926_v17  ;;  %v3793_v49 = vpop.permute.xlu0 %3792 }
0x1608   : > { %v3546_v44 = vpack.c.bf16 %v3543_v18, %v3543_v18 }
0x160a   : > { %5614 = vmatmul.mubr.msk.bf16.vlgmr.msra.gmra.mrb[96].mxu0 %vm770_vm2, %v3546_v44 }
0x160b   : > { %5624 = vmatpush3.bf16.xpose.msra.mxu0 %v3700_v45  ;;  %5625 = vmatprep.mubr.msk.bf16.mxu0 %vm6036_vm0, %v6035_v1 }
0x160c   : > { %5635 = vmatprep.subr.bf16.mxu0 %v6035_v1 }
0x1612   : > { %5626 = vmatmul.mubr.msk.bf16.vlgmr.msra.gmra.mrb[100].mxu0 %vm770_vm2, %v3693_v47 }
0x1613   : > { %5636 = vmatpush3.bf16.xpose.msra.mxu0 %v3800_v48  ;;  %5637 = vmatprep.mubr.msk.bf16.mxu0 %vm6036_vm0, %v6035_v1 }
0x1614   : > { %5647 = vmatprep.subr.bf16.mxu0 %v6035_v1 }
0x161a   : > { %5638 = vmatmul.mubr.msk.bf16.vlgmr.msra.gmra.mrb[104].mxu0 %vm770_vm2, %v3793_v49 }
0x161b   : > { %5649 = vmatprep.mubr.msk.bf16.mxu0 %vm6036_vm0, %v6035_v1 }
0x16a8   : > { %v6900_v42 = vpop.f32.mrb[96].mxu1 }
0x16a9   : > { %v5609_v50 = vpop.f32.mrb[97].mxu1 }
0x16aa   : > { %v3593_v53 = vpop.f32.mrb[98].mxu1 }
0x16ab   : > { %v5610_v46 = vpop.f32.mrb[99].mxu1 }
0x16b0   : > { %v6902_v54 = vpop.f32.mrb[100].mxu1 }
0x16b1   : > { %v5621_v55 = vpop.f32.mrb[101].mxu1 }
0x16b2   : > { %v3689_v56 = vpop.f32.mrb[102].mxu1 }
0x16b3   : > { %v5622_v58 = vpop.f32.mrb[103].mxu1 }
0x16b9   : > { %v3786_v60 = vpop.f32.mrb[104].mxu1 }
0x16ba   : > { %v3787_v40 = vadd.f32 %v6778_v10, %v3786_v60  ;;  %v5633_v63 = vpop.f32.mrb[105].mxu1 }
0x16bb   : > { %v3789_v0 = vpop.f32.mrb[106].mxu1 }
0x16bc   : > { %v5634_v2 = vpop.f32.mrb[107].mxu1  ;;  %v3845_v5 = vsel %vm770_vm2, %v3787_v40, -inf }
0x16bd   : > { %3846 = vmax.xlane.f32.xlu1 %v3845_v5 }
0x16ce   : > { %4024 = vrot.lane.b32.xlu1 %v6741_v6, %s7285_s16 }
0x16d2   : > { %3878 = vrot.lane.b32.xlu1 %v6741_v6, %s7286_s18 }
0x16dd   : > { %v6910_v20 = vpop.f32.mrb[96].mxu0 }
0x16de   : > { %v5804_v7 = vpack.i.bf16 %v6902_v54, %v6910_v20  ;;  %v5615_v25 = vpop.f32.mrb[97].mxu0 }
0x16df   : > { %v3641_v57 = vpop.f32.mrb[98].mxu0 }
0x16e0   : > { %v5616_v32 = vpop.f32.mrb[99].mxu0 }
0x16e5   : > { %v3736_v61 = vpop.f32.mrb[100].mxu0 }
0x16e6   : > { %v3737_v9 = vadd.f32 %v6778_v10, %v3736_v61  ;;  %v5627_v62 = vpop.f32.mrb[101].mxu0 }
0x16e7   : > { %v3739_v11 = vpop.f32.mrb[102].mxu0 }
0x16e8   : > { %v5628_v12 = vpop.f32.mrb[103].mxu0  ;;  %v3842_v13 = vsel %vm770_vm2, %v3737_v9, -inf }
0x16e9   : > { %3843 = vmax.xlane.f32.xlu0 %v3842_v13 }
0x16ed   : > { %v3836_v4 = vpop.f32.mrb[104].mxu0 }
0x16ee   : > { %v3837_v15 = vadd.f32 %v6778_v10, %v3836_v4  ;;  %v5639_v16 = vpop.f32.mrb[105].mxu0 }
0x16ef   : > { %v3839_v17 = vpop.f32.mrb[106].mxu0 }
0x16f0   : > { %v5640_v19 = vpop.f32.mrb[107].mxu0  ;;  %v3848_v21 = vsel %vm770_vm2, %v3837_v15, -inf }
0x16f1   : > { %3849 = vmax.xlane.f32.xlu0 %v3848_v21 }
0x1707   : > { %3926 = vrot.lane.b32.xlu0 %v6748_v8, %s7286_s18 }
0x174a   : > { %v3847_v22 = vpop.xlane.xlu1 %3846 }
0x174b   : > { %v3852_v24 = vsub.f32 %v3787_v40, %v3847_v22 }
0x174d   : > { %v3856_v26 = vmul.f32 1.442695, %v3852_v24 }
0x174e   : > { %v4025_v27 = vpop.permute.xlu1 %4024 }
0x174f   : > { %5933 = vpow2.f32 %v3856_v26  ;;  %v4030_v46 = vsel %vm770_vm2, %v4025_v27, 0 }
0x1752   : > { %v3879_v28 = vpop.permute.xlu1 %3878 }
0x1753   : > { %v3884_v29 = vsel %vm956_vm3, %v3879_v28, 0 }
0x1754   : > { %5642 = vmatpush3.bf16.msra.mxu1 %v3884_v29 }
0x1755   : > { %5653 = vmatprep.subr.bf16.mxu1 %v6035_v1 }
0x1759   : > { %v5934_v31 = vpop.eup %5933 }
0x175a   : > { %v3863_v33 = vsel %vm770_vm2, %v5934_v31, 0.0 }
0x175b   : > { %3864 = vadd.xlane.f32.xlu1 %v3863_v33 }
0x176c   : > { %4022 = vrot.lane.b32.xlu1 %v6741_v6, %s7287_s20 }
0x1776   : > { %v3844_v34 = vpop.xlane.xlu0 %3843 }
0x1777   : > { %v3851_v36 = vsub.f32 %v3737_v9, %v3844_v34 }
0x1779   : > { %v3854_v37 = vmul.f32 1.442695, %v3851_v36 }
0x177b   : > { %5935 = vpow2.f32 %v3854_v37 }
0x177e   : > { %v3850_v38 = vpop.xlane.xlu0 %3849 }
0x177f   : > { %v3853_v39 = vsub.f32 %v3837_v15, %v3850_v38 }
0x1781   : > { %v3858_v41 = vmul.f32 1.442695, %v3853_v39 }
0x1782   : > { %v3927_v18 = vpop.permute.xlu0 %3926 }
0x1783   : > { %5937 = vpow2.f32 %v3858_v41  ;;  %v3932_v43 = vsel %vm956_vm3, %v3927_v18, 0 }
0x1784   : > { %5648 = vmatpush3.bf16.msra.mxu0 %v3932_v43 }
0x1785   : > { %v5936_v44 = vpop.eup %5935  ;;  %5659 = vmatprep.subr.bf16.mxu0 %v6035_v1 }
0x1786   : > { %v3860_v45 = vsel %vm770_vm2, %v5936_v44, 0.0 }
0x1787   : > { %3861 = vadd.xlane.f32.xlu0 %v3860_v45 }
0x178d   : > { %v5938_v3 = vpop.eup %5937 }
0x178e   : > { %v3866_v47 = vsel %vm770_vm2, %v5938_v3, 0.0 }
0x1790   : > { %3867 = vadd.xlane.f32.xlu1 %v3866_v47 }
0x179d   : > { %3974 = vrot.lane.b32.xlu0 %v6755_v14, %s7286_s18  ;;  %s7290_s18 = smul.u32 24, %s7292_s30 }
0x17a1   : > { %4124 = vrot.lane.b32.xlu1 %v6755_v14, %s7285_s16  ;;  %4074 = vrot.lane.b32.xlu0 %v6748_v8, %s7285_s16 }
0x17a5   : > { %4122 = vrot.lane.b32.xlu1 %v6755_v14, %s7287_s20  ;;  %4072 = vrot.lane.b32.xlu0 %v6748_v8, %s7287_s20 }
0x17e8   : > { %v3865_v48 = vpop.xlane.xlu1 %3864 }
0x17e9   : > { %5939 = vrcp.f32 %v3865_v48 }
0x17ec   : > { %v4023_v55 = vpop.permute.xlu1 %4022 }
0x17f3   : > { %v5940_v49 = vpop.eup %5939 }
0x17f4   : > { %v3873_v50 = vmul.f32 %v5940_v49, %v5934_v31 }
0x17f6   : > { %v3876_v53 = vpack.c.bf16 %v3873_v50, %v3873_v50 }
0x17f8   : > { %5650 = vmatmul.mubr.msk.bf16.vlgmr.msra.gmra.mrb[108].mxu0 %vm770_vm2, %v3876_v53 }
0x17f9   : > { %5660 = vmatpush3.bf16.xpose.msra.mxu0 %v4030_v46  ;;  %5661 = vmatprep.mubr.msk.bf16.mxu0 %vm6036_vm0, %v6035_v1 }
0x17fa   : > { %5671 = vmatprep.subr.bf16.mxu0 %v6035_v1 }
0x1800   : > { %5662 = vmatmul.mubr.msk.bf16.vlgmr.msra.gmra.mrb[112].mxu0 %vm770_vm2, %v4023_v55 }
0x1801   : > { %5673 = vmatprep.mubr.msk.bf16.mxu0 %vm6036_vm0, %v6035_v1 }
0x1814   : > { %v3862_v56 = vpop.xlane.xlu0 %3861 }
0x1815   : > { %5941 = vrcp.f32 %v3862_v56 }
0x1818   : > { %v3975_v63 = vpop.permute.xlu0 %3974 }
0x1819   : > { %v3980_v25 = vsel %vm956_vm3, %v3975_v63, 0 }
0x181c   : > { %v4075_v9 = vpop.permute.xlu0 %4074 }
0x181d   : > { %v3868_v58 = vpop.xlane.xlu1 %3867  ;;  %v4080_v11 = vsel %vm770_vm2, %v4075_v9, 0 }
0x181e   : > { %5943 = vrcp.f32 %v3868_v58 }
0x181f   : > { %v5942_v60 = vpop.eup %5941 }
0x1820   : > { %v3872_v40 = vmul.f32 %v5942_v60, %v5936_v44  ;;  %v4073_v12 = vpop.permute.xlu0 %4072 }
0x1821   : > { %v4125_v0 = vpop.permute.xlu1 %4124 }
0x1822   : > { %v4130_v2 = vsel %vm770_vm2, %v4125_v0, 0  ;;  %v3875_v5 = vpack.c.bf16 %v3872_v40, %v3872_v40 }
0x1823   : > { %5672 = vmatpush3.bf16.xpose.msra.mxu0 %v4130_v2 }
0x1824   : > { %5644 = vmatmul.mubr.msk.bf16.vlgmr.msra.gmra.mrb[108].mxu1 %vm770_vm2, %v3875_v5  ;;  %5683 = vmatprep.subr.bf16.mxu0 %v6035_v1 }
0x1825   : > { %5654 = vmatpush3.bf16.msra.mxu1 %v3980_v25  ;;  %5655 = vmatprep.mubr.msk.bf16.mxu1 %vm6036_vm0, %v6035_v1  ;;  %v4123_v61 = vpop.permute.xlu1 %4122 }
0x1826   : > { %5665 = vmatprep.subr.bf16.mxu1 %v6035_v1 }
0x1828   : > { %v5944_v57 = vpop.eup %5943 }
0x1829   : > { %v3874_v32 = vmul.f32 %v5944_v57, %v5938_v3 }
0x182a   : > { %5674 = vmatmul.mubr.msk.bf16.vlgmr.msra.gmra.mrb[116].mxu0 %vm770_vm2, %v4123_v61 }
0x182b   : > { %v3877_v62 = vpack.c.bf16 %v3874_v32, %v3874_v32  ;;  %5685 = vmatprep.mubr.msk.bf16.mxu0 %vm6036_vm0, %v6035_v1 }
0x182d   : > { %5656 = vmatmul.mubr.msk.bf16.vlgmr.msra.gmra.mrb[112].mxu1 %vm770_vm2, %v3877_v62 }
0x182e   : > { %5666 = vmatpush3.bf16.xpose.msra.mxu1 %v4080_v11  ;;  %5667 = vmatprep.mubr.msk.bf16.mxu1 %vm6036_vm0, %v6035_v1 }
0x182f   : > { %5677 = vmatprep.subr.bf16.mxu1 %v6035_v1 }
0x1835   : > { %5668 = vmatmul.mubr.msk.bf16.vlgmr.msra.gmra.mrb[116].mxu1 %vm770_vm2, %v4073_v12 }
0x1836   : > { %5679 = vmatprep.mubr.msk.bf16.mxu1 %vm6036_vm0, %v6035_v1 }
0x18cb   : > { %v6965_v13 = vpop.f32.mrb[108].mxu0 }
0x18cc   : > { %v5651_v4 = vpop.f32.mrb[109].mxu0 }
0x18cd   : > { %v3971_v15 = vpop.f32.mrb[110].mxu0 }
0x18ce   : > { %v5652_v16 = vpop.f32.mrb[111].mxu0 }
0x18d3   : > { %v4066_v17 = vpop.f32.mrb[112].mxu0 }
0x18d4   : > { %v4067_v19 = vadd.f32 %v6778_v10, %v4066_v17  ;;  %v5663_v21 = vpop.f32.mrb[113].mxu0 }
0x18d5   : > { %v4069_v22 = vpop.f32.mrb[114].mxu0 }
0x18d6   : > { %v5664_v24 = vpop.f32.mrb[115].mxu0  ;;  %v4172_v26 = vsel %vm770_vm2, %v4067_v19, -inf }
0x18d7   : > { %4173 = vmax.xlane.f32.xlu0 %v4172_v26  ;;  %v5983_v26 = vld [vmem:[%s7251_s4 + $0x18] sm:$0xff]  }
0x18f7   : > { %v3920_v27 = vpop.f32.mrb[108].mxu1 }
0x18f8   : > { %v5645_v28 = vpop.f32.mrb[109].mxu1 }
0x18f9   : > { %v3923_v29 = vpop.f32.mrb[110].mxu1  ;;  %v5985_v28 = vld [vmem:[%s7251_s4 + $0x8] sm:$0xff]  }
0x18fa   : > { %v5646_v31 = vpop.f32.mrb[111].mxu1 }
0x18fd   : > { %v4166_v33 = vpop.f32.mrb[116].mxu0 }
0x18fe   : > { %v4167_v34 = vadd.f32 %v6778_v10, %v4166_v33  ;;  %v5675_v36 = vpop.f32.mrb[117].mxu0 }
0x18ff   : > { %v4169_v37 = vpop.f32.mrb[118].mxu0 }
0x1900   : > { %v6970_v38 = vpop.f32.mrb[112].mxu1  ;;  %v5676_v39 = vpop.f32.mrb[119].mxu0  ;;  %v4178_v41 = vsel %vm770_vm2, %v4167_v34, -inf }
0x1901   : > { %v5809_v18 = vpack.i.bf16 %v6970_v38, %v6965_v13  ;;  %4179 = vmax.xlane.f32.xlu0 %v4178_v41  ;;  %v5657_v43 = vpop.f32.mrb[113].mxu1 }
0x1902   : > { %v4019_v44 = vpop.f32.mrb[114].mxu1 }
0x1903   : > { %v5658_v45 = vpop.f32.mrb[115].mxu1 }
0x1908   : > { %v4116_v3 = vpop.f32.mrb[116].mxu1 }
0x1909   : > { %v4117_v47 = vadd.f32 %v6778_v10, %v4116_v3  ;;  %v5669_v48 = vpop.f32.mrb[117].mxu1 }
0x190a   : > { %v4119_v49 = vpop.f32.mrb[118].mxu1 }
0x190b   : > { %v5670_v50 = vpop.f32.mrb[119].mxu1  ;;  %v4175_v53 = vsel %vm770_vm2, %v4117_v47, -inf }
0x190c   : > { %4176 = vmax.xlane.f32.xlu1 %v4175_v53 }
0x191d   : > { %4208 = vrot.lane.b32.xlu1 %v6741_v6, %s7288_s19 }
0x1964   : > { %v4174_v46 = vpop.xlane.xlu0 %4173 }
0x1965   : > { %v4181_v55 = vsub.f32 %v4067_v19, %v4174_v46  ;;  %v5982_v19 = vld [vmem:[%s7251_s4 + $0x10] sm:$0xff]   ;;  %v5986_v46 = vld [vmem:[%s7251_s4 + $0x20] sm:$0xff]  }
0x1967   : > { %v4184_v56 = vmul.f32 1.442695, %v4181_v55 }
0x1969   : > { %5945 = vpow2.f32 %v4184_v56 }
0x1973   : > { %v5946_v58 = vpop.eup %5945 }
0x1974   : > { %v4190_v60 = vsel %vm770_vm2, %v5946_v58, 0.0 }
0x1975   : > { %4191 = vadd.xlane.f32.xlu0 %v4190_v60 }
0x198e   : > { %v4180_v40 = vpop.xlane.xlu0 %4179 }
0x198f   : > { %v4183_v63 = vsub.f32 %v4167_v34, %v4180_v40 }
0x1991   : > { %v4188_v10 = vmul.f32 1.442695, %v4183_v63 }
0x1993   : > { %5947 = vpow2.f32 %v4188_v10 }
0x1999   : > { %v4177_v0 = vpop.xlane.xlu1 %4176 }
0x199a   : > { %v4182_v2 = vsub.f32 %v4117_v47, %v4177_v0 }
0x199c   : > { %v4186_v5 = vmul.f32 1.442695, %v4182_v2 }
0x199d   : > { %v5948_v25 = vpop.eup %5947  ;;  %v4209_v57 = vpop.permute.xlu1 %4208 }
0x199e   : > { %5949 = vpow2.f32 %v4186_v5  ;;  %v4214_v6 = vsel %vm956_vm3, %v4209_v57, 0  ;;  %v4196_v32 = vsel %vm770_vm2, %v5948_v25, 0.0 }
0x199f   : > { %4197 = vadd.xlane.f32.xlu0 %v4196_v32  ;;  %5678 = vmatpush3.bf16.msra.mxu1 %v4214_v6 }
0x19a0   : > { %5689 = vmatprep.subr.bf16.mxu1 %v6035_v1 }
0x19a8   : > { %v5950_v61 = vpop.eup %5949 }
0x19a9   : > { %v4193_v9 = vsel %vm770_vm2, %v5950_v61, 0.0 }
0x19aa   : > { %4194 = vadd.xlane.f32.xlu1 %v4193_v9 }
0x19b5   : > { %4256 = vrot.lane.b32.xlu0 %v6748_v8, %s7288_s19 }
0x19b9   : > { %4367 = vrot.lane.b32.xlu0 %v3920_v27, %s6049_s24  ;;  %v5984_v27 = vld [vmem:[%s7251_s4] sm:$0xff]  }
0x19bb   : > { %4304 = vrot.lane.b32.xlu1 %v6755_v14, %s7288_s19 }
0x19bd   : > { %5805 = vrot.lane.b32.xlu0 %v5804_v7, %s6048_s21 }
0x19bf   : > { %4355 = vrot.lane.b32.xlu1 %v6900_v42, %s6048_s21  ;;  %s481_s21 = scalar_lea.vmem %s7261_s14, %s7290_s18 }
0x1a02   : > { %v4192_v62 = vpop.xlane.xlu0 %4191 }
0x1a03   : > { %5951 = vrcp.f32 %v4192_v62 }
0x1a0d   : > { %v5952_v11 = vpop.eup %5951 }
0x1a0e   : > { %v4202_v12 = vmul.f32 %v5952_v11, %v5946_v58  ;;  %v5990_v11 = vld [vmem:[%s7255_s8 + $0x8] sm:$0xff]  }
0x1a10   : > { %v4205_v4 = vpack.c.bf16 %v4202_v12, %v4202_v12  ;;  %v5991_v12 = vld [vmem:[%s7255_s8 + $0x18] sm:$0xff]  }
0x1a12   : > { %5680 = vmatmul.mubr.msk.bf16.vlgmr.msra.gmra.mrb[120].mxu1 %vm770_vm2, %v4205_v4 }
0x1a13   : > { %5691 = vmatprep.mubr.msk.bf16.mxu1 %vm6036_vm0, %v6035_v1 }
0x1a2c   : > { %v4198_v8 = vpop.xlane.xlu0 %4197 }
0x1a2d   : > { %5953 = vrcp.f32 %v4198_v8  ;;  %v5992_v8 = vld [vmem:[%s7252_s5] ss:$0 sm:$0xff] }
0x1a30   : > { %v4257_v14 = vpop.permute.xlu0 %4256 }
0x1a31   : > { %v4262_v15 = vsel %vm956_vm3, %v4257_v14, 0 }
0x1a32   : > { %5684 = vmatpush3.bf16.msra.mxu0 %v4262_v15 }
0x1a33   : > { %5695 = vmatprep.subr.bf16.mxu0 %v6035_v1 }
0x1a34   : > { %v4368_v50 = vpop.permute.xlu0 %4367 }
0x1a37   : > { %v5954_v54 = vpop.eup %5953  ;;  %v4195_v42 = vpop.xlane.xlu1 %4194 }
0x1a38   : > { %5955 = vrcp.f32 %v4195_v42  ;;  %v4204_v20 = vmul.f32 %v5954_v54, %v5948_v25  ;;  %v5806_v55 = vpop.permute.xlu0 %5805 }
0x1a39   : > { %v5808_v58 = vunpack.i.h.bf16 %v5806_v55  ;;  %v5807_v60 = vunpack.i.l.bf16 %v5806_v55 }
0x1a3a   : > { %v4207_v17 = vpack.c.bf16 %v4204_v20, %v4204_v20 }
0x1a3b   : > { %v4305_v7 = vpop.permute.xlu1 %4304  ;;  %v4390_v0 = vsel %vm770_vm2, %v6849_v52, %v5808_v58  ;;  %v4389_v2 = vsel %vm770_vm2, %v6839_v35, %v5807_v60  ;;  %v5988_v35 = vld [vmem:[%s7255_s8] sm:$0xff]   ;;  %v5989_v52 = vld [vmem:[%s7255_s8 + $0x10] sm:$0xff]  }
0x1a3c   : > { %v4310_v16 = vsel %vm956_vm3, %v4305_v7, 0  ;;  %v5995_v58 = vld [vmem:[%s7253_s6] ss:$0 sm:$0xff] }
0x1a3d   : > { %5690 = vmatpush3.bf16.msra.mxu1 %v4310_v16 }
0x1a3e   : > { %5703 = vmatprep.subr.bf16.mxu1 %v6035_v1 }
0x1a3f   : > { %v4356_v48 = vpop.permute.xlu1 %4355 }
0x1a40   : > { %5692 = vmatmul.mubr.msk.bf16.vlgmr.msra.gmra.mrb[124].mxu1 %vm770_vm2, %v4207_v17  ;;  %v4388_v49 = vsel %vm770_vm2, %v6837_v30, %v4356_v48  ;;  %v5987_v30 = vld [vmem:[%s7251_s4 + $0x28] sm:$0xff]  }
0x1a41   : > { %5704 = vmatpush3.bf16.msra.mxu1 %v5982_v19  ;;  %5707 = vmatprep.mubr.msk.bf16.mxu1 %vm6036_vm0, %v6035_v1  ;;  %v4391_v53 = vsel %vm2125_vm4, %v4388_v49, %v4368_v50  ;;  %v5993_v19 = vld [vmem:[%s7252_s5 + $0x1] ss:$0 sm:$0xff] }
0x1a42   : > { %v5956_v21 = vpop.eup %5955  ;;  %5705 = vmatprep.subr.bf16.mxu1 %v6035_v1 }
0x1a43   : > { %v4203_v22 = vmul.f32 %v5956_v21, %v5950_v61 }
0x1a45   : > { %v4206_v24 = vpack.c.bf16 %v4203_v22, %v4203_v22  ;;  %5706 = vmatpush3.bf16.msra.mxu1 %v5983_v26  ;;  %v5994_v22 = vld [vmem:[%s7252_s5 + $0x2] ss:$0 sm:$0xff] }
0x1a46   : > { %5719 = vmatprep.subr.bf16.mxu1 %v6035_v1 }
0x1a47   : > { %5686 = vmatmul.mubr.msk.bf16.vlgmr.msra.gmra.mrb[120].mxu0 %vm770_vm2, %v4206_v24 }
0x1a48   : > { %5696 = vmatpush3.bf16.msra.mxu0 %v5984_v27  ;;  %5699 = vmatprep.mubr.msk.bf16.mxu0 %vm6036_vm0, %v6035_v1 }
0x1a49   : > { %5697 = vmatprep.subr.bf16.mxu0 %v6035_v1 }
0x1a4c   : > { %5698 = vmatpush3.bf16.msra.mxu0 %v5985_v28 }
0x1a4d   : > { %5711 = vmatprep.subr.bf16.mxu0 %v6035_v1 }
0x1ae5   : > { %v4250_v29 = vpop.f32.mrb[120].mxu1 }
0x1ae6   : > { %4379 = vrot.lane.b32.xlu1 %v4250_v29, %s7289_s17  ;;  %v5681_v31 = vpop.f32.mrb[121].mxu1 }
0x1ae7   : > { %v4253_v33 = vpop.f32.mrb[122].mxu1 }
0x1ae8   : > { %v5682_v34 = vpop.f32.mrb[123].mxu1 }
0x1aea   : > { %5810 = vrot.lane.b32.xlu1 %v5809_v18, %s6049_s24 }
0x1b13   : > { %v4346_v36 = vpop.f32.mrb[124].mxu1 }
0x1b14   : > { %v5693_v37 = vpop.f32.mrb[125].mxu1 }
0x1b15   : > { %v4349_v39 = vpop.f32.mrb[126].mxu1 }
0x1b16   : > { %v5694_v41 = vpop.f32.mrb[127].mxu1 }
0x1b1a   : > { %v4298_v43 = vpop.f32.mrb[120].mxu0 }
0x1b1b   : > { %v5814_v44 = vpack.i.bf16 %v4346_v36, %v4298_v43  ;;  %v5687_v45 = vpop.f32.mrb[121].mxu0 }
0x1b1c   : > { %v4301_v3 = vpop.f32.mrb[122].mxu0 }
0x1b1d   : > { %v5688_v47 = vpop.f32.mrb[123].mxu0  ;;  %5815 = vrot.lane.b32.xlu0 %v5814_v44, %s7289_s17 }
0x1b58   : > { %v4380_v13 = vpop.permute.xlu1 %4379 }
0x1b59   : > { %v4394_v38 = vsel %vm2129_vm5, %v4391_v53, %v4380_v13 }
0x1b5a   : > { %v4397_v18 = vpack.c.bf16 %v4394_v38, %v4394_v38 }
0x1b5c   : > { %5700 = vmatmul.mubr.msk.bf16.vlgmr.msra.gmra.mrb[124].mxu0 %vm604_vm1, %v4397_v18  ;;  %v5811_v56 = vpop.permute.xlu1 %5810 }
0x1b5d   : > { %5712 = vmatpush3.bf16.msra.mxu0 %v5986_v46  ;;  %5715 = vmatprep.mubr.msk.bf16.mxu0 %vm6036_vm0, %v6035_v1  ;;  %v5813_v40 = vunpack.i.h.bf16 %v5811_v56  ;;  %v5812_v63 = vunpack.i.l.bf16 %v5811_v56 }
0x1b5e   : > { %5713 = vmatprep.subr.bf16.mxu0 %v6035_v1 }
0x1b5f   : > { %v4393_v57 = vsel %vm2125_vm4, %v4390_v0, %v5813_v40  ;;  %v4392_v6 = vsel %vm2125_vm4, %v4389_v2, %v5812_v63  ;;  %v5996_v40 = vld [vmem:[%s7254_s7] ss:$0 sm:$0xff]  ;;  %v5998_v2 = vld [vmem:[%s7255_s8 + $0x28] sm:$0xff]  }
0x1b60   : > { %v5997_v0 = vld [vmem:[%s7255_s8 + $0x20] sm:$0xff]  }
0x1b61   : > { %5714 = vmatpush3.bf16.msra.mxu0 %v5987_v30 }
0x1b62   : > { %5727 = vmatprep.subr.bf16.mxu0 %v6035_v1 }
0x1b8f   : > { %v5816_v10 = vpop.permute.xlu0 %5815 }
0x1b90   : > { %v5818_v5 = vunpack.i.h.bf16 %v5816_v10  ;;  %v5817_v25 = vunpack.i.l.bf16 %v5816_v10 }
0x1b92   : > { %v4396_v32 = vsel %vm2129_vm5, %v4393_v57, %v5818_v5  ;;  %v4395_v61 = vsel %vm2129_vm5, %v4392_v6, %v5817_v25 }
0x1b93   : > { %v4399_v9 = vpack.c.bf16 %v4396_v32, %v4396_v32  ;;  %v4398_v62 = vpack.c.bf16 %v4395_v61, %v4395_v61 }
0x1b95   : > { %5708 = vmatmul.mubr.msk.bf16.vlgmr.msra.gmra.mrb[128].mxu1 %vm604_vm1, %v4398_v62  ;;  %5716 = vmatmul.mubr.msk.bf16.vlgmr.msra.gmra.mrb[128].mxu0 %vm604_vm1, %v4399_v9 }
0x1b96   : > { %5720 = vmatpush3.bf16.msra.mxu1 %v5988_v35  ;;  %5723 = vmatprep.mubr.msk.bf16.mxu1 %vm6036_vm0, %v6035_v1  ;;  %v5999_v35 = vld [vmem:[%s7253_s6 + $0x1] ss:$0 sm:$0xff] }
0x1b97   : > { %5721 = vmatprep.subr.bf16.mxu1 %v6035_v1  ;;  %5728 = vmatpush3.bf16.msra.mxu0 %v5989_v52 }
0x1b98   : > { %5729 = vmatprep.subr.bf16.mxu0 %v6035_v1  ;;  %5731 = vmatprep.mubr.msk.bf16.mxu0 %vm6036_vm0, %v6035_v1 }
0x1b9a   : > { %5722 = vmatpush3.bf16.msra.mxu1 %v5990_v11 }
0x1b9b   : > { %5735 = vmatprep.subr.bf16.mxu1 %v6035_v1  ;;  %5730 = vmatpush3.bf16.msra.mxu0 %v5991_v12 }
0x1b9c   : > { %5743 = vmatprep.subr.bf16.mxu0 %v6035_v1 }
0x1c2f   : > { %v4437_v4 = vpop.f32.mrb[124].mxu0 }
0x1c30   : > { %v4438_v14 = vadd.f32 %v5992_v8, %v4437_v4  ;;  %v5701_v15 = vpop.f32.mrb[125].mxu0  ;;  %v6000_v4 = vld [vmem:[%s7254_s7 + $0x1] ss:$0 sm:$0xff] }
0x1c31   : > { %v4440_v54 = vpop.f32.mrb[126].mxu0 }
0x1c32   : > { %v4529_v42 = vadd.f32 %v4438_v14, %v6700_v23  ;;  %v5702_v20 = vpop.f32.mrb[127].mxu0  ;;  %v6001_v14 = vld [vmem:[%s7253_s6 + $0x2] ss:$0 sm:$0xff] }
0x1c34   : > { %v4532_v7 = vsel %vm604_vm1, %v4529_v42, 0.0 }
0x1c35   : > { %4533 = vadd.xlane.f32.xlu1 %v4532_v7  ;;  %v6003_v7 = vld [vmem:[%s7257_s10] sm:$0xff]  }
0x1c68   : > { %v4480_v16 = vpop.f32.mrb[128].mxu1  ;;  %v4523_v17 = vpop.f32.mrb[128].mxu0 }
0x1c69   : > { %v4481_v21 = vadd.f32 %v5993_v19, %v4480_v16  ;;  %v4524_v24 = vadd.f32 %v5994_v22, %v4523_v17  ;;  %v5709_v26 = vpop.f32.mrb[129].mxu1  ;;  %v5717_v27 = vpop.f32.mrb[129].mxu0  ;;  %v6004_v17 = vld [vmem:[%s7257_s10 + $0x8] sm:$0xff]   ;;  %v6005_v19 = vld [vmem:[%s7257_s10 + $0x20] sm:$0xff]  }
0x1c6a   : > { %v4483_v28 = vpop.f32.mrb[130].mxu1  ;;  %v4526_v23 = vpop.f32.mrb[130].mxu0  ;;  %v6007_v22 = vld [vmem:[%s7257_s10 + $0x28] sm:$0xff]   ;;  %v6009_v26 = vld [vmem:[%s7257_s10 + $0x30] sm:$0xff]   ;;  %v6010_v27 = vld [vmem:[%s7257_s10 + $0x38] sm:$0xff]  }
0x1c6b   : > { %v4530_v29 = vadd.f32 %v4481_v21, %v6714_v51  ;;  %v5710_v31 = vpop.f32.mrb[131].mxu1  ;;  %v5718_v33 = vpop.f32.mrb[131].mxu0  ;;  %v4531_v34 = vadd.f32 %v4524_v24, %v6731_v59  ;;  %v6006_v21 = vld [vmem:[%s7257_s10 + $0x10] sm:$0xff]   ;;  %v6008_v24 = vld [vmem:[%s7257_s10 + $0x18] sm:$0xff]   ;;  %v6011_v23 = vld [vmem:[%s7256_s9] ss:$0 sm:$0xff] }
0x1c6d   : > { %v4535_v36 = vsel %vm604_vm1, %v4530_v29, 0.0  ;;  %v4538_v37 = vsel %vm604_vm1, %v4531_v34, 0.0 }
0x1c6e   : > { %4536 = vadd.xlane.f32.xlu0 %v4535_v36 }
0x1c72   : > { %4539 = vadd.xlane.f32.xlu0 %v4538_v37 }
0x1cc2   : > { %v4534_v39 = vpop.xlane.xlu1 %4533 }
0x1cc3   : > { %v4541_v41 = vmul.f32 0.03125, %v4534_v39  ;;  %v6012_v39 = vld [vmem:[%s7257_s10 + $0x40] sm:$0xff]  }
0x1cc5   : > { %v4544_v43 = vsub.f32 %v4529_v42, %v4541_v41  ;;  %v6002_v42 = vld [vmem:[%s7254_s7 + $0x2] ss:$0 sm:$0xff]  ;;  %v6013_v41 = vld [vmem:[%s7257_s10 + $0x48] sm:$0xff]  }
0x1cc7   : > { %v4547_v44 = vmul.f32 %v4544_v43, %v4544_v43 }
0x1cc9   : > { %v4550_v45 = vsel %vm604_vm1, %v4547_v44, 0.0  ;;  %v6015_v44 = vld [vmem:[%s7257_s10 + $0x58] sm:$0xff]  }
0x1cca   : > { %4551 = vadd.xlane.f32.xlu1 %v4550_v45 }
0x1cfb   : > { %v4537_v3 = vpop.xlane.xlu0 %4536 }
0x1cfc   : > { %v4542_v47 = vmul.f32 0.03125, %v4537_v3  ;;  %v6016_v3 = vld [vmem:[%s7256_s9 + $0x1] ss:$0 sm:$0xff] }
0x1cfe   : > { %v4545_v51 = vsub.f32 %v4530_v29, %v4542_v47 }
0x1cff   : > { %v4540_v48 = vpop.xlane.xlu0 %4539 }
0x1d00   : > { %v4543_v49 = vmul.f32 0.03125, %v4540_v48  ;;  %v4548_v50 = vmul.f32 %v4545_v51, %v4545_v51 }
0x1d02   : > { %v4546_v59 = vsub.f32 %v4531_v34, %v4543_v49  ;;  %v4553_v53 = vsel %vm604_vm1, %v4548_v50, 0.0 }
0x1d03   : > { %4554 = vadd.xlane.f32.xlu0 %v4553_v53 }
0x1d04   : > { %v4549_v13 = vmul.f32 %v4546_v59, %v4546_v59 }
0x1d06   : > { %v4556_v38 = vsel %vm604_vm1, %v4549_v13, 0.0 }
0x1d07   : > { %4557 = vadd.xlane.f32.xlu1 %v4556_v38 }
0x1d57   : > { %v4552_v18 = vpop.xlane.xlu1 %4551 }
0x1d58   : > { %v4559_v46 = vmul.f32 0.03125, %v4552_v18 }
0x1d5a   : > { %v4562_v30 = vadd.f32 1e-05, %v4559_v46 }
0x1d5c   : > { %5957 = vrsqrt.f32 %v4562_v30 }
0x1d66   : > { %v5958_v55 = vpop.eup %5957 }
0x1d67   : > { %v4568_v56 = vmul.f32 %v5958_v55, %v4544_v43  ;;  %v6014_v43 = vld [vmem:[%s7257_s10 + $0x50] sm:$0xff]  }
0x1d69   : > { %v4571_v60 = vmul.f32 %v5995_v58, %v4568_v56  ;;  %v6018_v58 = vld [vmem:[%s7258_s11] ss:$0 sm:$0xff] }
0x1d6b   : > { %v7099_v63 = vadd.f32 %v5996_v40, %v4571_v60 }
0x1d6d   : > { %v4577_v10 = vpack.c.bf16 %v7099_v63, %v7099_v63 }
0x1d6f   : > { %5724 = vmatmul.mubr.msk.bf16.vlgmr.msra.gmra.mrb[132].mxu1 %vm604_vm1, %v4577_v10 }
0x1d70   : > { %5736 = vmatpush3.bf16.msra.mxu1 %v5997_v0  ;;  %5739 = vmatprep.mubr.msk.bf16.mxu1 %vm6036_vm0, %v6035_v1 }
0x1d71   : > { %5737 = vmatprep.subr.bf16.mxu1 %v6035_v1 }
0x1d74   : > { %5738 = vmatpush3.bf16.msra.mxu1 %v5998_v2 }
0x1d75   : > { %5755 = vmatprep.subr.bf16.mxu1 %v6035_v1 }
0x1d90   : > { %v4555_v5 = vpop.xlane.xlu0 %4554 }
0x1d91   : > { %v4560_v25 = vmul.f32 0.03125, %v4555_v5 }
0x1d93   : > { %v4563_v57 = vadd.f32 1e-05, %v4560_v25 }
0x1d94   : > { %v4558_v6 = vpop.xlane.xlu1 %4557 }
0x1d95   : > { %5959 = vrsqrt.f32 %v4563_v57  ;;  %v4561_v32 = vmul.f32 0.03125, %v4558_v6  ;;  %v6019_v57 = vld [vmem:[%s7258_s11 + $0x1] ss:$0 sm:$0xff] }
0x1d97   : > { %v4564_v61 = vadd.f32 1e-05, %v4561_v32 }
0x1d99   : > { %5961 = vrsqrt.f32 %v4564_v61 }
0x1d9f   : > { %v5960_v9 = vpop.eup %5959 }
0x1da0   : > { %v4569_v62 = vmul.f32 %v5960_v9, %v4545_v51 }
0x1da2   : > { %v4572_v52 = vmul.f32 %v5999_v35, %v4569_v62 }
0x1da3   : > { %v5962_v11 = vpop.eup %5961 }
0x1da4   : > { %v4570_v12 = vmul.f32 %v5962_v11, %v4546_v59  ;;  %v7120_v8 = vadd.f32 %v6000_v4, %v4572_v52 }
0x1da6   : > { %v4573_v15 = vmul.f32 %v6001_v14, %v4570_v12  ;;  %v4578_v54 = vpack.c.bf16 %v7120_v8, %v7120_v8 }
0x1da8   : > { %5732 = vmatmul.mubr.msk.bf16.vlgmr.msra.gmra.mrb[132].mxu0 %vm604_vm1, %v4578_v54  ;;  %v7131_v20 = vadd.f32 %v6002_v42, %v4573_v15 }
0x1da9   : > { %5744 = vmatpush3.bf16.msra.mxu0 %v6003_v7  ;;  %5751 = vmatprep.mubr.msk.bf16.mxu0 %vm6036_vm0, %v6035_v1 }
0x1daa   : > { %v4579_v16 = vpack.c.bf16 %v7131_v20, %v7131_v20  ;;  %5745 = vmatprep.subr.bf16.mxu0 %v6035_v1 }
0x1dac   : > { %5740 = vmatmul.mubr.msk.bf16.vlgmr.msra.gmra.mrb[136].mxu1 %vm604_vm1, %v4579_v16 }
0x1dad   : > { %5746 = vmatpush3.bf16.msra.mxu0 %v6004_v17  ;;  %5756 = vmatpush3.bf16.msra.mxu1 %v6005_v19 }
0x1dae   : > { %5747 = vmatprep.subr.bf16.mxu0 %v6035_v1  ;;  %5757 = vmatprep.subr.bf16.mxu1 %v6035_v1 }
0x1daf   : > { %5763 = vmatprep.mubr.msk.bf16.mxu1 %vm6036_vm0, %v6035_v1 }
0x1db1   : > { %5748 = vmatpush3.bf16.msra.mxu0 %v6006_v21  ;;  %5758 = vmatpush3.bf16.msra.mxu1 %v6007_v22 }
0x1db2   : > { %5749 = vmatprep.subr.bf16.mxu0 %v6035_v1  ;;  %5759 = vmatprep.subr.bf16.mxu1 %v6035_v1 }
0x1db5   : > { %5750 = vmatpush3.bf16.msra.mxu0 %v6008_v24  ;;  %5760 = vmatpush3.bf16.msra.mxu1 %v6009_v26 }
0x1db6   : > { %5767 = vmatprep.subr.bf16.mxu0 %v6035_v1  ;;  %5761 = vmatprep.subr.bf16.mxu1 %v6035_v1 }
0x1db9   : > { %5762 = vmatpush3.bf16.msra.mxu1 %v6010_v27 }
0x1e42   : > { %v4617_v28 = vpop.f32.mrb[132].mxu1 }
0x1e43   : > { %v4618_v29 = vadd.f32 %v6011_v23, %v4617_v28  ;;  %v5725_v31 = vpop.f32.mrb[133].mxu1 }
0x1e44   : > { %v4620_v33 = vpop.f32.mrb[134].mxu1 }
0x1e45   : > { %v4709_v34 = vmax.f32 %v4618_v29, 0.0  ;;  %v5726_v36 = vpop.f32.mrb[135].mxu1 }
0x1e47   : > { %v4712_v37 = vpack.c.bf16 %v4709_v34, %v4709_v34 }
0x1e49   : > { %5752 = vmatmul.mubr.msk.bf16.vlgmr.msra.gmra.mrb[136].mxu0 %vm2638_vm6, %v4712_v37 }
0x1e4a   : > { %5768 = vmatpush3.bf16.msra.mxu0 %v6012_v39  ;;  %5775 = vmatprep.mubr.msk.bf16.mxu0 %vm6036_vm0, %v6035_v1  ;;  %v6021_v39 = vld [vmem:[%s7259_s12] ss:$0 sm:$0xff] }
0x1e4b   : > { %5769 = vmatprep.subr.bf16.mxu0 %v6035_v1 }
0x1e4e   : > { %5770 = vmatpush3.bf16.msra.mxu0 %v6013_v41 }
0x1e4f   : > { %5771 = vmatprep.subr.bf16.mxu0 %v6035_v1 }
0x1e52   : > { %5772 = vmatpush3.bf16.msra.mxu0 %v6014_v43  ;;  %v6022_v43 = vld [vmem:[%s7260_s13] ss:$0 sm:$0xff] }
0x1e53   : > { %5773 = vmatprep.subr.bf16.mxu0 %v6035_v1  ;;  %v6017_v1 = vld [vmem:[%s7256_s9 + $0x2] ss:$0 sm:$0xff] }
0x1e56   : > { %5774 = vmatpush3.bf16.msra.mxu0 %v6015_v44 }
0x1e7b   : > { %v4660_v45 = vpop.f32.mrb[132].mxu0 }
0x1e7c   : > { %v4661_v47 = vadd.f32 %v6016_v3, %v4660_v45  ;;  %v5733_v51 = vpop.f32.mrb[133].mxu0 }
0x1e7d   : > { %v4663_v48 = vpop.f32.mrb[134].mxu0 }
0x1e7e   : > { %v4710_v49 = vmax.f32 %v4661_v47, 0.0  ;;  %v5734_v50 = vpop.f32.mrb[135].mxu0 }
0x1e7f   : > { %v4703_v59 = vpop.f32.mrb[136].mxu1 }
0x1e80   : > { %v4713_v53 = vpack.c.bf16 %v4710_v49, %v4710_v49  ;;  %v4704_v13 = vadd.f32 %v6017_v1, %v4703_v59  ;;  %v5741_v38 = vpop.f32.mrb[137].mxu1 }
0x1e81   : > { %v4706_v18 = vpop.f32.mrb[138].mxu1  ;;  %v6024_v38 = vld [vmem:[%s7260_s13 + $0x1] ss:$0 sm:$0xff] }
0x1e82   : > { %v4711_v46 = vmax.f32 %v4704_v13, 0.0  ;;  %v5742_v30 = vpop.f32.mrb[139].mxu1  ;;  %5764 = vmatmul.mubr.msk.bf16.vlgmr.msra.gmra.mrb[140].mxu1 %vm2638_vm6, %v4713_v53  ;;  %v6023_v53 = vld [vmem:[%s7259_s12 + $0x1] ss:$0 sm:$0xff] }
0x1e83   : > { %v6025_v30 = vld [vmem:[%s7259_s12 + $0x2] ss:$0 sm:$0xff] }
0x1e84   : > { %v4714_v55 = vpack.c.bf16 %v4711_v46, %v4711_v46 }
0x1e86   : > { %5776 = vmatmul.mubr.msk.bf16.vlgmr.msra.gmra.mrb[140].mxu0 %vm2638_vm6, %v4714_v55 }
0x1f1c   : > { %v4752_v56 = vpop.f32.mrb[136].mxu0 }
0x1f1d   : > { %v4753_v60 = vadd.f32 %v6018_v58, %v4752_v56  ;;  %v5753_v40 = vpop.f32.mrb[137].mxu0  ;;  %v6026_v56 = vld [vmem:[%s7260_s13 + $0x2] ss:$0 sm:$0xff] }
0x1f1e   : > { %v4755_v10 = vpop.f32.mrb[138].mxu0 }
0x1f1f   : > { %v4844_v0 = vadd.f32 %v4753_v60, %v7099_v63  ;;  %v5754_v2 = vpop.f32.mrb[139].mxu0  ;;  %v6020_v63 = vld [vmem:[%s7258_s11 + $0x2] ss:$0 sm:$0xff] }
0x1f21   : > { %v4847_v5 = vsel %vm604_vm1, %v4844_v0, 0.0 }
0x1f22   : > { %4848 = vadd.xlane.f32.xlu0 %v4847_v5 }
0x1f55   : > { %v4795_v25 = vpop.f32.mrb[140].mxu1 }
0x1f56   : > { %v4796_v6 = vadd.f32 %v6019_v57, %v4795_v25  ;;  %v5765_v32 = vpop.f32.mrb[141].mxu1 }
0x1f57   : > { %v4798_v61 = vpop.f32.mrb[142].mxu1 }
0x1f58   : > { %v4845_v9 = vadd.f32 %v4796_v6, %v7120_v8  ;;  %v5766_v62 = vpop.f32.mrb[143].mxu1 }
0x1f59   : > { %v4838_v35 = vpop.f32.mrb[140].mxu0 }
0x1f5a   : > { %v4839_v52 = vadd.f32 %v6020_v63, %v4838_v35  ;;  %v5777_v11 = vpop.f32.mrb[141].mxu0  ;;  %v4850_v12 = vsel %vm604_vm1, %v4845_v9, 0.0 }
0x1f5b   : > { %v4841_v4 = vpop.f32.mrb[142].mxu0  ;;  %4851 = vadd.xlane.f32.xlu1 %v4850_v12 }
0x1f5c   : > { %v4846_v14 = vadd.f32 %v4839_v52, %v7131_v20  ;;  %v5778_v15 = vpop.f32.mrb[143].mxu0 }
0x1f5e   : > { %v4853_v54 = vsel %vm604_vm1, %v4846_v14, 0.0 }
0x1f5f   : > { %4854 = vadd.xlane.f32.xlu0 %v4853_v54 }
0x1faf   : > { %v4849_v42 = vpop.xlane.xlu0 %4848 }
0x1fb0   : > { %v4856_v8 = vmul.f32 0.03125, %v4849_v42 }
0x1fb2   : > { %v4859_v7 = vsub.f32 %v4844_v0, %v4856_v8 }
0x1fb4   : > { %v4862_v16 = vmul.f32 %v4859_v7, %v4859_v7 }
0x1fb6   : > { %v4865_v17 = vsel %vm604_vm1, %v4862_v16, 0.0 }
0x1fb7   : > { %4866 = vadd.xlane.f32.xlu1 %v4865_v17 }
0x1fe8   : > { %v4852_v19 = vpop.xlane.xlu1 %4851 }
0x1fe9   : > { %v4857_v21 = vmul.f32 0.03125, %v4852_v19 }
0x1feb   : > { %v4860_v22 = vsub.f32 %v4845_v9, %v4857_v21 }
0x1fec   : > { %v4855_v24 = vpop.xlane.xlu0 %4854 }
0x1fed   : > { %v4858_v26 = vmul.f32 0.03125, %v4855_v24  ;;  %v4863_v27 = vmul.f32 %v4860_v22, %v4860_v22 }
0x1fef   : > { %v4861_v28 = vsub.f32 %v4846_v14, %v4858_v26  ;;  %v4868_v20 = vsel %vm604_vm1, %v4863_v27, 0.0 }
0x1ff0   : > { %4869 = vadd.xlane.f32.xlu0 %v4868_v20 }
0x1ff1   : > { %v4864_v23 = vmul.f32 %v4861_v28, %v4861_v28 }
0x1ff3   : > { %v4871_v29 = vsel %vm604_vm1, %v4864_v23, 0.0 }
0x1ff4   : > { %4872 = vadd.xlane.f32.xlu1 %v4871_v29 }
0x2044   : > { %v4867_v31 = vpop.xlane.xlu1 %4866 }
0x2045   : > { %v4874_v33 = vmul.f32 0.03125, %v4867_v31 }
0x2047   : > { %v4877_v34 = vadd.f32 1e-05, %v4874_v33 }
0x2049   : > { %5963 = vrsqrt.f32 %v4877_v34 }
0x2053   : > { %v5964_v36 = vpop.eup %5963 }
0x2054   : > { %v4883_v37 = vmul.f32 %v5964_v36, %v4859_v7 }
0x2056   : > { %v4886_v41 = vmul.f32 %v6021_v39, %v4883_v37 }
0x2058   : > { %v4889_v44 = vadd.f32 %v6022_v43, %v4886_v41 }
0x205a   : > { %4892 = vst.msk [vmem:[%s481_s21] sm:$0xff] %vm604_vm1, %v4889_v44 }
0x207d   : > { %v4870_v45 = vpop.xlane.xlu0 %4869 }
0x207e   : > { %v4875_v3 = vmul.f32 0.03125, %v4870_v45 }
0x2080   : > { %v4878_v47 = vadd.f32 1e-05, %v4875_v3 }
0x2081   : > { %v4873_v51 = vpop.xlane.xlu1 %4872 }
0x2082   : > { %5965 = vrsqrt.f32 %v4878_v47  ;;  %v4876_v48 = vmul.f32 0.03125, %v4873_v51 }
0x2084   : > { %v4879_v49 = vadd.f32 1e-05, %v4876_v48 }
0x2086   : > { %5967 = vrsqrt.f32 %v4879_v49 }
0x208c   : > { %v5966_v50 = vpop.eup %5965 }
0x208d   : > { %v4884_v59 = vmul.f32 %v5966_v50, %v4860_v22 }
0x208f   : > { %v4887_v1 = vmul.f32 %v6023_v53, %v4884_v59 }
0x2090   : > { %v5968_v13 = vpop.eup %5967 }
0x2091   : > { %v4890_v18 = vadd.f32 %v6024_v38, %v4887_v1  ;;  %v4885_v46 = vmul.f32 %v5968_v13, %v4861_v28 }
0x2093   : > { %4893 = vst.msk [vmem:[%s481_s21 + $0x8] sm:$0xff] %vm604_vm1, %v4890_v18  ;;  %v4888_v55 = vmul.f32 %v6025_v30, %v4885_v46 }
0x2095   : > { %v4891_v58 = vadd.f32 %v6026_v56, %v4888_v55 }
0x2097   : > { %4894 = vst.msk [vmem:[%s481_s21 + $0x10] sm:$0xff] %vm604_vm1, %v4891_v58 }
0x2098 PF: > { %s24_s29 = sadd.s32 1, %s6033_s29  }
0x2099   : > { %p21_p4 = scmp.ge.s32.totalorder %s24_s29, 4  }
0x209b   :  { %23 = sbr.rel (!%p21_p4) target bundleno = 1 (0x1), region = 109 }

</bundles_post_ra>
